<compile_context>
chip_gen: v6e
topology: v6e:2x2x1
jax: 0.10.0
libtpu: 0.0.40
codegen_flags: <defaults>
</compile_context>

<pallas_src>
import functools
import math

import numpy as np
import jax
import jax.numpy as jnp
from jax.experimental import pallas as pl
from jax.experimental.pallas import tpu as pltpu

# --------------------------------------------------------------------------
# Irreps setup (synthetic, deterministic).  (mul, l, parity)
# --------------------------------------------------------------------------
IRREPS_IN1 = [(32, 0, 1), (32, 1, -1)]   # node features : 32x0e + 32x1o -> dim 128
IRREPS_IN2 = [(4, 0, 1), (1, 1, -1)]     # node attrs    :  4x0e +  1x1o -> dim 7
IRREPS_OUT = [(32, 0, 1), (32, 1, -1)]   # output        : 32x0e + 32x1o -> dim 128


def irreps_dim(irreps):
    return sum(mul * (2 * l + 1) for mul, l, _ in irreps)


def irreps_offsets(irreps):
    offs, o = [], 0
    for mul, l, _ in irreps:
        offs.append(o)
        o += mul * (2 * l + 1)
    return offs


# Real orthonormal Wigner-3j blocks needed for l <= 1 paths.
# TODO(synk): extend _W3J beyond the l<=1 paths used here (general real Wigner-3j).
_W3J = {
    (0, 0, 0): np.ones((1, 1, 1), np.float32),
    (1, 1, 0): (np.eye(3, dtype=np.float32) / math.sqrt(3.0)).reshape(3, 3, 1),
    (0, 1, 1): (np.eye(3, dtype=np.float32) / math.sqrt(3.0)).reshape(1, 3, 3),
    (1, 0, 1): (np.eye(3, dtype=np.float32) / math.sqrt(3.0)).reshape(3, 1, 3),
}


def fctp_instructions(irr1, irr2, irro):
    """Fully-connected ('uvw') paths allowed by parity + triangle rule."""
    ins = []
    for i1, (_, l1, p1) in enumerate(irr1):
        for i2, (_, l2, p2) in enumerate(irr2):
            for io, (_, lo, po) in enumerate(irro):
                if po != p1 * p2:
                    continue
                if lo < abs(l1 - l2) or lo > l1 + l2:
                    continue
                ins.append((i1, i2, io))
    return ins


def path_weights(irr1, irr2, irro, instructions):
    """e3nn defaults: irrep_normalization='component', path_normalization='element'."""
    pws = []
    for (i1, i2, io) in instructions:
        fan = sum(irr1[j1][0] * irr2[j2][0]
                  for (j1, j2, jo) in instructions if jo == io)
        alpha = (2 * irro[io][1] + 1) / float(fan)
        pws.append(math.sqrt(alpha))
    return pws


def build_fused_tensor(irr1, irr2, irro, instructions, pws, weights):
    """Fold shared path weights + Wigner-3j into one T[d1, d2, d3]."""
    d1, d2, d3 = irreps_dim(irr1), irreps_dim(irr2), irreps_dim(irro)
    off1, off2, off3 = irreps_offsets(irr1), irreps_offsets(irr2), irreps_offsets(irro)
    T = np.zeros((d1, d2, d3), np.float32)
    for (i1, i2, io), pw, W in zip(instructions, pws, weights):
        mul1, l1, _ = irr1[i1]
        mul2, l2, _ = irr2[i2]
        mulo, lo, _ = irro[io]
        C = _W3J[(l1, l2, lo)]
        blk = pw * np.einsum('uvw,ijk->uivjwk', np.asarray(W), C)
        blk = blk.reshape(mul1 * (2 * l1 + 1), mul2 * (2 * l2 + 1), mulo * (2 * lo + 1))
        T[off1[i1]:off1[i1] + blk.shape[0],
          off2[i2]:off2[i2] + blk.shape[1],
          off3[io]:off3[io] + blk.shape[2]] += blk
    return jnp.asarray(T)


# --------------------------------------------------------------------------
# One-time weight layout (model-construction time, NOT per forward call):
#   lay T out as (d2*d1, d3), row j*d1 + i = T[i, j, :], cast to MXU dtype.
#   No d2 padding: (7*128=896, 128) already satisfies the (8,128) tiling.
# --------------------------------------------------------------------------
def prepare_self_connection_weights(t_fused, *, mxu_dtype=jnp.bfloat16):
    d1, d2, d3 = t_fused.shape
    t2 = jnp.transpose(t_fused, (1, 0, 2)).reshape(d2 * d1, d3).astype(mxu_dtype)
    return t2


def _use_bf16_products():
    """Packed-bf16 VALU exists on v6e / v7x; v5e (and older) multiply in f32."""
    try:
        kind = jax.devices()[0].device_kind.lower()
    except Exception:
        return False
    return ("v6" in kind) or ("v7" in kind)


def _pick_node_tile(n, max_tile=1024, min_tile=128):
    """Big tiles amortize the ~0.35us per-grid-step cost, but keep grid >= 2 so
    both v7x TensorCores get work."""
    tile = max_tile
    while tile > min_tile and pl.cdiv(n, tile) < 2:
        tile //= 2
    return tile


# --------------------------------------------------------------------------
# Pallas kernel: build lhs in a VMEM bf16 scratch, one fused MXU matmul.
#   lhs[n, j*d1 + i] = y[n, j] * x[n, i]
#   out[n, k]        = lhs @ T2            (bf16 MXU, f32 accumulation)
# --------------------------------------------------------------------------
def fctp_kernel(x_ref, y_ref, t_ref, o_ref, lhs_ref, xb_ref, *,
                d1, n_cols, n_total, node_tile, bf16_products):
    if bf16_products:
        # v6e/v7x: cast x to bf16 ONCE into VMEM scratch, multiply in packed bf16.
        xb_ref[...] = x_ref[...].astype(jnp.bfloat16)
        for j in range(n_cols):
            yj = y_ref[:, j:j + 1].astype(jnp.bfloat16)        # (TN, 1)
            lhs_ref[:, j * d1:(j + 1) * d1] = xb_ref[...] * yj
    else:
        # v5e: no bf16 VALU -> multiply in f32, round to bf16 only on the store.
        for j in range(n_cols):
            yj = y_ref[:, j:j + 1]                             # (TN, 1) f32
            lhs_ref[:, j * d1:(j + 1) * d1] = (x_ref[...] * yj).astype(lhs_ref.dtype)

    out = jnp.dot(lhs_ref[...], t_ref[...],
                  preferred_element_type=jnp.float32).astype(o_ref.dtype)

    rem = n_total % node_tile
    if rem == 0:
        o_ref[...] = out
    else:
        # Ragged last tile: its padded input rows are unspecified -> zero them
        # before the (partially masked) output store.
        last = pl.num_programs(0) - 1

        @pl.when(pl.program_id(0) != last)
        def _store_full():
            o_ref[...] = out

        @pl.when(pl.program_id(0) == last)
        def _store_tail():
            row = jax.lax.broadcasted_iota(jnp.int32, out.shape, 0)
            o_ref[...] = jnp.where(row < rem, out, jnp.zeros_like(out))


def self_connection_intro(node_feature, node_attr, t2, *, node_tile=None):
    """Pallas equivalent of SelfConnectionIntro.forward's FCTP; returns the
    tensor that would be stored under KEY.SELF_CONNECTION_TEMP."""
    n, d1 = node_feature.shape
    d2 = node_attr.shape[1]
    kdim, d3 = t2.shape
    assert kdim == d2 * d1

    if node_tile is None:
        node_tile = _pick_node_tile(n)
    grid = pl.cdiv(n, node_tile)
    bf16_products = _use_bf16_products()

    # VMEM budget: lhs scratch + xb scratch + double-buffered x/y/out + T2 (x2).
    est_vmem = (node_tile * kdim * 2 + node_tile * d1 * 2
                + 2 * node_tile * (d1 + d2 + d3) * 4
                + 2 * kdim * d3 * 2)
    cp_kwargs = dict(dimension_semantics=("parallel",))
    if est_vmem > 12 * 1024 * 1024:           # only needed past v5e's 16MiB default
        cp_kwargs["vmem_limit_bytes"] = min(2 * est_vmem, 96 * 1024 * 1024)

    kernel = functools.partial(
        fctp_kernel, d1=d1, n_cols=d2, n_total=n,
        node_tile=node_tile, bf16_products=bf16_products)

    # NOTE: node_feature/out could be stored bf16 in HBM to halve DMA on
    # v5e/v6e if the surrounding model tolerates it; kept f32 here to preserve
    # the original module's dtypes.
    return pl.pallas_call(
        kernel,
        out_shape=jax.ShapeDtypeStruct((n, d3), node_feature.dtype),
        grid=(grid,),
        in_specs=[
            pl.BlockSpec((node_tile, d1), lambda i: (i, 0)),
            pl.BlockSpec((node_tile, d2), lambda i: (i, 0)),
            # Constant block index: T2 stays resident across grid steps
            # (~224 KiB in bf16, no re-DMA).
            pl.BlockSpec((kdim, d3), lambda i: (0, 0)),
        ],
        out_specs=pl.BlockSpec((node_tile, d3), lambda i: (i, 0)),
        scratch_shapes=[
            pltpu.VMEM((node_tile, kdim), jnp.bfloat16),   # lhs
            pltpu.VMEM((node_tile, d1), jnp.bfloat16),     # x cast once (bf16 path)
        ],
        compiler_params=pltpu.CompilerParams(**cp_kwargs),
    )(node_feature, node_attr, t2)


if __name__ == "__main__":
    key = jax.random.PRNGKey(0)
    k_x, k_attr, k_w = jax.random.split(key, 3)

    n_nodes = 500                    # ragged on purpose -> tile 256, grid=2, masked tail
    d1 = irreps_dim(IRREPS_IN1)
    d2 = irreps_dim(IRREPS_IN2)
    d3 = irreps_dim(IRREPS_OUT)

    # Synthetic graph data (dict mirrors AtomGraphDataType).
    data = {
        "node_feature": jax.random.normal(k_x, (n_nodes, d1), jnp.float32),
        "node_attr": jax.random.normal(k_attr, (n_nodes, d2), jnp.float32),
    }

    # Deterministic FCTP weights: one randn (mul1, mul2, mul_out) block per path.
    instructions = fctp_instructions(IRREPS_IN1, IRREPS_IN2, IRREPS_OUT)
    pws = path_weights(IRREPS_IN1, IRREPS_IN2, IRREPS_OUT, instructions)
    w_keys = jax.random.split(k_w, len(instructions))
    weights = [
        np.asarray(jax.random.normal(
            wk, (IRREPS_IN1[i1][0], IRREPS_IN2[i2][0], IRREPS_OUT[io][0]),
            jnp.float32))
        for wk, (i1, i2, io) in zip(w_keys, instructions)
    ]
    t_fused = build_fused_tensor(IRREPS_IN1, IRREPS_IN2, IRREPS_OUT,
                                 instructions, pws, weights)

    # One-time setup (model construction time), NOT per forward call.
    t2 = prepare_self_connection_weights(t_fused)

    # Forward: data[SELF_CONNECTION_TEMP] = FCTP(node_feature, node_attr)
    out = self_connection_intro(data["node_feature"], data["node_attr"], t2)
    out = jax.block_until_ready(out)
    data["self_cont_tmp"] = out          # KEY.SELF_CONNECTION_TEMP
    assert out.shape == (n_nodes, d3)

    # --- checks ------------------------------------------------------------
    # (1) vs a reference quantized exactly like the kernel's MXU inputs.
    if _use_bf16_products():
        lhs_ref = (data["node_attr"].astype(jnp.bfloat16)[:, :, None]
                   * data["node_feature"].astype(jnp.bfloat16)[:, None, :])
    else:
        lhs_ref = (data["node_attr"][:, :, None]
                   * data["node_feature"][:, None, :]).astype(jnp.bfloat16)
    lhs_ref = lhs_ref.reshape(n_nodes, d2 * d1).astype(jnp.float32)
    ref_q = jnp.dot(lhs_ref, t2.astype(jnp.float32),
                    precision=jax.lax.Precision.HIGHEST)
    assert bool(jnp.allclose(out, ref_q, atol=2e-3, rtol=2e-3))

    # (2) loose sanity vs the full-f32 einsum (bf16 MXU inputs ~0.4% rel error).
    ref_f32 = jnp.einsum('ni,nj,ijk->nk', data["node_feature"],
                         data["node_attr"], t_fused)
    assert bool(jnp.allclose(out, ref_f32, atol=5e-2, rtol=5e-2))

    print("KERNEL_OK")
</pallas_src>

<mosaic_0001>
module attributes {stable_mosaic.version = 11 : i64} {
  func.func @fctp_kernel(%arg0: i32, %arg1: memref<256x128xf32, #tpu.memory_space<vmem>>, %arg2: memref<256x7xf32, #tpu.memory_space<vmem>>, %arg3: memref<896x128xbf16, #tpu.memory_space<vmem>>, %arg4: memref<256x128xf32, #tpu.memory_space<vmem>>, %arg5: memref<256x896xbf16, #tpu.memory_space<vmem>>, %arg6: memref<256x128xbf16, #tpu.memory_space<vmem>>) attributes {dimension_semantics = [#tpu.dimension_semantics<parallel>], iteration_bounds = array<i64: 2>, scalar_prefetch = 0 : i64, scratch_operands = 2 : i64, tpu.core_type = #tpu.core_type<tc>, window_params = [{transform_indices = @transform_0, window_bounds = array<i64: 256, 128>}, {transform_indices = @transform_1, window_bounds = array<i64: 256, 7>}, {pipeline_mode = #tpu.pipeline_mode<synchronous>, transform_indices = @transform_2, window_bounds = array<i64: 896, 128>}, {transform_indices = @transform_3, window_bounds = array<i64: 256, 128>}]} {
    %c0 = arith.constant 0 : index
    %c0_0 = arith.constant 0 : index
    %0 = vector.load %arg2[%c0, %c0_0] : memref<256x7xf32, #tpu.memory_space<vmem>>, vector<256x1xf32>
    %c0_1 = arith.constant 0 : index
    %c0_2 = arith.constant 0 : index
    %1 = vector.load %arg1[%c0_1, %c0_2] : memref<256x128xf32, #tpu.memory_space<vmem>>, vector<256x128xf32>
    %2 = vector.broadcast %0 : vector<256x1xf32> to vector<256x128xf32>
    %3 = arith.mulf %1, %2 : vector<256x128xf32>
    %4 = arith.truncf %3 : vector<256x128xf32> to vector<256x128xbf16>
    %c0_3 = arith.constant 0 : index
    %c0_4 = arith.constant 0 : index
    %5 = vector.load %arg5[%c0_3, %c0_4] : memref<256x896xbf16, #tpu.memory_space<vmem>>, vector<256x128xbf16>
    tpu.vector_store %arg5[%c0_3, %c0_4], %4 {strides = array<i32>} : memref<256x896xbf16, #tpu.memory_space<vmem>>, vector<256x128xbf16>,
    %c0_5 = arith.constant 0 : index
    %c1 = arith.constant 1 : index
    %6 = vector.load %arg2[%c0_5, %c1] : memref<256x7xf32, #tpu.memory_space<vmem>>, vector<256x1xf32>
    %c0_6 = arith.constant 0 : index
    %c0_7 = arith.constant 0 : index
    %7 = vector.load %arg1[%c0_6, %c0_7] : memref<256x128xf32, #tpu.memory_space<vmem>>, vector<256x128xf32>
    %8 = vector.broadcast %6 : vector<256x1xf32> to vector<256x128xf32>
    %9 = arith.mulf %7, %8 : vector<256x128xf32>
    %10 = arith.truncf %9 : vector<256x128xf32> to vector<256x128xbf16>
    %c0_8 = arith.constant 0 : index
    %c128 = arith.constant 128 : index
    %11 = vector.load %arg5[%c0_8, %c128] : memref<256x896xbf16, #tpu.memory_space<vmem>>, vector<256x128xbf16>
    tpu.vector_store %arg5[%c0_8, %c128], %10 {strides = array<i32>} : memref<256x896xbf16, #tpu.memory_space<vmem>>, vector<256x128xbf16>,
    %c0_9 = arith.constant 0 : index
    %c2 = arith.constant 2 : index
    %12 = vector.load %arg2[%c0_9, %c2] : memref<256x7xf32, #tpu.memory_space<vmem>>, vector<256x1xf32>
    %c0_10 = arith.constant 0 : index
    %c0_11 = arith.constant 0 : index
    %13 = vector.load %arg1[%c0_10, %c0_11] : memref<256x128xf32, #tpu.memory_space<vmem>>, vector<256x128xf32>
    %14 = vector.broadcast %12 : vector<256x1xf32> to vector<256x128xf32>
    %15 = arith.mulf %13, %14 : vector<256x128xf32>
    %16 = arith.truncf %15 : vector<256x128xf32> to vector<256x128xbf16>
    %c0_12 = arith.constant 0 : index
    %c256 = arith.constant 256 : index
    %17 = vector.load %arg5[%c0_12, %c256] : memref<256x896xbf16, #tpu.memory_space<vmem>>, vector<256x128xbf16>
    tpu.vector_store %arg5[%c0_12, %c256], %16 {strides = array<i32>} : memref<256x896xbf16, #tpu.memory_space<vmem>>, vector<256x128xbf16>,
    %c0_13 = arith.constant 0 : index
    %c3 = arith.constant 3 : index
    %18 = vector.load %arg2[%c0_13, %c3] : memref<256x7xf32, #tpu.memory_space<vmem>>, vector<256x1xf32>
    %c0_14 = arith.constant 0 : index
    %c0_15 = arith.constant 0 : index
    %19 = vector.load %arg1[%c0_14, %c0_15] : memref<256x128xf32, #tpu.memory_space<vmem>>, vector<256x128xf32>
    %20 = vector.broadcast %18 : vector<256x1xf32> to vector<256x128xf32>
    %21 = arith.mulf %19, %20 : vector<256x128xf32>
    %22 = arith.truncf %21 : vector<256x128xf32> to vector<256x128xbf16>
    %c0_16 = arith.constant 0 : index
    %c384 = arith.constant 384 : index
    %23 = vector.load %arg5[%c0_16, %c384] : memref<256x896xbf16, #tpu.memory_space<vmem>>, vector<256x128xbf16>
    tpu.vector_store %arg5[%c0_16, %c384], %22 {strides = array<i32>} : memref<256x896xbf16, #tpu.memory_space<vmem>>, vector<256x128xbf16>,
    %c0_17 = arith.constant 0 : index
    %c4 = arith.constant 4 : index
    %24 = vector.load %arg2[%c0_17, %c4] : memref<256x7xf32, #tpu.memory_space<vmem>>, vector<256x1xf32>
    %c0_18 = arith.constant 0 : index
    %c0_19 = arith.constant 0 : index
    %25 = vector.load %arg1[%c0_18, %c0_19] : memref<256x128xf32, #tpu.memory_space<vmem>>, vector<256x128xf32>
    %26 = vector.broadcast %24 : vector<256x1xf32> to vector<256x128xf32>
    %27 = arith.mulf %25, %26 : vector<256x128xf32>
    %28 = arith.truncf %27 : vector<256x128xf32> to vector<256x128xbf16>
    %c0_20 = arith.constant 0 : index
    %c512 = arith.constant 512 : index
    %29 = vector.load %arg5[%c0_20, %c512] : memref<256x896xbf16, #tpu.memory_space<vmem>>, vector<256x128xbf16>
    tpu.vector_store %arg5[%c0_20, %c512], %28 {strides = array<i32>} : memref<256x896xbf16, #tpu.memory_space<vmem>>, vector<256x128xbf16>,
    %c0_21 = arith.constant 0 : index
    %c5 = arith.constant 5 : index
    %30 = vector.load %arg2[%c0_21, %c5] : memref<256x7xf32, #tpu.memory_space<vmem>>, vector<256x1xf32>
    %c0_22 = arith.constant 0 : index
    %c0_23 = arith.constant 0 : index
    %31 = vector.load %arg1[%c0_22, %c0_23] : memref<256x128xf32, #tpu.memory_space<vmem>>, vector<256x128xf32>
    %32 = vector.broadcast %30 : vector<256x1xf32> to vector<256x128xf32>
    %33 = arith.mulf %31, %32 : vector<256x128xf32>
    %34 = arith.truncf %33 : vector<256x128xf32> to vector<256x128xbf16>
    %c0_24 = arith.constant 0 : index
    %c640 = arith.constant 640 : index
    %35 = vector.load %arg5[%c0_24, %c640] : memref<256x896xbf16, #tpu.memory_space<vmem>>, vector<256x128xbf16>
    tpu.vector_store %arg5[%c0_24, %c640], %34 {strides = array<i32>} : memref<256x896xbf16, #tpu.memory_space<vmem>>, vector<256x128xbf16>,
    %c0_25 = arith.constant 0 : index
    %c6 = arith.constant 6 : index
    %36 = vector.load %arg2[%c0_25, %c6] : memref<256x7xf32, #tpu.memory_space<vmem>>, vector<256x1xf32>
    %c0_26 = arith.constant 0 : index
    %c0_27 = arith.constant 0 : index
    %37 = vector.load %arg1[%c0_26, %c0_27] : memref<256x128xf32, #tpu.memory_space<vmem>>, vector<256x128xf32>
    %38 = vector.broadcast %36 : vector<256x1xf32> to vector<256x128xf32>
    %39 = arith.mulf %37, %38 : vector<256x128xf32>
    %40 = arith.truncf %39 : vector<256x128xf32> to vector<256x128xbf16>
    %c0_28 = arith.constant 0 : index
    %c768 = arith.constant 768 : index
    %41 = vector.load %arg5[%c0_28, %c768] : memref<256x896xbf16, #tpu.memory_space<vmem>>, vector<256x128xbf16>
    tpu.vector_store %arg5[%c0_28, %c768], %40 {strides = array<i32>} : memref<256x896xbf16, #tpu.memory_space<vmem>>, vector<256x128xbf16>,
    %c0_29 = arith.constant 0 : index
    %c0_30 = arith.constant 0 : index
    %42 = vector.load %arg5[%c0_29, %c0_30] : memref<256x896xbf16, #tpu.memory_space<vmem>>, vector<256x896xbf16>
    %c0_31 = arith.constant 0 : index
    %c0_32 = arith.constant 0 : index
    %43 = vector.load %arg3[%c0_31, %c0_32] : memref<896x128xbf16, #tpu.memory_space<vmem>>, vector<896x128xbf16>
    %cst = arith.constant dense<0.000000e+00> : vector<256x128xf32>
    %44 = tpu.matmul %42, %43, %cst {dimension_numbers = #tpu.dot_dimension_numbers<[1], [0], [0], [1], [0, 0, 1, 1], [], []>} : vector<256x896xbf16>, vector<896x128xbf16>, vector<256x128xf32> -> vector<256x128xf32>
    %c1_i32 = arith.constant 1 : i32
    %45 = arith.cmpi ne, %arg0, %c1_i32 : i32
    %46 = arith.extui %45 : i1 to i32
    %c0_i32 = arith.constant 0 : i32
    %47 = arith.cmpi ne, %46, %c0_i32 : i32
    scf.if %47 {
      %c0_35 = arith.constant 0 : index
      %c0_36 = arith.constant 0 : index
      %51 = vector.load %arg4[%c0_35, %c0_36] : memref<256x128xf32, #tpu.memory_space<vmem>>, vector<256x128xf32>
      tpu.vector_store %arg4[%c0_35, %c0_36], %44 {strides = array<i32>} : memref<256x128xf32, #tpu.memory_space<vmem>>, vector<256x128xf32>,
    } else {
    }
    %c1_i32_33 = arith.constant 1 : i32
    %48 = arith.cmpi eq, %arg0, %c1_i32_33 : i32
    %49 = arith.extui %48 : i1 to i32
    %c0_i32_34 = arith.constant 0 : i32
    %50 = arith.cmpi ne, %49, %c0_i32_34 : i32
    scf.if %50 {
      %51 = tpu.iota {dimensions = array<i32: 0>} : vector<256x128xi32>
      %c244_i32 = arith.constant 244 : i32
      %52 = vector.broadcast %c244_i32 : i32 to vector<256x128xi32>
      %53 = arith.cmpi slt, %51, %52 : vector<256x128xi32>
      %cst_35 = arith.constant 0.000000e+00 : f32
      %54 = vector.broadcast %cst_35 : f32 to vector<256x128xf32>
      %55 = arith.select %53, %44, %54 : vector<256x128xi1>, vector<256x128xf32>
      %c0_36 = arith.constant 0 : index
      %c0_37 = arith.constant 0 : index
      %56 = vector.load %arg4[%c0_36, %c0_37] : memref<256x128xf32, #tpu.memory_space<vmem>>, vector<256x128xf32>
      tpu.vector_store %arg4[%c0_36, %c0_37], %55 {strides = array<i32>} : memref<256x128xf32, #tpu.memory_space<vmem>>, vector<256x128xf32>,
    } else {
    }
    return
  }
  func.func @transform_0(%arg0: i32) -> (i32, i32) {
    %c0_i32 = arith.constant 0 : i32
    %c0_i32_0 = arith.constant 0 : i32
    return %arg0, %c0_i32 : i32, i32
  }
  func.func @transform_1(%arg0: i32) -> (i32, i32) {
    %c0_i32 = arith.constant 0 : i32
    %c0_i32_0 = arith.constant 0 : i32
    return %arg0, %c0_i32 : i32, i32
  }
  func.func @transform_2(%arg0: i32) -> (i32, i32) {
    %c0_i32 = arith.constant 0 : i32
    %c0_i32_0 = arith.constant 0 : i32
    %c0_i32_1 = arith.constant 0 : i32
    return %c0_i32, %c0_i32_0 : i32, i32
  }
  func.func @transform_3(%arg0: i32) -> (i32, i32) {
    %c0_i32 = arith.constant 0 : i32
    %c0_i32_0 = arith.constant 0 : i32
    return %arg0, %c0_i32 : i32, i32
  }
}

</mosaic_0001>

<bundles_post_ra>
// kernel: tpu_custom_call.1
= control target key start
LH: loop header
LB: loop body
LE: loop exit
PB: predicated region body
PF: predicated region fallthrough
CT: control target
= control target key end

     0   :  { %8 = vsyncpa [#allocation5], 0  ;;  %s8275_s0 = inlined_call_operand.vmem [shape: f32[500,128], index: 0, kind: input, shape index: {}]   ;;  %s8276_s1 = inlined_call_operand.vmem [shape: f32[500,7], index: 1, kind: input, shape index: {}]   ;;  %s8277_s2 = inlined_call_operand.hbm [shape: bf16[896,128], index: 2, kind: input, shape index: {}]   ;;  %s8278_s3 = inlined_call_operand.hbm [shape: f32[500,128], index: 3, kind: output, shape index: {}]  }
   0x1   :  { %9 = vsyncpa [#allocation6], 0 }
   0x2   :  { %11 = vsyncpa [#allocation6 + $0x1], 0  ;;  %s6763_s12 = smov 0   ;;  %s6765_s13 = smov 0  }
   0x3   :  { %s6767_s14 = smov 0   ;;  %s6769_s15 = smov 0  }
   0x4 LB: > { %s6784_s16 = sadd.s32 4294967295, %s6727_s15   ;;  %s5237_s17 = sadd.s32 4294967294, %s6727_s15   ;;  %s6727_s15 = sphi %s6769_s15, %s8303_s15   ;;  %s6723_s14 = sphi %s6767_s14, %s8302_s14   ;;  %s6719_s13 = sphi %s6765_s13, %s8301_s13   ;;  %s6715_s12 = sphi %s6763_s12, %s8300_s12  }
   0x5   : > { %s6788_s18 = sadd.s32 1, %s6727_s15   ;;  %s97_s19 = sadd.s32 1, %s6723_s14 }
   0x6   : > { %s94_s20 = ssub.s32 %s6727_s15, %s6788_s18  ;;  %p107_p0 = scmp.ne.s32.totalorder %s6723_s14, %s6719_s13 }
   0x7   : > { %p95_p1 = scmp.eq.s32.totalorder %s94_s20, 0  ;;  %p8279_p2 = scmp.eq.s32.totalorder %s6784_s16, 1 }
   0x8   : > { %p113_p3 = scmp.ne.s32.totalorder %s6719_s13, %s6715_s12  ;;  %p114_p4 = scmp.eq.s32.totalorder %s5237_s17, 1 }
   0x9   : > { %s6799_s21 = scalar_select %p95_p1, %s6723_s14, %s97_s19  }
   0xa   : > { %p6803_p5 = por %p8279_p2, %p107_p0  ;;  %p6807_p6 = por %p114_p4, %p113_p3 }
   0xb   : > { %p5238_p7 = scmp.ge.s32.totalorder %s6727_s15, 1  ;;  %p121_p8 = scmp.lt.s32.totalorder %s6727_s15, 3 }
   0xc   : > { %s8287_s23 = scalar_select %p6807_p6, 1, 0 }
   0xd   : > { %p6313_p9 = scmp.eq.s32.totalorder %s6784_s16, 0  ;;  %p6814_p10 = pnand %p5238_p7, %p121_p8 }
   0xe   : > { %s6729_s25 = smov [#allocation4]  }
   0xf   : > { %s133_s26 = sshll.u32 %s6729_s25, 4  ;;  %p6305_p11 = pneg %p6814_p10  ;;  %s134_s26 = int_to_ptr.vmem [resolvable:$true] %s133_s26 }
  0x10   : > { %s6648_s27 = scalar_lea.vmem %s134_s26, 7168  ;;  %p6656_p4 = scmp.lt.s32.totalorder %s134_s26, %s134_s26 }
  0x11   : > { %p6306_p12 = pnand %p6313_p9, %p6305_p11  ;;  %p6649_p0 = scmp.ne.s32.totalorder %s134_s26, %s6648_s27 }
  0x12   : > { %p6657_p2 = scmp.lt.s32.totalorder %s6648_s27, %s6648_s27 }
  0x13   : > { %p6639_p13 = pneg %p6306_p12 }
  0x14   : > { %p6658_p6 = por %p6657_p2, %p6656_p4 }
  0x15   : > { %p6651_p1 = pnand %p6649_p0, %p6639_p13 }
  0x17   : > { %p6652_p3 = pneg %p6651_p1 }
  0x19   : > { %p6659_p7 = pnand %p6658_p6, %p6652_p3 }
  0x1b   : > { %6662 = shalt.err (!%p6659_p7)
}
  0x1c   : > { %s6730_s28 = smov 64   ;;  %s6731_s29 = smov 4  }
  0x1d   : > { %6308 = dma.hbm_to_vmem [thread:$0]  (!%p6306_p12), %s8277_s2, 7168, %s134_s26, [#allocation5], %s6730_s28, %s6730_s28, %s6731_s29  }
  0x1e   : > { %183 = sbr.rel (%p6814_p10) target bundleno = 996 (0x3e4), region = 32 }
  0x23   : > { %6706 = dma.done.wait (%p6313_p9), [#allocation5], 7168  }
  0x24   : > { %6708 = vsyncadd (%p6313_p9), [#allocation5], 4294960128  ;;  %s6832_s5 = sshll.u32 %s6784_s16, 5  ;;  %v6732_v0 = vmov 0   ;;  %v6414_v25 = vld [vmem:[#allocation4 + $0x78] sm:$0xff]   ;;  %v6416_v29 = vld [vmem:[#allocation4 + $0x70] sm:$0xff]  }
  0x25   : > { %6362 = vset.pattern.permute.xlu1 %v6732_v0  ;;  %6361 = vset.pattern.permute.xlu0 %v6732_v0  ;;  %p225_p2 = scmp.lt.s32.totalorder %s6832_s5, 62  ;;  %v6415_v26 = vld [vmem:[#allocation4 + $0x38] sm:$0xff]   ;;  %v6417_v30 = vld [vmem:[#allocation4 + $0x30] sm:$0xff]   ;;  %s217_s11 = sand.u32 1, %s6719_s13   ;;  %v6418_v33 = vld [vmem:[#allocation4 + $0x68] sm:$0xff]   ;;  %v6733_v45 = vmov 1  }
  0x26   : > { %5876 = vmatprep.subr.bf16.mxu0 %v6414_v25  ;;  %6284 = vmatprep.subr.bf16.mxu1 %v6414_v25  ;;  %s6959_s17 = sshll.u32 %s217_s11, 8  ;;  %v6419_v34 = vld [vmem:[#allocation4 + $0x28] sm:$0xff]   ;;  %v6420_v37 = vld [vmem:[#allocation4 + $0x60] sm:$0xff]   ;;  %v6422_v41 = vld [vmem:[#allocation4 + $0x58] sm:$0xff]   ;;  %v6734_v0 = vmov 2   ;;  %p8298_p6 = scmp.eq.s32.totalorder %s6784_s16, 1 }
  0x27   : > { %s6836_s6 = scalar_select %p225_p2, %s6832_s5, 62  ;;  %5877 = vmatpush3.bf16.msra.mxu0 %v6415_v26  ;;  %6292 = vmatpush3.bf16.msra.mxu1 %v6415_v26  ;;  %v6421_v38 = vld [vmem:[#allocation4 + $0x20] sm:$0xff]   ;;  %v6423_v42 = vld [vmem:[#allocation4 + $0x18] sm:$0xff]   ;;  %v6424_v43 = vld [vmem:[#allocation4 + $0x50] sm:$0xff]  }
  0x28   : > { %5878 = vmatprep.subr.bf16.mxu0 %v6416_v29  ;;  %6285 = vmatprep.subr.bf16.mxu1 %v6416_v29  ;;  %v6425_v44 = vld [vmem:[#allocation4 + $0x10] sm:$0xff]   ;;  %v6426_v46 = vld [vmem:[#allocation4 + $0x48] sm:$0xff]   ;;  %v6428_v48 = vld [vmem:[#allocation4 + $0x40] sm:$0xff]   ;;  %s8082_s25 = scalar_lea.vmem [#allocation7], %s6959_s17 }
  0x29   : > { %s5245_s7 = sshll.u32 %s6836_s6, 3  ;;  %v6427_v47 = vld [vmem:[#allocation4 + $0x8] sm:$0xff]   ;;  %v6429_v49 = vld [vmem:[#allocation4] sm:$0xff]  }
  0x2a   : > { %s6844_s10 = scalar_lea.vmem %s8276_s1, %s5245_s7  ;;  %s7012_s24 = scalar_lea.vmem %s8275_s0, %s5245_s7 }
  0x2b   : > { %v6847_v1 = vld [vmem:[%s6844_s10 + $0x10] sm:$0xff]  ;;  %v6850_v2 = vld [vmem:[%s6844_s10] sm:$0xff]  ;;  %v6855_v3 = vld [vmem:[%s6844_s10 + $0x18] sm:$0xff]  ;;  %5879 = vmatpush3.bf16.msra.mxu0 %v6417_v30  ;;  %6293 = vmatpush3.bf16.msra.mxu1 %v6417_v30 }
  0x2c   : > { %330 = vperm.xlu1 %6362, %v6847_v1   ;;  %320 = vperm.xlu0 %6361, %v6850_v2   ;;  %v6858_v4 = vld [vmem:[%s6844_s10 + $0x8] sm:$0xff]  ;;  %v6866_v6 = vld [vmem:[%s6844_s10 + $0x20] sm:$0xff]  ;;  %v6871_v7 = vld [vmem:[%s6844_s10 + $0x38] sm:$0xff] }
  0x2d   : > { %v6863_v5 = vld [vmem:[%s6844_s10 + $0x28] sm:$0xff]  ;;  %v6874_v8 = vld [vmem:[%s6844_s10 + $0x30] sm:$0xff]  ;;  %v6882_v10 = vld [vmem:[%s6844_s10 + $0x40] sm:$0xff]  ;;  %5880 = vmatprep.subr.bf16.mxu0 %v6418_v33  ;;  %6286 = vmatprep.subr.bf16.mxu1 %v6418_v33 }
  0x2e   : > { %v6879_v9 = vld [vmem:[%s6844_s10 + $0x48] sm:$0xff]  ;;  %v6885_v11 = vld [vmem:[%s6844_s10 + $0x58] sm:$0xff]  ;;  %v6890_v12 = vld [vmem:[%s6844_s10 + $0x50] sm:$0xff] }
  0x2f   : > { %v6893_v13 = vld [vmem:[%s6844_s10 + $0x68] sm:$0xff]  ;;  %v6898_v14 = vld [vmem:[%s6844_s10 + $0x60] sm:$0xff]  ;;  %v6901_v15 = vld [vmem:[%s6844_s10 + $0x78] sm:$0xff]  ;;  %5881 = vmatpush3.bf16.msra.mxu0 %v6419_v34  ;;  %6294 = vmatpush3.bf16.msra.mxu1 %v6419_v34 }
  0x30   : > { %335 = vperm.xlu1 %6362, %v6855_v3   ;;  %325 = vperm.xlu0 %6361, %v6858_v4   ;;  %v6906_v16 = vld [vmem:[%s6844_s10 + $0x70] sm:$0xff]  ;;  %v6909_v17 = vld [vmem:[%s6844_s10 + $0x88] sm:$0xff]  ;;  %v6914_v18 = vld [vmem:[%s6844_s10 + $0x80] sm:$0xff] }
  0x31   : > { %v6917_v19 = vld [vmem:[%s6844_s10 + $0x98] sm:$0xff]  ;;  %v6922_v20 = vld [vmem:[%s6844_s10 + $0x90] sm:$0xff]  ;;  %v6925_v21 = vld [vmem:[%s6844_s10 + $0xa8] sm:$0xff]  ;;  %5882 = vmatprep.subr.bf16.mxu0 %v6420_v37  ;;  %6287 = vmatprep.subr.bf16.mxu1 %v6420_v37 }
  0x32   : > { %v6930_v22 = vld [vmem:[%s6844_s10 + $0xa0] sm:$0xff]  ;;  %v6933_v23 = vld [vmem:[%s6844_s10 + $0xb8] sm:$0xff]  ;;  %v6938_v24 = vld [vmem:[%s6844_s10 + $0xb0] sm:$0xff] }
  0x33   : > { %v6941_v27 = vld [vmem:[%s6844_s10 + $0xc8] sm:$0xff]  ;;  %v6946_v28 = vld [vmem:[%s6844_s10 + $0xc0] sm:$0xff]  ;;  %v6949_v31 = vld [vmem:[%s6844_s10 + $0xd8] sm:$0xff]  ;;  %5883 = vmatpush3.bf16.msra.mxu0 %v6421_v38  ;;  %6295 = vmatpush3.bf16.msra.mxu1 %v6421_v38 }
  0x34   : > { %345 = vperm.xlu1 %6362, %v6863_v5   ;;  %340 = vperm.xlu0 %6361, %v6866_v6   ;;  %v6954_v32 = vld [vmem:[%s6844_s10 + $0xd0] sm:$0xff]  ;;  %v6962_v35 = vld [vmem:[%s6844_s10 + $0xe8] sm:$0xff]  ;;  %v6967_v36 = vld [vmem:[%s6844_s10 + $0xe0] sm:$0xff] }
  0x35   : > { %v6970_v39 = vld [vmem:[%s6844_s10 + $0xf8] sm:$0xff]  ;;  %v6975_v40 = vld [vmem:[%s6844_s10 + $0xf0] sm:$0xff]  ;;  %5884 = vmatprep.subr.bf16.mxu0 %v6422_v41  ;;  %6288 = vmatprep.subr.bf16.mxu1 %v6422_v41  ;;  %v7020_v51 = vld [vmem:[%s7012_s24] sm:$0xff] }
  0x36   : > { %v7017_v50 = vld [vmem:[%s7012_s24 + $0x10] sm:$0xff]  ;;  %v7027_v56 = vld [vmem:[%s7012_s24 + $0x18] sm:$0xff]  ;;  %v7030_v57 = vld [vmem:[%s7012_s24 + $0x8] sm:$0xff] }
  0x37   : > { %5885 = vmatpush3.bf16.msra.mxu0 %v6423_v42  ;;  %6296 = vmatpush3.bf16.msra.mxu1 %v6423_v42  ;;  %v7035_v25 = vld [vmem:[%s7012_s24 + $0x28] sm:$0xff]  ;;  %v7038_v26 = vld [vmem:[%s7012_s24 + $0x20] sm:$0xff]  ;;  %v7045_v41 = vld [vmem:[%s7012_s24 + $0x38] sm:$0xff] }
  0x38   : > { %355 = vperm.xlu1 %6362, %v6871_v7   ;;  %350 = vperm.xlu0 %6361, %v6874_v8   ;;  %v7048_v42 = vld [vmem:[%s7012_s24 + $0x30] sm:$0xff] }
  0x39   : > { %5886 = vmatprep.subr.bf16.mxu0 %v6424_v43  ;;  %6289 = vmatprep.subr.bf16.mxu1 %v6424_v43 }
  0x3b   : > { %5887 = vmatpush3.bf16.msra.mxu0 %v6425_v44  ;;  %6297 = vmatpush3.bf16.msra.mxu1 %v6425_v44 }
  0x3c   : > { %365 = vperm.xlu1 %6362, %v6879_v9   ;;  %360 = vperm.xlu0 %6361, %v6882_v10  }
  0x3d   : > { %5888 = vmatprep.subr.bf16.mxu0 %v6426_v46  ;;  %6290 = vmatprep.subr.bf16.mxu1 %v6426_v46 }
  0x3f   : > { %5889 = vmatpush3.bf16.msra.mxu0 %v6427_v47  ;;  %6298 = vmatpush3.bf16.msra.mxu1 %v6427_v47 }
  0x40   : > { %375 = vperm.xlu1 %6362, %v6885_v11   ;;  %370 = vperm.xlu0 %6361, %v6890_v12  }
  0x41   : > { %5890 = vmatprep.subr.bf16.mxu0 %v6428_v48  ;;  %6291 = vmatprep.subr.bf16.mxu1 %v6428_v48 }
  0x43   : > { %5891 = vmatpush3.bf16.msra.mxu0 %v6429_v49  ;;  %6299 = vmatpush3.bf16.msra.mxu1 %v6429_v49  ;;  %v7055_v49 = vld [vmem:[%s7012_s24 + $0x48] sm:$0xff] }
  0x44   : > { %385 = vperm.xlu1 %6362, %v6893_v13   ;;  %380 = vperm.xlu0 %6361, %v6898_v14  }
  0x48   : > { %395 = vperm.xlu1 %6362, %v6901_v15   ;;  %390 = vperm.xlu0 %6361, %v6906_v16  }
  0x4c   : > { %405 = vperm.xlu1 %6362, %v6909_v17   ;;  %400 = vperm.xlu0 %6361, %v6914_v18  }
  0x50   : > { %415 = vperm.xlu1 %6362, %v6917_v19   ;;  %410 = vperm.xlu0 %6361, %v6922_v20  }
  0x54   : > { %425 = vperm.xlu1 %6362, %v6925_v21   ;;  %420 = vperm.xlu0 %6361, %v6930_v22  }
  0x58   : > { %435 = vperm.xlu1 %6362, %v6933_v23   ;;  %430 = vperm.xlu0 %6361, %v6938_v24  }
  0x5c   : > { %445 = vperm.xlu1 %6362, %v6941_v27   ;;  %440 = vperm.xlu0 %6361, %v6946_v28  }
  0x60   : > { %455 = vperm.xlu1 %6362, %v6949_v31   ;;  %450 = vperm.xlu0 %6361, %v6954_v32  }
  0x64   : > { %465 = vperm.xlu1 %6362, %v6962_v35   ;;  %460 = vperm.xlu0 %6361, %v6967_v36  }
  0x68   : > { %475 = vperm.xlu1 %6362, %v6970_v39   ;;  %470 = vperm.xlu0 %6361, %v6975_v40  }
  0x6c   : > { %6364 = vset.pattern.permute.xlu1 %v6733_v45  ;;  %6363 = vset.pattern.permute.xlu0 %v6733_v45 }
  0x6d   : > { %741 = vperm.xlu1 %6364, %v6858_v4   ;;  %736 = vperm.xlu0 %6363, %v6850_v2  }
  0x71   : > { %746 = vperm.xlu1 %6364, %v6847_v1   ;;  %751 = vperm.xlu0 %6363, %v6855_v3  }
  0x75   : > { %756 = vperm.xlu1 %6364, %v6866_v6   ;;  %761 = vperm.xlu0 %6363, %v6863_v5  }
  0x79   : > { %766 = vperm.xlu1 %6364, %v6874_v8   ;;  %771 = vperm.xlu0 %6363, %v6871_v7  }
  0x7d   : > { %776 = vperm.xlu1 %6364, %v6882_v10   ;;  %781 = vperm.xlu0 %6363, %v6879_v9  }
  0x81   : > { %786 = vperm.xlu1 %6364, %v6890_v12   ;;  %791 = vperm.xlu0 %6363, %v6885_v11  }
  0x85   : > { %796 = vperm.xlu1 %6364, %v6898_v14   ;;  %801 = vperm.xlu0 %6363, %v6893_v13  }
  0x89   : > { %806 = vperm.xlu1 %6364, %v6906_v16   ;;  %811 = vperm.xlu0 %6363, %v6901_v15  }
  0x8d   : > { %816 = vperm.xlu1 %6364, %v6914_v18   ;;  %821 = vperm.xlu0 %6363, %v6909_v17  }
  0x91   : > { %826 = vperm.xlu1 %6364, %v6922_v20   ;;  %831 = vperm.xlu0 %6363, %v6917_v19  }
  0x95   : > { %836 = vperm.xlu1 %6364, %v6930_v22   ;;  %841 = vperm.xlu0 %6363, %v6925_v21  }
  0x99   : > { %846 = vperm.xlu1 %6364, %v6938_v24   ;;  %851 = vperm.xlu0 %6363, %v6933_v23  }
  0x9d   : > { %856 = vperm.xlu1 %6364, %v6946_v28   ;;  %861 = vperm.xlu0 %6363, %v6941_v27  }
  0xa1   : > { %866 = vperm.xlu1 %6364, %v6954_v32   ;;  %871 = vperm.xlu0 %6363, %v6949_v31  }
  0xa5   : > { %876 = vperm.xlu1 %6364, %v6967_v36   ;;  %881 = vperm.xlu0 %6363, %v6962_v35  }
  0xa7   : > { %v331_v52 = vpop.permute.xlu1 %330  ;;  %v321_v53 = vpop.permute.xlu0 %320 }
  0xa8   : > { %v480_v54 = vmul.f32 %v331_v52, %v7017_v50  ;;  %v478_v55 = vmul.f32 %v321_v53, %v7020_v51  ;;  %v7058_v52 = vld [vmem:[%s7012_s24 + $0x40] sm:$0xff] }
  0xa9   : > { %886 = vperm.xlu1 %6364, %v6975_v40   ;;  %891 = vperm.xlu0 %6363, %v6970_v39  }
  0xaa   : > { %v5653_v58 = vpack.c.bf16 %v480_v54, %v480_v54  ;;  %v5651_v59 = vpack.c.bf16 %v478_v55, %v478_v55 }
  0xab   : > { %v336_v60 = vpop.permute.xlu1 %335  ;;  %v326_v61 = vpop.permute.xlu0 %325 }
  0xac   : > { %640 = vst [vmem:[#allocation2 + $0x38] sm:$0xf] %v5653_v58  ;;  %638 = vst [vmem:[#allocation2] sm:$0xf] %v5651_v59  ;;  %v481_v62 = vmul.f32 %v336_v60, %v7027_v56  ;;  %v479_v63 = vmul.f32 %v326_v61, %v7030_v57  ;;  %v7065_v61 = vld [vmem:[%s7012_s24 + $0x58] sm:$0xff] }
  0xad   : > { %6365 = vset.pattern.permute.xlu1 %v6734_v0  ;;  %6366 = vset.pattern.permute.xlu0 %v6734_v0 }
  0xae   : > { %v5654_v29 = vpack.c.bf16 %v481_v62, %v481_v62  ;;  %v5652_v30 = vpack.c.bf16 %v479_v63, %v479_v63  ;;  %1152 = vperm.xlu1 %6365, %v6850_v2   ;;  %1157 = vperm.xlu0 %6366, %v6858_v4   ;;  %v7068_v62 = vld [vmem:[%s7012_s24 + $0x50] sm:$0xff] }
  0xaf   : > { %v346_v33 = vpop.permute.xlu1 %345  ;;  %v341_v34 = vpop.permute.xlu0 %340 }
  0xb0   : > { %641 = vst [vmem:[#allocation2 + $0x54] sm:$0xf] %v5654_v29  ;;  %639 = vst [vmem:[#allocation2 + $0x1c] sm:$0xf] %v5652_v30  ;;  %v483_v37 = vmul.f32 %v346_v33, %v7035_v25  ;;  %v482_v38 = vmul.f32 %v341_v34, %v7038_v26  ;;  %v7075_v34 = vld [vmem:[%s7012_s24 + $0x68] sm:$0xff] }
  0xb2   : > { %v5656_v43 = vpack.c.bf16 %v483_v37, %v483_v37  ;;  %v5655_v44 = vpack.c.bf16 %v482_v38, %v482_v38  ;;  %1162 = vperm.xlu1 %6365, %v6847_v1   ;;  %1172 = vperm.xlu0 %6366, %v6866_v6   ;;  %v7078_v37 = vld [vmem:[%s7012_s24 + $0x60] sm:$0xff] }
  0xb3   : > { %v356_v45 = vpop.permute.xlu1 %355  ;;  %v351_v46 = vpop.permute.xlu0 %350 }
  0xb4   : > { %643 = vst [vmem:[#allocation2 + $0x8c] sm:$0xf] %v5656_v43  ;;  %642 = vst [vmem:[#allocation2 + $0x70] sm:$0xf] %v5655_v44  ;;  %v485_v47 = vmul.f32 %v356_v45, %v7045_v41  ;;  %v484_v48 = vmul.f32 %v351_v46, %v7048_v42  ;;  %v7085_v46 = vld [vmem:[%s7012_s24 + $0x78] sm:$0xff] }
  0xb6   : > { %v5658_v53 = vpack.c.bf16 %v485_v47, %v485_v47  ;;  %v5657_v54 = vpack.c.bf16 %v484_v48, %v484_v48  ;;  %1167 = vperm.xlu1 %6365, %v6855_v3   ;;  %1182 = vperm.xlu0 %6366, %v6874_v8   ;;  %v7088_v47 = vld [vmem:[%s7012_s24 + $0x70] sm:$0xff] }
  0xb7   : > { %v366_v55 = vpop.permute.xlu1 %365  ;;  %v361_v58 = vpop.permute.xlu0 %360 }
  0xb8   : > { %645 = vst [vmem:[#allocation2 + $0xc4] sm:$0xf] %v5658_v53  ;;  %644 = vst [vmem:[#allocation2 + $0xa8] sm:$0xf] %v5657_v54  ;;  %v487_v59 = vmul.f32 %v366_v55, %v7055_v49  ;;  %v486_v60 = vmul.f32 %v361_v58, %v7058_v52 }
  0xba   : > { %v5660_v63 = vpack.c.bf16 %v487_v59, %v487_v59  ;;  %v5659_v0 = vpack.c.bf16 %v486_v60, %v486_v60  ;;  %1177 = vperm.xlu1 %6365, %v6863_v5   ;;  %1192 = vperm.xlu0 %6366, %v6882_v10   ;;  %v7095_v59 = vld [vmem:[%s7012_s24 + $0x88] sm:$0xff]  ;;  %v7098_v60 = vld [vmem:[%s7012_s24 + $0x80] sm:$0xff] }
  0xbb   : > { %v376_v3 = vpop.permute.xlu1 %375  ;;  %v371_v29 = vpop.permute.xlu0 %370 }
  0xbc   : > { %647 = vst [vmem:[#allocation2 + $0xfc] sm:$0xf] %v5660_v63  ;;  %646 = vst [vmem:[#allocation2 + $0xe0] sm:$0xf] %v5659_v0  ;;  %v489_v30 = vmul.f32 %v376_v3, %v7065_v61  ;;  %v488_v33 = vmul.f32 %v371_v29, %v7068_v62 }
  0xbe   : > { %v5662_v38 = vpack.c.bf16 %v489_v30, %v489_v30  ;;  %v5661_v43 = vpack.c.bf16 %v488_v33, %v488_v33  ;;  %1187 = vperm.xlu1 %6365, %v6871_v7   ;;  %1202 = vperm.xlu0 %6366, %v6890_v12   ;;  %v7105_v30 = vld [vmem:[%s7012_s24 + $0x98] sm:$0xff]  ;;  %v7108_v33 = vld [vmem:[%s7012_s24 + $0x90] sm:$0xff] }
  0xbf   : > { %v386_v5 = vpop.permute.xlu1 %385  ;;  %v381_v10 = vpop.permute.xlu0 %380 }
  0xc0   : > { %649 = vst [vmem:[#allocation2 + $0x134] sm:$0xf] %v5662_v38  ;;  %648 = vst [vmem:[#allocation2 + $0x118] sm:$0xf] %v5661_v43  ;;  %v491_v44 = vmul.f32 %v386_v5, %v7075_v34  ;;  %v490_v45 = vmul.f32 %v381_v10, %v7078_v37 }
  0xc2   : > { %v5664_v48 = vpack.c.bf16 %v491_v44, %v491_v44  ;;  %v5663_v53 = vpack.c.bf16 %v490_v45, %v490_v45  ;;  %1197 = vperm.xlu1 %6365, %v6879_v9   ;;  %1212 = vperm.xlu0 %6366, %v6898_v14   ;;  %v7115_v44 = vld [vmem:[%s7012_s24 + $0xa8] sm:$0xff]  ;;  %v7118_v45 = vld [vmem:[%s7012_s24 + $0xa0] sm:$0xff] }
  0xc3   : > { %v396_v7 = vpop.permute.xlu1 %395  ;;  %v391_v54 = vpop.permute.xlu0 %390 }
  0xc4   : > { %651 = vst [vmem:[#allocation2 + $0x16c] sm:$0xf] %v5664_v48  ;;  %650 = vst [vmem:[#allocation2 + $0x150] sm:$0xf] %v5663_v53  ;;  %v493_v55 = vmul.f32 %v396_v7, %v7085_v46  ;;  %v492_v58 = vmul.f32 %v391_v54, %v7088_v47 }
  0xc6   : > { %v5666_v63 = vpack.c.bf16 %v493_v55, %v493_v55  ;;  %v5665_v0 = vpack.c.bf16 %v492_v58, %v492_v58  ;;  %1207 = vperm.xlu1 %6365, %v6885_v11   ;;  %1222 = vperm.xlu0 %6366, %v6906_v16   ;;  %v7125_v55 = vld [vmem:[%s7012_s24 + $0xb8] sm:$0xff]  ;;  %v7128_v58 = vld [vmem:[%s7012_s24 + $0xb0] sm:$0xff] }
  0xc7   : > { %v406_v9 = vpop.permute.xlu1 %405  ;;  %v401_v14 = vpop.permute.xlu0 %400 }
  0xc8   : > { %653 = vst [vmem:[#allocation2 + $0x1a4] sm:$0xf] %v5666_v63  ;;  %652 = vst [vmem:[#allocation2 + $0x188] sm:$0xf] %v5665_v0  ;;  %v495_v3 = vmul.f32 %v406_v9, %v7095_v59  ;;  %v494_v29 = vmul.f32 %v401_v14, %v7098_v60 }
  0xca   : > { %v5668_v38 = vpack.c.bf16 %v495_v3, %v495_v3  ;;  %v5667_v43 = vpack.c.bf16 %v494_v29, %v494_v29  ;;  %1217 = vperm.xlu1 %6365, %v6893_v13   ;;  %1232 = vperm.xlu0 %6366, %v6914_v18   ;;  %v7135_v3 = vld [vmem:[%s7012_s24 + $0xc8] sm:$0xff]  ;;  %v7138_v29 = vld [vmem:[%s7012_s24 + $0xc0] sm:$0xff] }
  0xcb   : > { %v416_v11 = vpop.permute.xlu1 %415  ;;  %v411_v16 = vpop.permute.xlu0 %410 }
  0xcc   : > { %655 = vst [vmem:[#allocation2 + $0x1dc] sm:$0xf] %v5668_v38  ;;  %654 = vst [vmem:[#allocation2 + $0x1c0] sm:$0xf] %v5667_v43  ;;  %v497_v5 = vmul.f32 %v416_v11, %v7105_v30  ;;  %v496_v10 = vmul.f32 %v411_v16, %v7108_v33 }
  0xce   : > { %v5670_v48 = vpack.c.bf16 %v497_v5, %v497_v5  ;;  %v5669_v53 = vpack.c.bf16 %v496_v10, %v496_v10  ;;  %1227 = vperm.xlu1 %6365, %v6901_v15   ;;  %1242 = vperm.xlu0 %6366, %v6922_v20   ;;  %v7145_v5 = vld [vmem:[%s7012_s24 + $0xd8] sm:$0xff]  ;;  %v7148_v10 = vld [vmem:[%s7012_s24 + $0xd0] sm:$0xff] }
  0xcf   : > { %v426_v13 = vpop.permute.xlu1 %425  ;;  %v421_v18 = vpop.permute.xlu0 %420 }
  0xd0   : > { %657 = vst [vmem:[#allocation2 + $0x214] sm:$0xf] %v5670_v48  ;;  %656 = vst [vmem:[#allocation2 + $0x1f8] sm:$0xf] %v5669_v53  ;;  %v499_v7 = vmul.f32 %v426_v13, %v7115_v44  ;;  %v498_v54 = vmul.f32 %v421_v18, %v7118_v45 }
  0xd2   : > { %v5672_v63 = vpack.c.bf16 %v499_v7, %v499_v7  ;;  %v5671_v0 = vpack.c.bf16 %v498_v54, %v498_v54  ;;  %1237 = vperm.xlu1 %6365, %v6909_v17   ;;  %1252 = vperm.xlu0 %6366, %v6930_v22   ;;  %v7155_v7 = vld [vmem:[%s7012_s24 + $0xe8] sm:$0xff]  ;;  %v7158_v54 = vld [vmem:[%s7012_s24 + $0xe0] sm:$0xff] }
  0xd3   : > { %v436_v15 = vpop.permute.xlu1 %435  ;;  %v431_v20 = vpop.permute.xlu0 %430 }
  0xd4   : > { %659 = vst [vmem:[#allocation2 + $0x24c] sm:$0xf] %v5672_v63  ;;  %658 = vst [vmem:[#allocation2 + $0x230] sm:$0xf] %v5671_v0  ;;  %v501_v9 = vmul.f32 %v436_v15, %v7125_v55  ;;  %v500_v14 = vmul.f32 %v431_v20, %v7128_v58 }
  0xd6   : > { %v5674_v38 = vpack.c.bf16 %v501_v9, %v501_v9  ;;  %v5673_v43 = vpack.c.bf16 %v500_v14, %v500_v14  ;;  %1247 = vperm.xlu1 %6365, %v6917_v19   ;;  %1262 = vperm.xlu0 %6366, %v6938_v24   ;;  %v7165_v9 = vld [vmem:[%s7012_s24 + $0xf8] sm:$0xff]  ;;  %v7168_v14 = vld [vmem:[%s7012_s24 + $0xf0] sm:$0xff] }
  0xd7   : > { %v446_v17 = vpop.permute.xlu1 %445  ;;  %v441_v22 = vpop.permute.xlu0 %440 }
  0xd8   : > { %661 = vst [vmem:[#allocation2 + $0x284] sm:$0xf] %v5674_v38  ;;  %660 = vst [vmem:[#allocation2 + $0x268] sm:$0xf] %v5673_v43  ;;  %v503_v11 = vmul.f32 %v446_v17, %v7135_v3  ;;  %v502_v16 = vmul.f32 %v441_v22, %v7138_v29  ;;  %v6478_v17 = vld [vmem:[#allocation4 + $0xf8] sm:$0xff]  }
  0xd9   : > { %5988 = vmatprep.subr.bf16.mxu1 %v6478_v17 }
  0xda   : > { %v5676_v48 = vpack.c.bf16 %v503_v11, %v503_v11  ;;  %v5675_v53 = vpack.c.bf16 %v502_v16, %v502_v16  ;;  %1257 = vperm.xlu1 %6365, %v6925_v21   ;;  %1272 = vperm.xlu0 %6366, %v6946_v28  }
  0xdb   : > { %v456_v19 = vpop.permute.xlu1 %455  ;;  %v451_v24 = vpop.permute.xlu0 %450 }
  0xdc   : > { %663 = vst [vmem:[#allocation2 + $0x2bc] sm:$0xf] %v5676_v48  ;;  %662 = vst [vmem:[#allocation2 + $0x2a0] sm:$0xf] %v5675_v53  ;;  %v505_v13 = vmul.f32 %v456_v19, %v7145_v5  ;;  %v504_v18 = vmul.f32 %v451_v24, %v7148_v10  ;;  %v8280_v24 = vmov 5  }
  0xde   : > { %v5678_v63 = vpack.c.bf16 %v505_v13, %v505_v13  ;;  %v5677_v0 = vpack.c.bf16 %v504_v18, %v504_v18  ;;  %1267 = vperm.xlu1 %6365, %v6933_v23   ;;  %1282 = vperm.xlu0 %6366, %v6954_v32  }
  0xdf   : > { %v466_v21 = vpop.permute.xlu1 %465  ;;  %v461_v28 = vpop.permute.xlu0 %460 }
  0xe0   : > { %665 = vst [vmem:[#allocation2 + $0x2f4] sm:$0xf] %v5678_v63  ;;  %664 = vst [vmem:[#allocation2 + $0x2d8] sm:$0xf] %v5677_v0  ;;  %v507_v15 = vmul.f32 %v466_v21, %v7155_v7  ;;  %v506_v20 = vmul.f32 %v461_v28, %v7158_v54 }
  0xe2   : > { %v5680_v38 = vpack.c.bf16 %v507_v15, %v507_v15  ;;  %v5679_v43 = vpack.c.bf16 %v506_v20, %v506_v20  ;;  %1277 = vperm.xlu1 %6365, %v6941_v27   ;;  %1292 = vperm.xlu0 %6366, %v6967_v36   ;;  %v6736_v20 = vmov 3  }
  0xe3   : > { %v476_v23 = vpop.permute.xlu1 %475  ;;  %v471_v32 = vpop.permute.xlu0 %470 }
  0xe4   : > { %667 = vst [vmem:[#allocation2 + $0x32c] sm:$0xf] %v5680_v38  ;;  %666 = vst [vmem:[#allocation2 + $0x310] sm:$0xf] %v5679_v43  ;;  %v509_v22 = vmul.f32 %v476_v23, %v7165_v9  ;;  %v508_v11 = vmul.f32 %v471_v32, %v7168_v14 }
  0xe6   : > { %v5682_v16 = vpack.c.bf16 %v509_v22, %v509_v22  ;;  %v5681_v48 = vpack.c.bf16 %v508_v11, %v508_v11  ;;  %1287 = vperm.xlu1 %6365, %v6949_v31   ;;  %1302 = vperm.xlu0 %6366, %v6975_v40  }
  0xe8   : > { %669 = vst [vmem:[#allocation2 + $0x364] sm:$0xf] %v5682_v16  ;;  %668 = vst [vmem:[#allocation2 + $0x348] sm:$0xf] %v5681_v48  ;;  %v742_v27 = vpop.permute.xlu1 %741  ;;  %v737_v36 = vpop.permute.xlu0 %736  ;;  %v6629_v16 = vld [vmem:[%s6844_s10 + $0x18] sm:$0xff] }
  0xe9   : > { %v895_v53 = vmul.f32 %v742_v27, %v7030_v57  ;;  %v894_v19 = vmul.f32 %v737_v36, %v7020_v51  ;;  %v7202_v27 = vld [vmem:[%s6844_s10 + $0x28] sm:$0xff] }
  0xea   : > { %1297 = vperm.xlu1 %6365, %v6962_v35   ;;  %6371 = vset.pattern.permute.xlu0 %v8280_v24 }
  0xeb   : > { %v5684_v13 = vpack.c.bf16 %v895_v53, %v895_v53  ;;  %v5683_v18 = vpack.c.bf16 %v894_v19, %v894_v19  ;;  %2410 = vperm.xlu0 %6371, %v6847_v1   ;;  %v6630_v53 = vld [vmem:[%s6844_s10 + $0x30] sm:$0xff] }
  0xec   : > { %v747_v31 = vpop.permute.xlu1 %746  ;;  %v752_v63 = vpop.permute.xlu0 %751  ;;  %v6435_v19 = vld [vmem:[#allocation2 + $0x38] ss:$28 sps:$4 sm:$0xff]  }
  0xed   : > { %1055 = vst [vmem:[#allocation2 + $0x20] sm:$0xf] %v5684_v13  ;;  %1054 = vst [vmem:[#allocation2 + $0x4] sm:$0xf] %v5683_v18  ;;  %v896_v40 = vmul.f32 %v747_v31, %v7017_v50  ;;  %v897_v0 = vmul.f32 %v752_v63, %v7027_v56  ;;  %v7206_v13 = vld [vmem:[%s6844_s10 + $0x40] sm:$0xff]  ;;  %v7212_v63 = vld [vmem:[%s6844_s10 + $0x38] sm:$0xff] }
  0xee   : > { %1307 = vperm.xlu1 %6365, %v6970_v39  }
  0xef   : > { %v5685_v51 = vpack.c.bf16 %v896_v40, %v896_v40  ;;  %v5686_v57 = vpack.c.bf16 %v897_v0, %v897_v0  ;;  %2430 = vperm.xlu0 %6371, %v6874_v8  }
  0xf0   : > { %v757_v35 = vpop.permute.xlu1 %756  ;;  %v762_v21 = vpop.permute.xlu0 %761 }
  0xf1   : > { %1056 = vst [vmem:[#allocation2 + $0x3c] sm:$0xf] %v5685_v51  ;;  %1057 = vst [vmem:[#allocation2 + $0x58] sm:$0xf] %v5686_v57  ;;  %v898_v28 = vmul.f32 %v757_v35, %v7038_v26  ;;  %v899_v15 = vmul.f32 %v762_v21, %v7035_v25  ;;  %v6430_v26 = vld [vmem:[#allocation2] ss:$28 sps:$4 sm:$0xff]  }
  0xf2   : > { %6367 = vset.pattern.permute.xlu1 %v6736_v20  ;;  %v7217_v35 = vld [vmem:[%s6844_s10 + $0x50] sm:$0xff]  ;;  %v7222_v21 = vld [vmem:[%s6844_s10 + $0x48] sm:$0xff] }
  0xf3   : > { %v5687_v50 = vpack.c.bf16 %v898_v28, %v898_v28  ;;  %v5688_v38 = vpack.c.bf16 %v899_v15, %v899_v15  ;;  %1573 = vperm.xlu1 %6367, %v6858_v4   ;;  %2450 = vperm.xlu0 %6371, %v6890_v12  }
  0xf4   : > { %v767_v39 = vpop.permute.xlu1 %766  ;;  %v772_v56 = vpop.permute.xlu0 %771  ;;  %v6432_v23 = vld [vmem:[#allocation2 + $0x4] ss:$28 sps:$4 sm:$0xff]  }
  0xf5   : > { %1058 = vst [vmem:[#allocation2 + $0x74] sm:$0xf] %v5687_v50  ;;  %1059 = vst [vmem:[#allocation2 + $0x90] sm:$0xf] %v5688_v38  ;;  %v900_v8 = vmul.f32 %v767_v39, %v7048_v42  ;;  %v901_v43 = vmul.f32 %v772_v56, %v7045_v41  ;;  %4350 = vmatprep.mubr.bf16.mxu0 %v6432_v23  ;;  %v6438_v50 = vld [vmem:[#allocation2 + $0x70] ss:$28 sps:$4 sm:$0xff]  }
  0xf6   : > { %4351 = vmatmul.mubr.bf16.vlgmr.msra.gmra.mxu0 %v6430_v26  ;;  %v7226_v38 = vld [vmem:[%s6844_s10 + $0x60] sm:$0xff] }
  0xf7   : > { %v5689_v25 = vpack.c.bf16 %v900_v8, %v900_v8  ;;  %v5690_v32 = vpack.c.bf16 %v901_v43, %v901_v43  ;;  %1578 = vperm.xlu1 %6367, %v6847_v1   ;;  %6380 = vset.pattern.permute.xlu0 %v6736_v20  ;;  %v7232_v43 = vld [vmem:[%s6844_s10 + $0x58] sm:$0xff] }
  0xf8   : > { %v777_v4 = vpop.permute.xlu1 %776  ;;  %1568 = vperm.xlu0 %6380, %v6850_v2   ;;  %v782_v12 = vpop.permute.xlu0 %781  ;;  %v6433_v17 = vld [vmem:[#allocation2 + $0x3c] ss:$28 sps:$4 sm:$0xff]  }
  0xf9   : > { %1060 = vst [vmem:[#allocation2 + $0xac] sm:$0xf] %v5689_v25  ;;  %1061 = vst [vmem:[#allocation2 + $0xc8] sm:$0xf] %v5690_v32  ;;  %v902_v41 = vmul.f32 %v777_v4, %v7058_v52  ;;  %v903_v42 = vmul.f32 %v782_v12, %v7055_v49  ;;  %4358 = vmatprep.mubr.bf16.mxu0 %v6433_v17  ;;  %v1516_v4 = vld [vmem:[%s6844_s10 + $0x70] sm:$0xff] }
  0xfb   : > { %v5691_v1 = vpack.c.bf16 %v902_v41, %v902_v41  ;;  %v5692_v22 = vpack.c.bf16 %v903_v42, %v903_v42  ;;  %1588 = vperm.xlu1 %6367, %v6866_v6   ;;  %v6441_v42 = vld [vmem:[#allocation2 + $0xa8] ss:$28 sps:$4 sm:$0xff]  }
  0xfc   : > { %v787_v11 = vpop.permute.xlu1 %786  ;;  %1583 = vperm.xlu0 %6380, %v6629_v16   ;;  %v792_v2 = vpop.permute.xlu0 %791  ;;  %v6436_v31 = vld [vmem:[#allocation2 + $0x74] ss:$28 sps:$4 sm:$0xff]  }
  0xfd   : > { %1062 = vst [vmem:[#allocation2 + $0xe4] sm:$0xf] %v5691_v1  ;;  %1063 = vst [vmem:[#allocation2 + $0x100] sm:$0xf] %v5692_v22  ;;  %v904_v48 = vmul.f32 %v787_v11, %v7068_v62  ;;  %v905_v52 = vmul.f32 %v792_v2, %v7065_v61  ;;  %v1518_v1 = vld [vmem:[%s6844_s10 + $0x80] sm:$0xff]  ;;  %v1517_v2 = vld [vmem:[%s6844_s10 + $0x78] sm:$0xff] }
  0xfe   : > { %4359 = vmatmul.mubr.bf16.gmra.mxu0 %v6435_v19 }
  0xff   : > { %v5693_v49 = vpack.c.bf16 %v904_v48, %v904_v48  ;;  %v5694_v36 = vpack.c.bf16 %v905_v52, %v905_v52  ;;  %1598 = vperm.xlu1 %6367, %v6630_v53   ;;  %4366 = vmatprep.mubr.bf16.mxu0 %v6436_v31  ;;  %v1520_v53 = vld [vmem:[%s6844_s10 + $0x90] sm:$0xff]  ;;  %v6444_v31 = vld [vmem:[#allocation2 + $0xe0] ss:$28 sps:$4 sm:$0xff]  }
 0x100   : > { %v797_v6 = vpop.permute.xlu1 %796  ;;  %1593 = vperm.xlu0 %6380, %v7202_v27   ;;  %v802_v18 = vpop.permute.xlu0 %801  ;;  %v6439_v8 = vld [vmem:[#allocation2 + $0xac] ss:$28 sps:$4 sm:$0xff]  }
 0x101   : > { %1064 = vst [vmem:[#allocation2 + $0x11c] sm:$0xf] %v5693_v49  ;;  %1065 = vst [vmem:[#allocation2 + $0x138] sm:$0xf] %v5694_v36  ;;  %v906_v61 = vmul.f32 %v797_v6, %v7078_v37  ;;  %v907_v62 = vmul.f32 %v802_v18, %v7075_v34  ;;  %v1519_v6 = vld [vmem:[%s6844_s10 + $0x88] sm:$0xff] }
 0x103   : > { %v5695_v40 = vpack.c.bf16 %v906_v61, %v906_v61  ;;  %v5696_v0 = vpack.c.bf16 %v907_v62, %v907_v62  ;;  %1608 = vperm.xlu1 %6367, %v7206_v13   ;;  %v1522_v61 = vld [vmem:[%s6844_s10 + $0xa0] sm:$0xff] }
 0x104   : > { %v807_v51 = vpop.permute.xlu1 %806  ;;  %1603 = vperm.xlu0 %6380, %v7212_v63   ;;  %v812_v57 = vpop.permute.xlu0 %811  ;;  %v6442_v16 = vld [vmem:[#allocation2 + $0xe4] ss:$28 sps:$4 sm:$0xff]  }
 0x105   : > { %1066 = vst [vmem:[#allocation2 + $0x154] sm:$0xf] %v5695_v40  ;;  %1067 = vst [vmem:[#allocation2 + $0x170] sm:$0xf] %v5696_v0  ;;  %v908_v37 = vmul.f32 %v807_v51, %v7088_v47  ;;  %v909_v34 = vmul.f32 %v812_v57, %v7085_v46 }
 0x106   : > { %4367 = vmatmul.mubr.bf16.gmra.mxu0 %v6438_v50 }
 0x107   : > { %v5697_v28 = vpack.c.bf16 %v908_v37, %v908_v37  ;;  %v5698_v15 = vpack.c.bf16 %v909_v34, %v909_v34  ;;  %1618 = vperm.xlu1 %6367, %v7217_v35   ;;  %4374 = vmatprep.mubr.bf16.mxu0 %v6439_v8  ;;  %v6447_v8 = vld [vmem:[#allocation2 + $0x118] ss:$28 sps:$4 sm:$0xff]  }
 0x108   : > { %v817_v39 = vpop.permute.xlu1 %816  ;;  %1613 = vperm.xlu0 %6380, %v7222_v21   ;;  %v822_v56 = vpop.permute.xlu0 %821  ;;  %v6445_v0 = vld [vmem:[#allocation2 + $0x11c] ss:$28 sps:$4 sm:$0xff]  }
 0x109   : > { %1068 = vst [vmem:[#allocation2 + $0x18c] sm:$0xf] %v5697_v28  ;;  %1069 = vst [vmem:[#allocation2 + $0x1a8] sm:$0xf] %v5698_v15  ;;  %v910_v46 = vmul.f32 %v817_v39, %v7098_v60  ;;  %v911_v47 = vmul.f32 %v822_v56, %v7095_v59  ;;  %v7240_v59 = vld [vmem:[%s6844_s10 + $0x68] sm:$0xff]  ;;  %v1524_v15 = vld [vmem:[%s6844_s10 + $0xb0] sm:$0xff] }
 0x10b   : > { %v5699_v26 = vpack.c.bf16 %v910_v46, %v910_v46  ;;  %v5700_v23 = vpack.c.bf16 %v911_v47, %v911_v47  ;;  %1628 = vperm.xlu1 %6367, %v7226_v38   ;;  %v1526_v46 = vld [vmem:[%s6844_s10 + $0xc0] sm:$0xff] }
 0x10c   : > { %v827_v25 = vpop.permute.xlu1 %826  ;;  %1623 = vperm.xlu0 %6380, %v7232_v43   ;;  %v832_v32 = vpop.permute.xlu0 %831 }
 0x10d   : > { %1070 = vst [vmem:[#allocation2 + $0x1c4] sm:$0xf] %v5699_v26  ;;  %1071 = vst [vmem:[#allocation2 + $0x1e0] sm:$0xf] %v5700_v23  ;;  %v912_v60 = vmul.f32 %v827_v25, %v7108_v33  ;;  %v913_v12 = vmul.f32 %v832_v32, %v7105_v30  ;;  %v6448_v23 = vld [vmem:[#allocation2 + $0x154] ss:$28 sps:$4 sm:$0xff]  }
 0x10e   : > { %4375 = vmatmul.mubr.bf16.gmra.mxu0 %v6441_v42  ;;  %v7269_v25 = vld [vmem:[%s6844_s10 + $0xb8] sm:$0xff] }
 0x10f   : > { %v5701_v17 = vpack.c.bf16 %v912_v60, %v912_v60  ;;  %v5702_v41 = vpack.c.bf16 %v913_v12, %v913_v12  ;;  %1638 = vperm.xlu1 %6367, %v1516_v4   ;;  %4382 = vmatprep.mubr.bf16.mxu0 %v6442_v16  ;;  %v1528_v60 = vld [vmem:[%s6844_s10 + $0xd0] sm:$0xff]  ;;  %v7282_v16 = vld [vmem:[%s7012_s24 + $0x8] sm:$0xff] }
 0x110   : > { %v837_v22 = vpop.permute.xlu1 %836  ;;  %1633 = vperm.xlu0 %6380, %v7240_v59   ;;  %v842_v11 = vpop.permute.xlu0 %841 }
 0x111   : > { %1072 = vst [vmem:[#allocation2 + $0x1fc] sm:$0xf] %v5701_v17  ;;  %1073 = vst [vmem:[#allocation2 + $0x218] sm:$0xf] %v5702_v41  ;;  %v914_v33 = vmul.f32 %v837_v22, %v7118_v45  ;;  %v915_v30 = vmul.f32 %v842_v11, %v7115_v44  ;;  %v6450_v41 = vld [vmem:[#allocation2 + $0x2a0] ss:$28 sps:$4 sm:$0xff]  }
 0x112   : > { %v6479_v22 = vld [vmem:[#allocation4 + $0xb8] sm:$0xff]   ;;  %v7279_v11 = vld [vmem:[%s7012_s24] sm:$0xff] }
 0x113   : > { %v5703_v48 = vpack.c.bf16 %v914_v33, %v914_v33  ;;  %v5704_v52 = vpack.c.bf16 %v915_v30, %v915_v30  ;;  %1648 = vperm.xlu1 %6367, %v1518_v1   ;;  %v7276_v1 = vld [vmem:[%s6844_s10 + $0xc8] sm:$0xff] }
 0x114   : > { %v847_v49 = vpop.permute.xlu1 %846  ;;  %1643 = vperm.xlu0 %6380, %v1517_v2   ;;  %v852_v36 = vpop.permute.xlu0 %851  ;;  %v6453_v2 = vld [vmem:[#allocation2 + $0x150] ss:$28 sps:$4 sm:$0xff]  }
 0x115   : > { %1074 = vst [vmem:[#allocation2 + $0x234] sm:$0xf] %v5703_v48  ;;  %1075 = vst [vmem:[#allocation2 + $0x250] sm:$0xf] %v5704_v52  ;;  %v916_v19 = vmul.f32 %v847_v49, %v7128_v58  ;;  %v917_v45 = vmul.f32 %v852_v36, %v7125_v55  ;;  %v7255_v58 = vld [vmem:[%s6844_s10 + $0x98] sm:$0xff]  ;;  %v1918_v52 = vld [vmem:[%s6844_s10] sm:$0xff] }
 0x116   : > { %4383 = vmatmul.mubr.bf16.gmra.mxu0 %v6444_v31  ;;  %v6454_v48 = vld [vmem:[#allocation2 + $0x18c] ss:$28 sps:$4 sm:$0xff]   ;;  %v6480_v49 = vld [vmem:[#allocation4 + $0xf0] sm:$0xff]   ;;  %v6512_v31 = vld [vmem:[#allocation4 + $0x138] sm:$0xff]  }
 0x117   : > { %v5705_v18 = vpack.c.bf16 %v916_v19, %v916_v19  ;;  %v5706_v44 = vpack.c.bf16 %v917_v45, %v917_v45  ;;  %1658 = vperm.xlu1 %6367, %v1520_v53   ;;  %4390 = vmatprep.mubr.bf16.mxu0 %v6445_v0  ;;  %v7287_v53 = vld [vmem:[%s6844_s10 + $0xd8] sm:$0xff]  ;;  %v6481_v19 = vld [vmem:[#allocation4 + $0xb0] sm:$0xff]  }
 0x118   : > { %v857_v62 = vpop.permute.xlu1 %856  ;;  %1653 = vperm.xlu0 %6380, %v1519_v6   ;;  %v862_v40 = vpop.permute.xlu0 %861  ;;  %v6511_v45 = vld [vmem:[#allocation4 + $0x178] sm:$0xff]   ;;  %v6513_v0 = vld [vmem:[#allocation4 + $0x170] sm:$0xff]  }
 0x119   : > { %1076 = vst [vmem:[#allocation2 + $0x26c] sm:$0xf] %v5705_v18  ;;  %1077 = vst [vmem:[#allocation2 + $0x288] sm:$0xf] %v5706_v44  ;;  %v918_v51 = vmul.f32 %v857_v62, %v7138_v29  ;;  %v919_v55 = vmul.f32 %v862_v40, %v7135_v3  ;;  %v7262_v3 = vld [vmem:[%s6844_s10 + $0xa8] sm:$0xff]  ;;  %v7293_v62 = vld [vmem:[%s7012_s24 + $0x10] sm:$0xff]  ;;  %6100 = vmatprep.subr.bf16.mxu0 %v6511_v45 }
 0x11a   : > { %v6482_v44 = vld [vmem:[#allocation4 + $0xe8] sm:$0xff]   ;;  %v7296_v40 = vld [vmem:[%s7012_s24 + $0x20] sm:$0xff]  ;;  %6101 = vmatpush3.bf16.msra.mxu0 %v6512_v31  ;;  %v7325_v45 = vld [vmem:[%s7012_s24 + $0x50] sm:$0xff] }
 0x11b   : > { %v5707_v57 = vpack.c.bf16 %v918_v51, %v918_v51  ;;  %v5708_v37 = vpack.c.bf16 %v919_v55, %v919_v55  ;;  %1668 = vperm.xlu1 %6367, %v1522_v61   ;;  %v8282_v61 = vmov 4   ;;  %6102 = vmatprep.subr.bf16.mxu0 %v6513_v0  ;;  %v6487_v31 = vld [vmem:[#allocation4 + $0x98] sm:$0xff]   ;;  %v6488_v0 = vld [vmem:[#allocation4 + $0xd0] sm:$0xff]  }
 0x11c   : > { %v867_v34 = vpop.permute.xlu1 %866  ;;  %1663 = vperm.xlu0 %6380, %v7255_v58   ;;  %v872_v28 = vpop.permute.xlu0 %871 }
 0x11d   : > { %1078 = vst [vmem:[#allocation2 + $0x2a4] sm:$0xf] %v5707_v57  ;;  %1079 = vst [vmem:[#allocation2 + $0x2c0] sm:$0xf] %v5708_v37  ;;  %v920_v29 = vmul.f32 %v867_v34, %v7148_v10  ;;  %v921_v50 = vmul.f32 %v872_v28, %v7145_v5  ;;  %v1530_v34 = vld [vmem:[%s6844_s10 + $0xe0] sm:$0xff] }
 0x11e   : > { %4391 = vmatmul.mubr.bf16.gmra.mxu0 %v6447_v8  ;;  %v6459_v8 = vld [vmem:[#allocation2 + $0x2d8] ss:$28 sps:$4 sm:$0xff]  }
 0x11f   : > { %v5709_v39 = vpack.c.bf16 %v920_v29, %v920_v29  ;;  %v5710_v56 = vpack.c.bf16 %v921_v50, %v921_v50  ;;  %1678 = vperm.xlu1 %6367, %v1524_v15   ;;  %4398 = vmatprep.mubr.bf16.mxu0 %v6448_v23  ;;  %v7303_v29 = vld [vmem:[%s7012_s24 + $0x18] sm:$0xff]  ;;  %v7306_v50 = vld [vmem:[%s7012_s24 + $0x30] sm:$0xff]  ;;  %v6460_v23 = vld [vmem:[#allocation2 + $0x1c4] ss:$28 sps:$4 sm:$0xff]  }
 0x120   : > { %v877_v47 = vpop.permute.xlu1 %876  ;;  %1673 = vperm.xlu0 %6380, %v7262_v3   ;;  %v882_v26 = vpop.permute.xlu0 %881 }
 0x121   : > { %1080 = vst [vmem:[#allocation2 + $0x2dc] sm:$0xf] %v5709_v39  ;;  %1081 = vst [vmem:[#allocation2 + $0x2f8] sm:$0xf] %v5710_v56  ;;  %v922_v10 = vmul.f32 %v877_v47, %v7158_v54  ;;  %v923_v5 = vmul.f32 %v882_v26, %v7155_v7  ;;  %v6483_v39 = vld [vmem:[#allocation4 + $0xa8] sm:$0xff]  }
 0x122   : > { %v6458_v56 = vld [vmem:[#allocation2 + $0x188] ss:$28 sps:$4 sm:$0xff]  }
 0x123   : > { %v5711_v32 = vpack.c.bf16 %v922_v10, %v922_v10  ;;  %v5712_v4 = vpack.c.bf16 %v923_v5, %v923_v5  ;;  %1688 = vperm.xlu1 %6367, %v1526_v46   ;;  %v6484_v46 = vld [vmem:[#allocation4 + $0xe0] sm:$0xff]  }
 0x124   : > { %v887_v12 = vpop.permute.xlu1 %886  ;;  %1683 = vperm.xlu0 %6380, %v7269_v25   ;;  %v892_v17 = vpop.permute.xlu0 %891  ;;  %v6452_v42 = vld [vmem:[#allocation2 + $0x2a4] ss:$28 sps:$4 sm:$0xff]  }
 0x125   : > { %1082 = vst [vmem:[#allocation2 + $0x314] sm:$0xf] %v5711_v32  ;;  %1083 = vst [vmem:[#allocation2 + $0x330] sm:$0xf] %v5712_v4  ;;  %v924_v7 = vmul.f32 %v887_v12, %v7168_v14  ;;  %v925_v54 = vmul.f32 %v892_v17, %v7165_v9  ;;  %4446 = vmatprep.mubr.bf16.mxu1 %v6452_v42  ;;  %v1532_v4 = vld [vmem:[%s6844_s10 + $0xf0] sm:$0xff]  ;;  %v7317_v42 = vld [vmem:[%s7012_s24 + $0x40] sm:$0xff] }
 0x126   : > { %4447 = vmatmul.mubr.bf16.vlgmr.msra.gmra.mxu1 %v6450_v41  ;;  %4399 = vmatmul.mubr.bf16.gmra.mxu0 %v6453_v2  ;;  %v2335_v41 = vld [vmem:[%s6844_s10 + $0x8] sm:$0xff]  ;;  %v6486_v2 = vld [vmem:[#allocation4 + $0xd8] sm:$0xff]  }
 0x127   : > { %v5713_v33 = vpack.c.bf16 %v924_v7, %v924_v7  ;;  %v5714_v30 = vpack.c.bf16 %v925_v54, %v925_v54  ;;  %1698 = vperm.xlu1 %6367, %v1528_v60   ;;  %5989 = vmatpush3.bf16.msra.mxu1 %v6479_v22  ;;  %v6514_v60 = vld [vmem:[#allocation4 + $0x130] sm:$0xff]   ;;  %v6516_v7 = vld [vmem:[#allocation4 + $0x168] sm:$0xff]   ;;  %v6485_v22 = vld [vmem:[#allocation4 + $0xa0] sm:$0xff]  }
 0x128   : > { %1693 = vperm.xlu0 %6380, %v7276_v1   ;;  %v6456_v9 = vld [vmem:[#allocation2 + $0x2dc] ss:$28 sps:$4 sm:$0xff]   ;;  %4406 = vmatprep.mubr.bf16.mxu0 %v6454_v48  ;;  %v7314_v54 = vld [vmem:[%s7012_s24 + $0x28] sm:$0xff] }
 0x129   : > { %1084 = vst [vmem:[#allocation2 + $0x34c] sm:$0xf] %v5713_v33  ;;  %1085 = vst [vmem:[#allocation2 + $0x368] sm:$0xf] %v5714_v30  ;;  %v1153_v14 = vpop.permute.xlu1 %1152  ;;  %v1158_v36 = vpop.permute.xlu0 %1157  ;;  %4454 = vmatprep.mubr.bf16.mxu1 %v6456_v9  ;;  %5990 = vmatprep.subr.bf16.mxu1 %v6480_v49 }
 0x12a   : > { %v1310_v6 = vmul.f32 %v1153_v14, %v7279_v11  ;;  %v1311_v18 = vmul.f32 %v1158_v36, %v7282_v16  ;;  %6103 = vmatpush3.bf16.msra.mxu0 %v6514_v60  ;;  %v7322_v14 = vld [vmem:[%s7012_s24 + $0x38] sm:$0xff] }
 0x12b   : > { %6368 = vset.pattern.permute.xlu1 %v8282_v61  ;;  %5991 = vmatpush3.bf16.msra.mxu1 %v6481_v19  ;;  %v6464_v36 = vld [vmem:[#allocation2 + $0x1c0] ss:$28 sps:$4 sm:$0xff]   ;;  %v6465_v19 = vld [vmem:[#allocation2 + $0x310] ss:$28 sps:$4 sm:$0xff]  }
 0x12c   : > { %v5715_v51 = vpack.c.bf16 %v1310_v6, %v1310_v6  ;;  %v5716_v55 = vpack.c.bf16 %v1311_v18, %v1311_v18  ;;  %1984 = vperm.xlu1 %6368, %v1918_v52   ;;  %1703 = vperm.xlu0 %6380, %v7287_v53   ;;  %v6462_v5 = vld [vmem:[#allocation2 + $0x314] ss:$28 sps:$4 sm:$0xff]   ;;  %v7345_v60 = vld [vmem:[%s7012_s24 + $0x58] sm:$0xff] }
 0x12d   : > { %v1163_v57 = vpop.permute.xlu1 %1162  ;;  %v1173_v37 = vpop.permute.xlu0 %1172  ;;  %5992 = vmatprep.subr.bf16.mxu1 %v6482_v44  ;;  %6104 = vmatprep.subr.bf16.mxu0 %v6516_v7  ;;  %v1921_v44 = vld [vmem:[%s6844_s10 + $0x18] sm:$0xff]  ;;  %v6491_v7 = vld [vmem:[#allocation4 + $0x88] sm:$0xff]  }
 0x12e   : > { %1470 = vst [vmem:[#allocation2 + $0x8] sm:$0xf] %v5715_v51  ;;  %1471 = vst [vmem:[#allocation2 + $0x24] sm:$0xf] %v5716_v55  ;;  %v1312_v28 = vmul.f32 %v1163_v57, %v7293_v62  ;;  %v1314_v15 = vmul.f32 %v1173_v37, %v7296_v40  ;;  %4407 = vmatmul.mubr.bf16.gmra.mxu0 %v6458_v56  ;;  %4455 = vmatmul.mubr.bf16.gmra.mxu1 %v6459_v8  ;;  %v6466_v55 = vld [vmem:[#allocation2 + $0x1fc] ss:$28 sps:$4 sm:$0xff]  }
 0x12f   : > { %4414 = vmatprep.mubr.bf16.mxu0 %v6460_v23  ;;  %4462 = vmatprep.mubr.bf16.mxu1 %v6462_v5  ;;  %v7333_v56 = vld [vmem:[%s7012_s24 + $0x48] sm:$0xff]  ;;  %v7336_v8 = vld [vmem:[%s6844_s10 + $0x10] sm:$0xff] }
 0x130   : > { %v5717_v47 = vpack.c.bf16 %v1312_v28, %v1312_v28  ;;  %v5719_v26 = vpack.c.bf16 %v1314_v15, %v1314_v15  ;;  %6369 = vset.pattern.permute.xlu1 %v8280_v24  ;;  %1708 = vperm.xlu0 %6380, %v1530_v34   ;;  %v6468_v57 = vld [vmem:[#allocation2 + $0x34c] ss:$28 sps:$4 sm:$0xff]   ;;  %v6489_v23 = vld [vmem:[#allocation4 + $0x90] sm:$0xff]  }
 0x131   : > { %v1168_v10 = vpop.permute.xlu1 %1167  ;;  %v1183_v32 = vpop.permute.xlu0 %1182  ;;  %2400 = vperm.xlu1 %6369, %v1918_v52   ;;  %5993 = vmatpush3.bf16.msra.mxu1 %v6483_v39  ;;  %v6519_v34 = vld [vmem:[#allocation4 + $0x128] sm:$0xff]   ;;  %v6520_v39 = vld [vmem:[#allocation4 + $0x160] sm:$0xff]  }
 0x132   : > { %1472 = vst [vmem:[#allocation2 + $0x40] sm:$0xf] %v5717_v47  ;;  %1474 = vst [vmem:[#allocation2 + $0x78] sm:$0xf] %v5719_v26  ;;  %v1313_v12 = vmul.f32 %v1168_v10, %v7303_v29  ;;  %v1316_v17 = vmul.f32 %v1183_v32, %v7306_v50  ;;  %5994 = vmatprep.subr.bf16.mxu1 %v6484_v46  ;;  %v7339_v46 = vld [vmem:[%s7012_s24 + $0x60] sm:$0xff]  ;;  %6105 = vmatpush3.bf16.msra.mxu0 %v6519_v34 }
 0x133   : > { %6106 = vmatprep.subr.bf16.mxu0 %v6520_v39 }
 0x134   : > { %v5718_v33 = vpack.c.bf16 %v1313_v12, %v1313_v12  ;;  %v5721_v30 = vpack.c.bf16 %v1316_v17, %v1316_v17  ;;  %1718 = vperm.xlu0 %6380, %v1532_v4   ;;  %v7348_v12 = vld [vmem:[%s7012_s24 + $0x70] sm:$0xff] }
 0x135   : > { %v1178_v48 = vpop.permute.xlu1 %1177  ;;  %v1193_v52 = vpop.permute.xlu0 %1192  ;;  %2405 = vperm.xlu1 %6369, %v2335_v41   ;;  %5995 = vmatpush3.bf16.msra.mxu1 %v6485_v22  ;;  %v6470_v17 = vld [vmem:[#allocation2 + $0x1f8] ss:$28 sps:$4 sm:$0xff]  }
 0x136   : > { %1473 = vst [vmem:[#allocation2 + $0x5c] sm:$0xf] %v5718_v33  ;;  %1476 = vst [vmem:[#allocation2 + $0xb0] sm:$0xf] %v5721_v30  ;;  %v1315_v49 = vmul.f32 %v1178_v48, %v7314_v54  ;;  %v1318_v9 = vmul.f32 %v1193_v52, %v7317_v42  ;;  %5996 = vmatprep.subr.bf16.mxu1 %v6486_v2  ;;  %4415 = vmatmul.mubr.bf16.gmra.mxu0 %v6464_v36  ;;  %v6471_v30 = vld [vmem:[#allocation2 + $0x348] ss:$28 sps:$4 sm:$0xff]  }
 0x137   : > { %4463 = vmatmul.mubr.bf16.gmra.mxu1 %v6465_v19  ;;  %4422 = vmatprep.mubr.bf16.mxu0 %v6466_v55  ;;  %v6472_v2 = vld [vmem:[#allocation2 + $0x234] ss:$28 sps:$4 sm:$0xff]   ;;  %v6521_v48 = vld [vmem:[#allocation4 + $0x120] sm:$0xff]  }
 0x138   : > { %v5720_v6 = vpack.c.bf16 %v1315_v49, %v1315_v49  ;;  %v5723_v18 = vpack.c.bf16 %v1318_v9, %v1318_v9  ;;  %6387 = vset.pattern.permute.xlu0 %v8282_v61  ;;  %4470 = vmatprep.mubr.bf16.mxu1 %v6468_v57  ;;  %v6492_v9 = vld [vmem:[#allocation4 + $0xc0] sm:$0xff]   ;;  %v1924_v55 = vld [vmem:[%s6844_s10 + $0x30] sm:$0xff] }
 0x139   : > { %v1188_v51 = vpop.permute.xlu1 %1187  ;;  %v1203_v37 = vpop.permute.xlu0 %1202  ;;  %6370 = vset.pattern.permute.xlu1 %v8282_v61  ;;  %1989 = vperm.xlu0 %6387, %v2335_v41   ;;  %v6490_v41 = vld [vmem:[#allocation4 + $0xc8] sm:$0xff]   ;;  %v6493_v57 = vld [vmem:[#allocation4 + $0x80] sm:$0xff]  }
 0x13a   : > { %1475 = vst [vmem:[#allocation2 + $0x94] sm:$0xf] %v5720_v6  ;;  %1478 = vst [vmem:[#allocation2 + $0xe8] sm:$0xf] %v5723_v18  ;;  %v1317_v28 = vmul.f32 %v1188_v51, %v7322_v14  ;;  %v1320_v15 = vmul.f32 %v1203_v37, %v7325_v45  ;;  %1999 = vperm.xlu1 %6370, %v1921_v44   ;;  %5997 = vmatpush3.bf16.msra.mxu1 %v6487_v31  ;;  %v6525_v6 = vld [vmem:[#allocation4 + $0x158] sm:$0xff]   ;;  %v1922_v18 = vld [vmem:[%s6844_s10 + $0x20] sm:$0xff] }
 0x13b   : > { %5998 = vmatprep.subr.bf16.mxu1 %v6488_v0  ;;  %v7355_v31 = vld [vmem:[%s7012_s24 + $0x68] sm:$0xff]  ;;  %v7358_v0 = vld [vmem:[%s7012_s24 + $0x80] sm:$0xff]  ;;  %6107 = vmatpush3.bf16.msra.mxu0 %v6521_v48  ;;  %v6526_v37 = vld [vmem:[#allocation4 + $0x118] sm:$0xff]  }
 0x13c   : > { %v5722_v47 = vpack.c.bf16 %v1317_v28, %v1317_v28  ;;  %v5725_v26 = vpack.c.bf16 %v1320_v15, %v1320_v15  ;;  %v6527_v15 = vld [vmem:[#allocation4 + $0x150] sm:$0xff]   ;;  %6108 = vmatprep.subr.bf16.mxu0 %v6525_v6  ;;  %v7378_v48 = vld [vmem:[%s7012_s24 + $0xa0] sm:$0xff] }
 0x13d   : > { %v1198_v10 = vpop.permute.xlu1 %1197  ;;  %v1213_v5 = vpop.permute.xlu0 %1212  ;;  %1994 = vperm.xlu0 %6387, %v7336_v8   ;;  %v6534_v6 = vld [vmem:[#allocation4 + $0x140] sm:$0xff]  }
 0x13e   : > { %1477 = vst [vmem:[#allocation2 + $0xcc] sm:$0xf] %v5722_v47  ;;  %1480 = vst [vmem:[#allocation2 + $0x120] sm:$0xf] %v5725_v26  ;;  %v1319_v32 = vmul.f32 %v1198_v10, %v7333_v56  ;;  %v1322_v4 = vmul.f32 %v1213_v5, %v7339_v46  ;;  %6372 = vset.pattern.permute.xlu1 %v8280_v24  ;;  %5999 = vmatpush3.bf16.msra.mxu1 %v6489_v23  ;;  %v6474_v26 = vld [vmem:[#allocation2 + $0x230] ss:$28 sps:$4 sm:$0xff]  }
 0x13f   : > { %2415 = vperm.xlu1 %6372, %v1921_v44   ;;  %4423 = vmatmul.mubr.bf16.gmra.mxu0 %v6470_v17  ;;  %v7366_v23 = vld [vmem:[%s7012_s24 + $0x78] sm:$0xff]  ;;  %v7369_v10 = vld [vmem:[%s7012_s24 + $0x90] sm:$0xff] }
 0x140   : > { %v5724_v22 = vpack.c.bf16 %v1319_v32, %v1319_v32  ;;  %v5727_v33 = vpack.c.bf16 %v1322_v4, %v1322_v4  ;;  %4471 = vmatmul.mubr.bf16.gmra.mxu1 %v6471_v30  ;;  %4430 = vmatprep.mubr.bf16.mxu0 %v6472_v2  ;;  %v6475_v4 = vld [vmem:[#allocation2 + $0x26c] ss:$28 sps:$4 sm:$0xff]   ;;  %v6528_v17 = vld [vmem:[#allocation4 + $0x110] sm:$0xff]  }
 0x141   : > { %v1208_v52 = vpop.permute.xlu1 %1207  ;;  %v1223_v49 = vpop.permute.xlu0 %1222  ;;  %2009 = vperm.xlu0 %6387, %v7202_v27   ;;  %6000 = vmatprep.subr.bf16.mxu1 %v6490_v41  ;;  %v7375_v2 = vld [vmem:[%s7012_s24 + $0x88] sm:$0xff] }
 0x142   : > { %1479 = vst [vmem:[#allocation2 + $0x104] sm:$0xf] %v5724_v22  ;;  %1482 = vst [vmem:[#allocation2 + $0x158] sm:$0xf] %v5727_v33  ;;  %v1321_v36 = vmul.f32 %v1208_v52, %v7345_v60  ;;  %v1324_v19 = vmul.f32 %v1223_v49, %v7348_v12  ;;  %6001 = vmatpush3.bf16.msra.mxu1 %v6491_v7  ;;  %6109 = vmatpush3.bf16.msra.mxu0 %v6526_v37  ;;  %v6532_v22 = vld [vmem:[#allocation4 + $0x148] sm:$0xff]  }
 0x143   : > { %6373 = vset.pattern.permute.xlu1 %v8282_v61  ;;  %6002 = vmatprep.subr.bf16.mxu1 %v6492_v9  ;;  %v6533_v9 = vld [vmem:[#allocation4 + $0x108] sm:$0xff]  }
 0x144   : > { %v5726_v44 = vpack.c.bf16 %v1321_v36, %v1321_v36  ;;  %v5729_v51 = vpack.c.bf16 %v1324_v19, %v1324_v19  ;;  %2004 = vperm.xlu1 %6373, %v1922_v18   ;;  %6110 = vmatprep.subr.bf16.mxu0 %v6527_v15 }
 0x145   : > { %v1218_v34 = vpop.permute.xlu1 %1217  ;;  %v1233_v28 = vpop.permute.xlu0 %1232  ;;  %2014 = vperm.xlu0 %6387, %v1924_v55   ;;  %v7385_v55 = vld [vmem:[%s7012_s24 + $0x98] sm:$0xff] }
 0x146   : > { %1481 = vst [vmem:[#allocation2 + $0x13c] sm:$0xf] %v5726_v44  ;;  %1484 = vst [vmem:[#allocation2 + $0x190] sm:$0xf] %v5729_v51  ;;  %v1323_v39 = vmul.f32 %v1218_v34, %v7355_v31  ;;  %v1326_v47 = vmul.f32 %v1233_v28, %v7358_v0  ;;  %6003 = vmatpush3.bf16.msra.mxu1 %v6493_v57  ;;  %6111 = vmatpush3.bf16.msra.mxu0 %v6528_v17  ;;  %v6477_v51 = vld [vmem:[#allocation2 + $0x268] ss:$28 sps:$4 sm:$0xff]  }
 0x147   : > { %4431 = vmatmul.mubr.bf16.gmra.mxu0 %v6474_v26  ;;  %6112 = vmatprep.subr.bf16.mxu0 %v6532_v22  ;;  %v7388_v57 = vld [vmem:[%s7012_s24 + $0xb0] sm:$0xff]  ;;  %v6535_v28 = vld [vmem:[#allocation4 + $0x100] sm:$0xff]  }
 0x148   : > { %v5728_v5 = vpack.c.bf16 %v1323_v39, %v1323_v39  ;;  %v5731_v32 = vpack.c.bf16 %v1326_v47, %v1326_v47  ;;  %6374 = vset.pattern.permute.xlu1 %v8280_v24  ;;  %4438 = vmatprep.mubr.bf16.mxu0 %v6475_v4  ;;  %v7398_v26 = vld [vmem:[%s7012_s24 + $0xc0] sm:$0xff]  ;;  %v7403_v4 = vld [vmem:[%s6844_s10 + $0x78] sm:$0xff] }
 0x149   : > { %v1228_v41 = vpop.permute.xlu1 %1227  ;;  %v1243_v7 = vpop.permute.xlu0 %1242  ;;  %2420 = vperm.xlu1 %6374, %v1922_v18   ;;  %2029 = vperm.xlu0 %6387, %v7222_v21  }
 0x14a   : > { %1483 = vst [vmem:[#allocation2 + $0x174] sm:$0xf] %v5728_v5  ;;  %1486 = vst [vmem:[#allocation2 + $0x1c8] sm:$0xf] %v5731_v32  ;;  %v1325_v33 = vmul.f32 %v1228_v41, %v7366_v23  ;;  %v1328_v30 = vmul.f32 %v1243_v7, %v7369_v10  ;;  %6113 = vmatpush3.bf16.msra.mxu0 %v6533_v9  ;;  %v7416_v9 = vld [vmem:[%s6844_s10 + $0x88] sm:$0xff] }
 0x14b   : > { %6114 = vmatprep.subr.bf16.mxu0 %v6534_v6 }
 0x14c   : > { %v5730_v52 = vpack.c.bf16 %v1325_v33, %v1325_v33  ;;  %v5733_v49 = vpack.c.bf16 %v1328_v30, %v1328_v30  ;;  %v7408_v33 = vld [vmem:[%s7012_s24 + $0xb8] sm:$0xff]  ;;  %v7411_v30 = vld [vmem:[%s7012_s24 + $0xd0] sm:$0xff] }
 0x14d   : > { %v1238_v36 = vpop.permute.xlu1 %1237  ;;  %v1253_v19 = vpop.permute.xlu0 %1252  ;;  %2425 = vperm.xlu1 %6374, %v7202_v27   ;;  %2034 = vperm.xlu0 %6387, %v7217_v35   ;;  %v7395_v35 = vld [vmem:[%s7012_s24 + $0xa8] sm:$0xff] }
 0x14e   : > { %1485 = vst [vmem:[#allocation2 + $0x1ac] sm:$0xf] %v5730_v52  ;;  %1488 = vst [vmem:[#allocation2 + $0x200] sm:$0xf] %v5733_v49  ;;  %v1327_v18 = vmul.f32 %v1238_v36, %v7375_v2  ;;  %v1330_v44 = vmul.f32 %v1253_v19, %v7378_v48  ;;  %6115 = vmatpush3.bf16.msra.mxu0 %v6535_v28 }
 0x14f   : > { %4439 = vmatmul.mubr.bf16.gmra.mxu0 %v6477_v51  ;;  %v7425_v51 = vld [vmem:[%s7012_s24 + $0xe0] sm:$0xff] }
 0x150   : > { %v5732_v37 = vpack.c.bf16 %v1327_v18, %v1327_v18  ;;  %v5735_v34 = vpack.c.bf16 %v1330_v44, %v1330_v44  ;;  %v7422_v44 = vld [vmem:[%s7012_s24 + $0xc8] sm:$0xff] }
 0x151   : > { %v1248_v15 = vpop.permute.xlu1 %1247  ;;  %v1263_v39 = vpop.permute.xlu0 %1262  ;;  %6375 = vset.pattern.permute.xlu1 %v8282_v61  ;;  %2049 = vperm.xlu0 %6387, %v7240_v59  }
 0x152   : > { %1487 = vst [vmem:[#allocation2 + $0x1e4] sm:$0xf] %v5732_v37  ;;  %1490 = vst [vmem:[#allocation2 + $0x238] sm:$0xf] %v5735_v34  ;;  %v1329_v27 = vmul.f32 %v1248_v15, %v7385_v55  ;;  %v1332_v47 = vmul.f32 %v1263_v39, %v7388_v57  ;;  %2019 = vperm.xlu1 %6375, %v7212_v63  }
 0x154   : > { %v5734_v5 = vpack.c.bf16 %v1329_v27, %v1329_v27  ;;  %v5737_v32 = vpack.c.bf16 %v1332_v47, %v1332_v47  ;;  %v7433_v27 = vld [vmem:[%s7012_s24 + $0xd8] sm:$0xff]  ;;  %v7436_v47 = vld [vmem:[%s7012_s24 + $0xf0] sm:$0xff] }
 0x155   : > { %v1258_v17 = vpop.permute.xlu1 %1257  ;;  %v1273_v41 = vpop.permute.xlu0 %1272  ;;  %2059 = vperm.xlu0 %6387, %v7403_v4  }
 0x156   : > { %1489 = vst [vmem:[#allocation2 + $0x21c] sm:$0xf] %v5734_v5  ;;  %1492 = vst [vmem:[#allocation2 + $0x270] sm:$0xf] %v5737_v32  ;;  %v1331_v7 = vmul.f32 %v1258_v17, %v7395_v35  ;;  %v1334_v22 = vmul.f32 %v1273_v41, %v7398_v26  ;;  %6376 = vset.pattern.permute.xlu1 %v8280_v24 }
 0x157   : > { %2435 = vperm.xlu1 %6376, %v7212_v63  }
 0x158   : > { %v5736_v52 = vpack.c.bf16 %v1331_v7, %v1331_v7  ;;  %v5739_v49 = vpack.c.bf16 %v1334_v22, %v1334_v22 }
 0x159   : > { %v1268_v36 = vpop.permute.xlu1 %1267  ;;  %v1283_v19 = vpop.permute.xlu0 %1282  ;;  %2069 = vperm.xlu0 %6387, %v7416_v9  }
 0x15a   : > { %1491 = vst [vmem:[#allocation2 + $0x254] sm:$0xf] %v5736_v52  ;;  %1494 = vst [vmem:[#allocation2 + $0x2a8] sm:$0xf] %v5739_v49  ;;  %v1333_v6 = vmul.f32 %v1268_v36, %v7408_v33  ;;  %v1336_v18 = vmul.f32 %v1283_v19, %v7411_v30  ;;  %v1147_v52 = vld [vmem:[%s7012_s24 + $0xe8] sm:$0xff] }
 0x15b   : > { %6377 = vset.pattern.permute.xlu1 %v8282_v61 }
 0x15c   : > { %v5738_v37 = vpack.c.bf16 %v1333_v6, %v1333_v6  ;;  %v5741_v34 = vpack.c.bf16 %v1336_v18, %v1336_v18  ;;  %2024 = vperm.xlu1 %6377, %v7206_v13  }
 0x15d   : > { %v1278_v63 = vpop.permute.xlu1 %1277  ;;  %v1293_v28 = vpop.permute.xlu0 %1292  ;;  %2079 = vperm.xlu0 %6387, %v7255_v58  }
 0x15e   : > { %1493 = vst [vmem:[#allocation2 + $0x28c] sm:$0xf] %v5738_v37  ;;  %1496 = vst [vmem:[#allocation2 + $0x2e0] sm:$0xf] %v5741_v34  ;;  %v1335_v15 = vmul.f32 %v1278_v63, %v7422_v44  ;;  %v1338_v39 = vmul.f32 %v1293_v28, %v7425_v51  ;;  %v1149_v37 = vld [vmem:[%s7012_s24 + $0xf8] sm:$0xff] }
 0x160   : > { %v5740_v5 = vpack.c.bf16 %v1335_v15, %v1335_v15  ;;  %v5743_v32 = vpack.c.bf16 %v1338_v39, %v1338_v39  ;;  %6378 = vset.pattern.permute.xlu1 %v8280_v24 }
 0x161   : > { %v1288_v17 = vpop.permute.xlu1 %1287  ;;  %v1303_v41 = vpop.permute.xlu0 %1302  ;;  %2440 = vperm.xlu1 %6378, %v7206_v13   ;;  %2089 = vperm.xlu0 %6387, %v7262_v3  }
 0x162   : > { %1495 = vst [vmem:[#allocation2 + $0x2c4] sm:$0xf] %v5740_v5  ;;  %1498 = vst [vmem:[#allocation2 + $0x318] sm:$0xf] %v5743_v32  ;;  %v1337_v7 = vmul.f32 %v1288_v17, %v7433_v27  ;;  %v1340_v22 = vmul.f32 %v1303_v41, %v7436_v47 }
 0x164   : > { %v5742_v49 = vpack.c.bf16 %v1337_v7, %v1337_v7  ;;  %v5745_v58 = vpack.c.bf16 %v1340_v22, %v1340_v22  ;;  %v1531_v22 = vld [vmem:[%s6844_s10 + $0xe8] sm:$0xff] }
 0x165   : > { %v1298_v36 = vpop.permute.xlu1 %1297  ;;  %2445 = vperm.xlu1 %6378, %v7222_v21   ;;  %2099 = vperm.xlu0 %6387, %v7269_v25  }
 0x166   : > { %1497 = vst [vmem:[#allocation2 + $0x2fc] sm:$0xf] %v5742_v49  ;;  %1500 = vst [vmem:[#allocation2 + $0x350] sm:$0xf] %v5745_v58  ;;  %v1339_v19 = vmul.f32 %v1298_v36, %v1147_v52  ;;  %v2411_v6 = vpop.permute.xlu0 %2410 }
 0x167   : > { %v2560_v18 = vmul.f32 %v2411_v6, %v7293_v62 }
 0x168   : > { %v5744_v34 = vpack.c.bf16 %v1339_v19, %v1339_v19 }
 0x169   : > { %v5813_v63 = vpack.c.bf16 %v2560_v18, %v2560_v18  ;;  %v1308_v13 = vpop.permute.xlu1 %1307  ;;  %6379 = vset.pattern.permute.xlu1 %v8282_v61  ;;  %2109 = vperm.xlu0 %6387, %v7276_v1   ;;  %v2750_v18 = vld [vmem:[%s6844_s10] sm:$0xff] }
 0x16a   : > { %1499 = vst [vmem:[#allocation2 + $0x334] sm:$0xf] %v5744_v34  ;;  %v1341_v28 = vmul.f32 %v1308_v13, %v1149_v37  ;;  %v2431_v3 = vpop.permute.xlu0 %2430  ;;  %2039 = vperm.xlu1 %6379, %v7232_v43  }
 0x16b   : > { %2720 = vst [vmem:[#allocation2 + $0x4c] sm:$0xf] %v5813_v63  ;;  %v2564_v15 = vmul.f32 %v2431_v3, %v7306_v50  ;;  %v2753_v3 = vld [vmem:[%s6844_s10 + $0x18] sm:$0xff] }
 0x16c   : > { %v5746_v21 = vpack.c.bf16 %v1341_v28, %v1341_v28 }
 0x16d   : > { %v5817_v39 = vpack.c.bf16 %v2564_v15, %v2564_v15  ;;  %2119 = vperm.xlu0 %6387, %v7287_v53  }
 0x16e   : > { %1501 = vst [vmem:[#allocation2 + $0x36c] sm:$0xf] %v5746_v21  ;;  %v1574_v25 = vpop.permute.xlu1 %1573  ;;  %v2451_v5 = vpop.permute.xlu0 %2450  ;;  %6381 = vset.pattern.permute.xlu1 %v8280_v24 }
 0x16f   : > { %2724 = vst [vmem:[#allocation2 + $0xbc] sm:$0xf] %v5817_v39  ;;  %v1727_v32 = vmul.f32 %v1574_v25, %v7282_v16  ;;  %v2568_v17 = vmul.f32 %v2451_v5, %v7325_v45  ;;  %2455 = vperm.xlu1 %6381, %v7232_v43   ;;  %v7464_v43 = vld [vmem:[%s6844_s10 + $0xf8] sm:$0xff] }
 0x171   : > { %v5748_v41 = vpack.c.bf16 %v1727_v32, %v1727_v32  ;;  %v5821_v1 = vpack.c.bf16 %v2568_v17, %v2568_v17  ;;  %2129 = vperm.xlu0 %6387, %v1531_v22  }
 0x172   : > { %v1579_v7 = vpop.permute.xlu1 %1578 }
 0x173   : > { %1887 = vst [vmem:[#allocation2 + $0x28] sm:$0xf] %v5748_v41  ;;  %2728 = vst [vmem:[#allocation2 + $0x12c] sm:$0xf] %v5821_v1  ;;  %v1728_v52 = vmul.f32 %v1579_v7, %v7293_v62  ;;  %v1569_v49 = vpop.permute.xlu0 %1568  ;;  %6382 = vset.pattern.permute.xlu1 %v8282_v61 }
 0x174   : > { %v1726_v16 = vmul.f32 %v1569_v49, %v7279_v11  ;;  %2044 = vperm.xlu1 %6382, %v7226_v38  }
 0x175   : > { %v5749_v58 = vpack.c.bf16 %v1728_v52, %v1728_v52  ;;  %2139 = vperm.xlu0 %6387, %v7464_v43   ;;  %v2757_v52 = vld [vmem:[%s6844_s10 + $0x38] sm:$0xff] }
 0x176   : > { %v5747_v53 = vpack.c.bf16 %v1726_v16, %v1726_v16  ;;  %v1589_v36 = vpop.permute.xlu1 %1588 }
 0x177   : > { %1888 = vst [vmem:[#allocation2 + $0x44] sm:$0xf] %v5749_v58  ;;  %v1730_v19 = vmul.f32 %v1589_v36, %v7296_v40  ;;  %v1584_v6 = vpop.permute.xlu0 %1583  ;;  %v8284_v40 = vmov 6   ;;  %v7485_v58 = vld [vmem:[%s6844_s10 + $0x70] sm:$0xff] }
 0x178   : > { %1886 = vst [vmem:[#allocation2 + $0xc] sm:$0xf] %v5747_v53  ;;  %v1729_v62 = vmul.f32 %v1584_v6, %v7303_v29  ;;  %6383 = vset.pattern.permute.xlu1 %v8280_v24  ;;  %v2758_v6 = vld [vmem:[%s6844_s10 + $0x40] sm:$0xff] }
 0x179   : > { %v5751_v11 = vpack.c.bf16 %v1730_v19, %v1730_v19  ;;  %2460 = vperm.xlu1 %6383, %v7226_v38   ;;  %6411 = vset.pattern.permute.xlu0 %v8284_v40 }
 0x17a   : > { %v5750_v37 = vpack.c.bf16 %v1729_v62, %v1729_v62  ;;  %v1599_v34 = vpop.permute.xlu1 %1598  ;;  %2816 = vperm.xlu0 %6411, %v2750_v18  }
 0x17b   : > { %1890 = vst [vmem:[#allocation2 + $0x7c] sm:$0xf] %v5751_v11  ;;  %v1732_v63 = vmul.f32 %v1599_v34, %v7306_v50  ;;  %v1594_v13 = vpop.permute.xlu0 %1593  ;;  %v6494_v50 = vld [vmem:[#allocation2 + $0x8] ss:$28 sps:$4 sm:$0xff]   ;;  %v2761_v34 = vld [vmem:[%s6844_s10 + $0x58] sm:$0xff] }
 0x17c   : > { %1889 = vst [vmem:[#allocation2 + $0x60] sm:$0xf] %v5750_v37  ;;  %v1731_v28 = vmul.f32 %v1594_v13, %v7314_v54  ;;  %v2754_v54 = vld [vmem:[%s6844_s10 + $0x20] sm:$0xff] }
 0x17d   : > { %v5753_v29 = vpack.c.bf16 %v1732_v63, %v1732_v63  ;;  %2465 = vperm.xlu1 %6383, %v7240_v59  }
 0x17e   : > { %v5752_v15 = vpack.c.bf16 %v1731_v28, %v1731_v28  ;;  %v1609_v21 = vpop.permute.xlu1 %1608  ;;  %2831 = vperm.xlu0 %6411, %v2753_v3   ;;  %v6502_v3 = vld [vmem:[#allocation2 + $0x78] ss:$28 sps:$4 sm:$0xff]  }
 0x17f   : > { %1892 = vst [vmem:[#allocation2 + $0xb4] sm:$0xf] %v5753_v29  ;;  %v1734_v38 = vmul.f32 %v1609_v21, %v7317_v42  ;;  %v1604_v39 = vpop.permute.xlu0 %1603  ;;  %v6496_v25 = vld [vmem:[#allocation2 + $0xc] ss:$28 sps:$4 sm:$0xff]   ;;  %v2762_v21 = vld [vmem:[%s6844_s10 + $0x60] sm:$0xff] }
 0x180   : > { %1891 = vst [vmem:[#allocation2 + $0x98] sm:$0xf] %v5752_v15  ;;  %v1733_v5 = vmul.f32 %v1604_v39, %v7322_v14  ;;  %4511 = vmatprep.mubr.bf16.mxu1 %v6496_v25 }
 0x181   : > { %v5755_v32 = vpack.c.bf16 %v1734_v38, %v1734_v38  ;;  %4512 = vmatmul.mubr.bf16.vlgmr.msra.gmra.mxu1 %v6494_v50  ;;  %6384 = vset.pattern.permute.xlu1 %v6736_v20 }
 0x182   : > { %v5754_v17 = vpack.c.bf16 %v1733_v5, %v1733_v5  ;;  %v1619_v41 = vpop.permute.xlu1 %1618  ;;  %1713 = vperm.xlu1 %6384, %v1531_v22   ;;  %2836 = vperm.xlu0 %6411, %v2754_v54   ;;  %v6499_v22 = vld [vmem:[#allocation2 + $0x40] ss:$28 sps:$4 sm:$0xff]  }
 0x183   : > { %1894 = vst [vmem:[#allocation2 + $0xec] sm:$0xf] %v5755_v32  ;;  %v1736_v59 = vmul.f32 %v1619_v41, %v7325_v45  ;;  %v1614_v42 = vpop.permute.xlu0 %1613  ;;  %v6497_v1 = vld [vmem:[#allocation2 + $0x44] ss:$28 sps:$4 sm:$0xff]   ;;  %v2765_v5 = vld [vmem:[%s6844_s10 + $0x78] sm:$0xff] }
 0x184   : > { %1893 = vst [vmem:[#allocation2 + $0xd0] sm:$0xf] %v5754_v17  ;;  %v1735_v14 = vmul.f32 %v1614_v42, %v7333_v56  ;;  %4519 = vmatprep.mubr.bf16.mxu1 %v6497_v1  ;;  %v6576_v17 = vld [vmem:[#allocation4 + $0x1b8] sm:$0xff]   ;;  %v1934_v42 = vld [vmem:[%s6844_s10 + $0x80] sm:$0xff] }
 0x185   : > { %v5757_v7 = vpack.c.bf16 %v1736_v59, %v1736_v59  ;;  %v6505_v59 = vld [vmem:[#allocation2 + $0xb0] ss:$28 sps:$4 sm:$0xff]   ;;  %6236 = vmatprep.subr.bf16.mxu1 %v6576_v17 }
 0x186   : > { %v5756_v49 = vpack.c.bf16 %v1735_v14, %v1735_v14  ;;  %v1629_v16 = vpop.permute.xlu1 %1628  ;;  %6385 = vset.pattern.permute.xlu1 %v8282_v61  ;;  %2851 = vperm.xlu0 %6411, %v2757_v52  }
 0x187   : > { %1896 = vst [vmem:[#allocation2 + $0x124] sm:$0xf] %v5757_v7  ;;  %v1738_v53 = vmul.f32 %v1629_v16, %v7339_v46  ;;  %v1624_v36 = vpop.permute.xlu0 %1623  ;;  %2054 = vperm.xlu1 %6385, %v7485_v58   ;;  %v6500_v19 = vld [vmem:[#allocation2 + $0x7c] ss:$28 sps:$4 sm:$0xff]   ;;  %6237 = vmatpush3.bf16.msra.mxu1 %v6576_v17  ;;  %v6579_v7 = vld [vmem:[#allocation4 + $0x1b0] sm:$0xff]  }
 0x188   : > { %1895 = vst [vmem:[#allocation2 + $0x108] sm:$0xf] %v5756_v49  ;;  %v1737_v45 = vmul.f32 %v1624_v36, %v7345_v60  ;;  %6238 = vmatprep.subr.bf16.mxu1 %v6579_v7 }
 0x189   : > { %v5759_v56 = vpack.c.bf16 %v1738_v53, %v1738_v53  ;;  %4520 = vmatmul.mubr.bf16.gmra.mxu1 %v6499_v22  ;;  %v6581_v53 = vld [vmem:[#allocation4 + $0x1a8] sm:$0xff]   ;;  %v7514_v22 = vld [vmem:[%s6844_s10 + $0x98] sm:$0xff] }
 0x18a   : > { %v5758_v62 = vpack.c.bf16 %v1737_v45, %v1737_v45  ;;  %v1639_v11 = vpop.permute.xlu1 %1638  ;;  %4527 = vmatprep.mubr.bf16.mxu1 %v6500_v19  ;;  %2856 = vperm.xlu0 %6411, %v2758_v6  }
 0x18b   : > { %1898 = vst [vmem:[#allocation2 + $0x15c] sm:$0xf] %v5759_v56  ;;  %v1740_v46 = vmul.f32 %v1639_v11, %v7348_v12  ;;  %v1634_v18 = vpop.permute.xlu0 %1633  ;;  %6386 = vset.pattern.permute.xlu1 %v8280_v24  ;;  %v6503_v15 = vld [vmem:[#allocation2 + $0xb4] ss:$28 sps:$4 sm:$0xff]   ;;  %6239 = vmatpush3.bf16.msra.mxu1 %v6579_v7  ;;  %v2781_v7 = vld [vmem:[%s6844_s10 + $0xf8] sm:$0xff] }
 0x18c   : > { %1897 = vst [vmem:[#allocation2 + $0x140] sm:$0xf] %v5758_v62  ;;  %v1739_v37 = vmul.f32 %v1634_v18, %v7355_v31  ;;  %2470 = vperm.xlu1 %6386, %v7485_v58   ;;  %6240 = vmatprep.subr.bf16.mxu1 %v6581_v53 }
 0x18d   : > { %v5761_v60 = vpack.c.bf16 %v1740_v46, %v1740_v46 }
 0x18e   : > { %v5760_v63 = vpack.c.bf16 %v1739_v37, %v1739_v37  ;;  %v1649_v13 = vpop.permute.xlu1 %1648  ;;  %2871 = vperm.xlu0 %6411, %v2761_v34  }
 0x18f   : > { %1900 = vst [vmem:[#allocation2 + $0x194] sm:$0xf] %v5761_v60  ;;  %v1742_v28 = vmul.f32 %v1649_v13, %v7358_v0  ;;  %v1644_v29 = vpop.permute.xlu0 %1643  ;;  %v6506_v1 = vld [vmem:[#allocation2 + $0xec] ss:$28 sps:$4 sm:$0xff]   ;;  %6241 = vmatpush3.bf16.msra.mxu1 %v6581_v53  ;;  %v1950_v60 = vld [vmem:[%s7012_s24] sm:$0xff] }
 0x190   : > { %1899 = vst [vmem:[#allocation2 + $0x178] sm:$0xf] %v5760_v63  ;;  %v1741_v12 = vmul.f32 %v1644_v29, %v7366_v23  ;;  %2475 = vperm.xlu1 %6386, %v7403_v4   ;;  %v6585_v63 = vld [vmem:[#allocation4 + $0x198] sm:$0xff]  }
 0x191   : > { %v5763_v31 = vpack.c.bf16 %v1742_v28, %v1742_v28  ;;  %4528 = vmatmul.mubr.bf16.gmra.mxu1 %v6502_v3  ;;  %v2751_v28 = vld [vmem:[%s6844_s10 + $0x8] sm:$0xff]  ;;  %v7529_v29 = vld [vmem:[%s6844_s10 + $0xb8] sm:$0xff] }
 0x192   : > { %v5762_v38 = vpack.c.bf16 %v1741_v12, %v1741_v12  ;;  %v1659_v39 = vpop.permute.xlu1 %1658  ;;  %4535 = vmatprep.mubr.bf16.mxu1 %v6503_v15  ;;  %2876 = vperm.xlu0 %6411, %v2762_v21   ;;  %v6515_v3 = vld [vmem:[#allocation2 + $0x120] ss:$28 sps:$4 sm:$0xff]   ;;  %v6586_v21 = vld [vmem:[#allocation4 + $0x190] sm:$0xff]  }
 0x193   : > { %1902 = vst [vmem:[#allocation2 + $0x1cc] sm:$0xf] %v5763_v31  ;;  %v1744_v50 = vmul.f32 %v1659_v39, %v7369_v10  ;;  %v1654_v25 = vpop.permute.xlu0 %1653  ;;  %v6509_v19 = vld [vmem:[#allocation2 + $0x124] ss:$28 sps:$4 sm:$0xff]  }
 0x194   : > { %1901 = vst [vmem:[#allocation2 + $0x1b0] sm:$0xf] %v5762_v38  ;;  %v1743_v0 = vmul.f32 %v1654_v25, %v7375_v2  ;;  %6388 = vset.pattern.permute.xlu1 %v6736_v20  ;;  %v7535_v39 = vld [vmem:[%s6844_s10 + $0xc0] sm:$0xff]  ;;  %v7540_v25 = vld [vmem:[%s6844_s10 + $0xd8] sm:$0xff] }
 0x195   : > { %v5765_v23 = vpack.c.bf16 %v1744_v50, %v1744_v50  ;;  %1723 = vperm.xlu1 %6388, %v7464_v43  }
 0x196   : > { %v5764_v32 = vpack.c.bf16 %v1743_v0, %v1743_v0  ;;  %v1669_v54 = vpop.permute.xlu1 %1668  ;;  %2891 = vperm.xlu0 %6411, %v2765_v5   ;;  %v6590_v5 = vld [vmem:[#allocation4 + $0x188] sm:$0xff]  }
 0x197   : > { %1904 = vst [vmem:[#allocation2 + $0x204] sm:$0xf] %v5765_v23  ;;  %v1746_v4 = vmul.f32 %v1669_v54, %v7378_v48  ;;  %v1664_v10 = vpop.permute.xlu0 %1663 }
 0x198   : > { %1903 = vst [vmem:[#allocation2 + $0x1e8] sm:$0xf] %v5764_v32  ;;  %v1745_v41 = vmul.f32 %v1664_v10, %v7385_v55  ;;  %v2367_v32 = vld [vmem:[%s7012_s24 + $0x8] sm:$0xff]  ;;  %v6522_v10 = vld [vmem:[#allocation2 + $0x158] ss:$28 sps:$4 sm:$0xff]  }
 0x199   : > { %v5767_v2 = vpack.c.bf16 %v1746_v4, %v1746_v4  ;;  %4536 = vmatmul.mubr.bf16.gmra.mxu1 %v6505_v59  ;;  %6389 = vset.pattern.permute.xlu1 %v8282_v61  ;;  %v7550_v59 = vld [vmem:[%s6844_s10 + $0xe0] sm:$0xff] }
 0x19a   : > { %v5766_v14 = vpack.c.bf16 %v1745_v41, %v1745_v41  ;;  %v1679_v20 = vpop.permute.xlu1 %1678  ;;  %4543 = vmatprep.mubr.bf16.mxu1 %v6506_v1  ;;  %2064 = vperm.xlu1 %6389, %v1934_v42  }
 0x19b   : > { %1906 = vst [vmem:[#allocation2 + $0x23c] sm:$0xf] %v5767_v2  ;;  %v1748_v48 = vmul.f32 %v1679_v20, %v7388_v57  ;;  %v1674_v43 = vpop.permute.xlu0 %1673  ;;  %2896 = vperm.xlu0 %6411, %v1934_v42   ;;  %v1953_v20 = vld [vmem:[%s7012_s24 + $0x18] sm:$0xff] }
 0x19c   : > { %1905 = vst [vmem:[#allocation2 + $0x220] sm:$0xf] %v5766_v14  ;;  %v1747_v55 = vmul.f32 %v1674_v43, %v7395_v35  ;;  %v6508_v35 = vld [vmem:[#allocation2 + $0xe8] ss:$28 sps:$4 sm:$0xff]  }
 0x19d   : > { %v5769_v52 = vpack.c.bf16 %v1748_v48, %v1748_v48 }
 0x19e   : > { %v5768_v49 = vpack.c.bf16 %v1747_v55, %v1747_v55  ;;  %v1689_v16 = vpop.permute.xlu1 %1688  ;;  %6390 = vset.pattern.permute.xlu1 %v8280_v24  ;;  %v7559_v55 = vld [vmem:[%s7012_s24 + $0x10] sm:$0xff] }
 0x19f   : > { %1908 = vst [vmem:[#allocation2 + $0x274] sm:$0xf] %v5769_v52  ;;  %v1750_v36 = vmul.f32 %v1689_v16, %v7398_v26  ;;  %v1684_v45 = vpop.permute.xlu0 %1683  ;;  %2911 = vperm.xlu0 %6411, %v7514_v22   ;;  %2480 = vperm.xlu1 %6390, %v1934_v42   ;;  %v6584_v26 = vld [vmem:[#allocation4 + $0x1a0] sm:$0xff]   ;;  %v6529_v16 = vld [vmem:[#allocation2 + $0x190] ss:$28 sps:$4 sm:$0xff]  }
 0x1a0   : > { %1907 = vst [vmem:[#allocation2 + $0x258] sm:$0xf] %v5768_v49  ;;  %v1749_v57 = vmul.f32 %v1684_v45, %v7408_v33  ;;  %v7521_v33 = vld [vmem:[%s6844_s10 + $0xa0] sm:$0xff]  ;;  %6242 = vmatprep.subr.bf16.mxu1 %v6584_v26  ;;  %v6530_v45 = vld [vmem:[#allocation2 + $0x1cc] ss:$28 sps:$4 sm:$0xff]  }
 0x1a1   : > { %v5771_v56 = vpack.c.bf16 %v1750_v36, %v1750_v36  ;;  %4544 = vmatmul.mubr.bf16.gmra.mxu1 %v6508_v35 }
 0x1a2   : > { %v5770_v6 = vpack.c.bf16 %v1749_v57, %v1749_v57  ;;  %v1699_v62 = vpop.permute.xlu1 %1698  ;;  %4551 = vmatprep.mubr.bf16.mxu1 %v6509_v19  ;;  %6243 = vmatpush3.bf16.msra.mxu1 %v6584_v26  ;;  %v7567_v26 = vld [vmem:[%s7012_s24 + $0x28] sm:$0xff] }
 0x1a3   : > { %1910 = vst [vmem:[#allocation2 + $0x2ac] sm:$0xf] %v5771_v56  ;;  %v1752_v11 = vmul.f32 %v1699_v62, %v7411_v30  ;;  %v1694_v46 = vpop.permute.xlu0 %1693  ;;  %2916 = vperm.xlu0 %6411, %v7521_v33   ;;  %2485 = vperm.xlu1 %6390, %v7416_v9   ;;  %v6517_v9 = vld [vmem:[#allocation2 + $0x15c] ss:$28 sps:$4 sm:$0xff]  }
 0x1a4   : > { %1909 = vst [vmem:[#allocation2 + $0x290] sm:$0xf] %v5770_v6  ;;  %v1751_v18 = vmul.f32 %v1694_v46, %v7422_v44  ;;  %6244 = vmatprep.subr.bf16.mxu1 %v6585_v63 }
 0x1a5   : > { %v5773_v37 = vpack.c.bf16 %v1752_v11, %v1752_v11 }
 0x1a6   : > { %v5772_v34 = vpack.c.bf16 %v1751_v18, %v1751_v18  ;;  %6245 = vmatpush3.bf16.msra.mxu1 %v6585_v63  ;;  %v2755_v18 = vld [vmem:[%s6844_s10 + $0x28] sm:$0xff]  ;;  %v1954_v63 = vld [vmem:[%s7012_s24 + $0x20] sm:$0xff] }
 0x1a7   : > { %1912 = vst [vmem:[#allocation2 + $0x2e4] sm:$0xf] %v5773_v37  ;;  %v1985_v30 = vpop.permute.xlu1 %1984  ;;  %v1704_v13 = vpop.permute.xlu0 %1703  ;;  %2931 = vperm.xlu0 %6411, %v7529_v29   ;;  %6391 = vset.pattern.permute.xlu1 %v8284_v40 }
 0x1a8   : > { %1911 = vst [vmem:[#allocation2 + $0x2c8] sm:$0xf] %v5772_v34  ;;  %v2142_v12 = vmul.f32 %v1985_v30, %v1950_v60  ;;  %v1753_v44 = vmul.f32 %v1704_v13, %v7433_v27  ;;  %2821 = vperm.xlu1 %6391, %v2751_v28   ;;  %6246 = vmatprep.subr.bf16.mxu1 %v6586_v21  ;;  %v6536_v13 = vld [vmem:[#allocation2 + $0x1c8] ss:$28 sps:$4 sm:$0xff]  }
 0x1a9   : > { %4552 = vmatmul.mubr.bf16.gmra.mxu1 %v6515_v3  ;;  %v6540_v28 = vld [vmem:[#allocation2 + $0x204] ss:$28 sps:$4 sm:$0xff]  }
 0x1aa   : > { %v5779_v31 = vpack.c.bf16 %v2142_v12, %v2142_v12  ;;  %v5774_v15 = vpack.c.bf16 %v1753_v44, %v1753_v44  ;;  %4559 = vmatprep.mubr.bf16.mxu1 %v6517_v9  ;;  %6247 = vmatpush3.bf16.msra.mxu1 %v6586_v21  ;;  %v7576_v12 = vld [vmem:[%s7012_s24 + $0x30] sm:$0xff] }
 0x1ab   : > { %v1709_v38 = vpop.permute.xlu0 %1708  ;;  %2936 = vperm.xlu0 %6411, %v7535_v39   ;;  %6248 = vmatprep.subr.bf16.mxu1 %v6590_v5 }
 0x1ac   : > { %2302 = vst [vmem:[#allocation2 + $0x10] sm:$0xf] %v5779_v31  ;;  %1913 = vst [vmem:[#allocation2 + $0x300] sm:$0xf] %v5774_v15  ;;  %v1754_v27 = vmul.f32 %v1709_v38, %v7425_v51  ;;  %v2401_v50 = vpop.permute.xlu1 %2400  ;;  %2826 = vperm.xlu1 %6391, %v7336_v8   ;;  %v7546_v51 = vld [vmem:[%s6844_s10 + $0x90] sm:$0xff] }
 0x1ad   : > { %v2558_v0 = vmul.f32 %v2401_v50, %v1950_v60  ;;  %v6523_v8 = vld [vmem:[#allocation2 + $0x194] ss:$28 sps:$4 sm:$0xff]  }
 0x1ae   : > { %v5775_v23 = vpack.c.bf16 %v1754_v27, %v1754_v27  ;;  %6249 = vmatpush3.bf16.msra.mxu1 %v6590_v5  ;;  %v2756_v38 = vld [vmem:[%s6844_s10 + $0x30] sm:$0xff] }
 0x1af   : > { %v1719_v54 = vpop.permute.xlu0 %1718  ;;  %v5811_v17 = vpack.c.bf16 %v2558_v0, %v2558_v0  ;;  %2951 = vperm.xlu0 %6411, %v7540_v25  }
 0x1b0   : > { %1914 = vst [vmem:[#allocation2 + $0x31c] sm:$0xf] %v5775_v23  ;;  %v1756_v4 = vmul.f32 %v1719_v54, %v7436_v47  ;;  %v2406_v41 = vpop.permute.xlu1 %2405  ;;  %6392 = vset.pattern.permute.xlu1 %v8282_v61  ;;  %v6591_v47 = vld [vmem:[#allocation4 + $0x180] sm:$0xff]  }
 0x1b1   : > { %2718 = vst [vmem:[#allocation2 + $0x14] sm:$0xf] %v5811_v17  ;;  %v2559_v2 = vmul.f32 %v2406_v41, %v2367_v32  ;;  %4560 = vmatmul.mubr.bf16.gmra.mxu1 %v6522_v10  ;;  %2074 = vperm.xlu1 %6392, %v7546_v51  }
 0x1b2   : > { %v5777_v42 = vpack.c.bf16 %v1756_v4, %v1756_v4  ;;  %4567 = vmatprep.mubr.bf16.mxu1 %v6523_v8  ;;  %6250 = vmatprep.subr.bf16.mxu1 %v6591_v47 }
 0x1b3   : > { %v5812_v1 = vpack.c.bf16 %v2559_v2, %v2559_v2  ;;  %2956 = vperm.xlu0 %6411, %v7550_v59   ;;  %6251 = vmatpush3.bf16.msra.mxu1 %v6591_v47 }
 0x1b4   : > { %1916 = vst [vmem:[#allocation2 + $0x354] sm:$0xf] %v5777_v42  ;;  %v1990_v14 = vpop.permute.xlu0 %1989 }
 0x1b5   : > { %2719 = vst [vmem:[#allocation2 + $0x30] sm:$0xf] %v5812_v1  ;;  %v2143_v48 = vmul.f32 %v2367_v32, %v1990_v14  ;;  %6393 = vset.pattern.permute.xlu1 %v8280_v24  ;;  %v2000_v43 = vpop.permute.xlu1 %1999  ;;  %v7583_v32 = vld [vmem:[%s7012_s24 + $0x48] sm:$0xff]  ;;  %v1960_v1 = vld [vmem:[%s7012_s24 + $0x50] sm:$0xff] }
 0x1b6   : > { %v2145_v49 = vmul.f32 %v2000_v43, %v1953_v20  ;;  %2490 = vperm.xlu1 %6393, %v7546_v51   ;;  %v5892_v53 = vpop.f32.mrf.mxu0 }
 0x1b7   : > { %v5780_v52 = vpack.c.bf16 %v2143_v48, %v2143_v48  ;;  %2971 = vperm.xlu0 %6411, %v2781_v7   ;;  %v6544_v7 = vld [vmem:[#allocation2 + $0x200] ss:$28 sps:$4 sm:$0xff]  }
 0x1b8   : > { %v1995_v36 = vpop.permute.xlu0 %1994  ;;  %v5782_v57 = vpack.c.bf16 %v2145_v49, %v2145_v49  ;;  %v5893_v56 = vpop.f32.mrf.mxu0 }
 0x1b9   : > { %2303 = vst [vmem:[#allocation2 + $0x2c] sm:$0xf] %v5780_v52  ;;  %v2144_v35 = vmul.f32 %v1995_v36, %v7559_v55  ;;  %4568 = vmatmul.mubr.bf16.gmra.mxu1 %v6529_v16  ;;  %v7564_v6 = vadd.f32 %v5893_v56, %v5892_v53  ;;  %v6545_v52 = vld [vmem:[#allocation2 + $0x23c] ss:$28 sps:$4 sm:$0xff]  }
 0x1ba   : > { %4575 = vmatprep.mubr.bf16.mxu1 %v6530_v45  ;;  %2305 = vst [vmem:[#allocation2 + $0x64] sm:$0xf] %v5782_v57  ;;  %2495 = vperm.xlu1 %6393, %v7514_v22   ;;  %v2416_v19 = vpop.permute.xlu1 %2415  ;;  %v5895_v46 = vpop.f32.mrf.mxu0 }
 0x1bb   : > { %v5781_v62 = vpack.c.bf16 %v2144_v35, %v2144_v35  ;;  %v2561_v11 = vmul.f32 %v2416_v19, %v1953_v20  ;;  %v7595_v35 = vld [vmem:[%s7012_s24 + $0x68] sm:$0xff] }
 0x1bc   : > { %v2010_v37 = vpop.permute.xlu0 %2009  ;;  %v5896_v34 = vpop.f32.mrf.mxu0  ;;  %v6539_v31 = vld [vmem:[#allocation2 + $0x14] ss:$28 sps:$4 sm:$0xff]  }
 0x1bd   : > { %2304 = vst [vmem:[#allocation2 + $0x48] sm:$0xf] %v5781_v62  ;;  %v5814_v60 = vpack.c.bf16 %v2561_v11, %v2561_v11  ;;  %v2147_v30 = vmul.f32 %v7567_v26, %v2010_v37  ;;  %v7573_v22 = vadd.f32 %v5896_v34, %v5895_v46  ;;  %4672 = vmatprep.mubr.bf16.mxu0 %v6539_v31  ;;  %v7598_v62 = vld [vmem:[%s7012_s24 + $0x38] sm:$0xff] }
 0x1be   : > { %6394 = vset.pattern.permute.xlu1 %v8284_v40  ;;  %v5898_v3 = vpop.f32.mrf.mxu0 }
 0x1bf   : > { %2721 = vst [vmem:[#allocation2 + $0x68] sm:$0xf] %v5814_v60  ;;  %2841 = vperm.xlu1 %6394, %v2755_v18   ;;  %v2005_v44 = vpop.permute.xlu1 %2004  ;;  %v5784_v15 = vpack.c.bf16 %v2147_v30, %v2147_v30  ;;  %v7607_v30 = vld [vmem:[%s6844_s10 + $0xa8] sm:$0xff] }
 0x1c0   : > { %v6537_v9 = vld [vmem:[#allocation2 + $0x10] ss:$28 sps:$4 sm:$0xff]   ;;  %v2146_v21 = vmul.f32 %v2005_v44, %v1954_v63  ;;  %v2015_v27 = vpop.permute.xlu0 %2014  ;;  %v5899_v50 = vpop.f32.mrf.mxu0  ;;  %v6548_v44 = vld [vmem:[#allocation2 + $0x238] ss:$28 sps:$4 sm:$0xff]  }
 0x1c1   : > { %4576 = vmatmul.mubr.bf16.gmra.mxu1 %v6536_v13  ;;  %2307 = vst [vmem:[#allocation2 + $0x9c] sm:$0xf] %v5784_v15  ;;  %v2148_v0 = vmul.f32 %v2015_v27, %v7576_v12  ;;  %v7580_v5 = vadd.f32 %v5899_v50, %v5898_v3  ;;  %4673 = vmatmul.mubr.bf16.vlgmr.msra.gmra.mxu0 %v6537_v9  ;;  %v7610_v13 = vld [vmem:[%s7012_s24 + $0x78] sm:$0xff]  ;;  %v7617_v50 = vld [vmem:[%s7012_s24 + $0x88] sm:$0xff] }
 0x1c2   : > { %4583 = vmatprep.mubr.bf16.mxu1 %v6540_v28  ;;  %v5783_v23 = vpack.c.bf16 %v2146_v21, %v2146_v21  ;;  %v5901_v54 = vpop.f32.mrf.mxu0 }
 0x1c3   : > { %2846 = vperm.xlu1 %6394, %v2756_v38   ;;  %v5785_v17 = vpack.c.bf16 %v2148_v0, %v2148_v0 }
 0x1c4   : > { %2306 = vst [vmem:[#allocation2 + $0x80] sm:$0xf] %v5783_v23  ;;  %v2421_v4 = vpop.permute.xlu1 %2420  ;;  %v2030_v10 = vpop.permute.xlu0 %2029  ;;  %v6547_v49 = vld [vmem:[#allocation2 + $0x48] ss:$28 sps:$4 sm:$0xff]  }
 0x1c5   : > { %v2562_v41 = vmul.f32 %v2421_v4, %v1954_v63  ;;  %v5902_v8 = vpop.f32.mrf.mxu0  ;;  %2308 = vst [vmem:[#allocation2 + $0xb8] sm:$0xf] %v5785_v17  ;;  %v2151_v2 = vmul.f32 %v7583_v32, %v2030_v10 }
 0x1c6   : > { %v7586_v42 = vadd.f32 %v5902_v8, %v5901_v54  ;;  %v6542_v47 = vld [vmem:[#allocation2 + $0x4c] ss:$28 sps:$4 sm:$0xff]  }
 0x1c7   : > { %v5815_v14 = vpack.c.bf16 %v2562_v41, %v2562_v41  ;;  %6395 = vset.pattern.permute.xlu1 %v8282_v61  ;;  %v5904_v20 = vpop.f32.mrf.mxu0  ;;  %v5788_v48 = vpack.c.bf16 %v2151_v2, %v2151_v2  ;;  %4680 = vmatprep.mubr.bf16.mxu0 %v6542_v47  ;;  %v2759_v54 = vld [vmem:[%s6844_s10 + $0x48] sm:$0xff]  ;;  %v1958_v47 = vld [vmem:[%s7012_s24 + $0x40] sm:$0xff] }
 0x1c8   : > { %2084 = vperm.xlu1 %6395, %v7521_v33   ;;  %v2426_v43 = vpop.permute.xlu1 %2425  ;;  %v2035_v16 = vpop.permute.xlu0 %2034 }
 0x1c9   : > { %2722 = vst [vmem:[#allocation2 + $0x84] sm:$0xf] %v5815_v14  ;;  %v2563_v53 = vmul.f32 %v2426_v43, %v7567_v26  ;;  %v5905_v36 = vpop.f32.mrf.mxu0  ;;  %4584 = vmatmul.mubr.bf16.gmra.mxu1 %v6544_v7  ;;  %2311 = vst [vmem:[#allocation2 + $0x10c] sm:$0xf] %v5788_v48  ;;  %v2152_v45 = vmul.f32 %v2035_v16, %v1960_v1  ;;  %4681 = vmatmul.mubr.bf16.gmra.mxu0 %v6547_v49  ;;  %v2760_v43 = vld [vmem:[%s6844_s10 + $0x50] sm:$0xff] }
 0x1ca   : > { %v7592_v57 = vadd.f32 %v5905_v36, %v5904_v20  ;;  %4591 = vmatprep.mubr.bf16.mxu1 %v6545_v52  ;;  %v7627_v20 = vld [vmem:[%s7012_s24 + $0x98] sm:$0xff]  ;;  %v6554_v52 = vld [vmem:[#allocation2 + $0x270] ss:$28 sps:$4 sm:$0xff]  }
 0x1cb   : > { %v5816_v56 = vpack.c.bf16 %v2563_v53, %v2563_v53  ;;  %v5907_v19 = vpop.f32.mrf.mxu0  ;;  %v5789_v11 = vpack.c.bf16 %v2152_v45, %v2152_v45  ;;  %v6553_v10 = vld [vmem:[#allocation2 + $0x80] ss:$28 sps:$4 sm:$0xff]   ;;  %v6555_v53 = vld [vmem:[#allocation2 + $0x2ac] ss:$28 sps:$4 sm:$0xff]  }
 0x1cc   : > { %6396 = vset.pattern.permute.xlu1 %v8280_v24  ;;  %v2050_v46 = vpop.permute.xlu0 %2049 }
 0x1cd   : > { %2723 = vst [vmem:[#allocation2 + $0xa0] sm:$0xf] %v5816_v56  ;;  %2500 = vperm.xlu1 %6396, %v7521_v33   ;;  %v2020_v18 = vpop.permute.xlu1 %2019  ;;  %v5908_v37 = vpop.f32.mrf.mxu0  ;;  %2312 = vst [vmem:[#allocation2 + $0x128] sm:$0xf] %v5789_v11  ;;  %v2155_v60 = vmul.f32 %v7595_v35, %v2050_v46  ;;  %v6549_v33 = vld [vmem:[#allocation2 + $0x274] ss:$28 sps:$4 sm:$0xff]  }
 0x1ce   : > { %v2149_v34 = vmul.f32 %v2020_v18, %v7598_v62  ;;  %v7604_v63 = vadd.f32 %v5908_v37, %v5907_v19  ;;  %v7634_v46 = vld [vmem:[%s7012_s24 + $0xa8] sm:$0xff] }
 0x1cf   : > { %v5910_v28 = vpop.f32.mrf.mxu0  ;;  %v5792_v3 = vpack.c.bf16 %v2155_v60, %v2155_v60 }
 0x1d0   : > { %v5786_v9 = vpack.c.bf16 %v2149_v34, %v2149_v34  ;;  %v2060_v31 = vpop.permute.xlu0 %2059  ;;  %v7637_v34 = vld [vmem:[%s6844_s10 + $0xb0] sm:$0xff] }
 0x1d1   : > { %2505 = vperm.xlu1 %6396, %v7607_v30   ;;  %v5911_v15 = vpop.f32.mrf.mxu0  ;;  %4592 = vmatmul.mubr.bf16.gmra.mxu1 %v6548_v44  ;;  %2315 = vst [vmem:[#allocation2 + $0x17c] sm:$0xf] %v5792_v3  ;;  %v2157_v21 = vmul.f32 %v2060_v31, %v7610_v13 }
 0x1d2   : > { %2309 = vst [vmem:[#allocation2 + $0xd4] sm:$0xf] %v5786_v9  ;;  %v2436_v38 = vpop.permute.xlu1 %2435  ;;  %v7614_v27 = vadd.f32 %v5911_v15, %v5910_v28  ;;  %4599 = vmatprep.mubr.bf16.mxu1 %v6549_v33  ;;  %v7641_v33 = vld [vmem:[%s7012_s24 + $0xb8] sm:$0xff] }
 0x1d3   : > { %v2565_v0 = vmul.f32 %v2436_v38, %v7598_v62  ;;  %v5913_v23 = vpop.f32.mrf.mxu0  ;;  %v5794_v17 = vpack.c.bf16 %v2157_v21, %v2157_v21 }
 0x1d4   : > { %v6551_v4 = vld [vmem:[#allocation2 + $0x84] ss:$28 sps:$4 sm:$0xff]   ;;  %v2070_v41 = vpop.permute.xlu0 %2069 }
 0x1d5   : > { %v5818_v8 = vpack.c.bf16 %v2565_v0, %v2565_v0  ;;  %6397 = vset.pattern.permute.xlu1 %v8284_v40  ;;  %v5914_v2 = vpop.f32.mrf.mxu0  ;;  %2317 = vst [vmem:[#allocation2 + $0x1b4] sm:$0xf] %v5794_v17  ;;  %v2159_v1 = vmul.f32 %v2070_v41, %v7617_v50  ;;  %4688 = vmatprep.mubr.bf16.mxu0 %v6551_v4  ;;  %v6561_v4 = vld [vmem:[#allocation2 + $0x2e4] ss:$28 sps:$4 sm:$0xff]  }
 0x1d6   : > { %2861 = vperm.xlu1 %6397, %v2759_v54   ;;  %v7624_v14 = vadd.f32 %v5914_v2, %v5913_v23  ;;  %4689 = vmatmul.mubr.bf16.gmra.mxu0 %v6553_v10  ;;  %v6560_v23 = vld [vmem:[#allocation2 + $0x2a8] ss:$28 sps:$4 sm:$0xff]  }
 0x1d7   : > { %2725 = vst [vmem:[#allocation2 + $0xd8] sm:$0xf] %v5818_v8  ;;  %v2025_v7 = vpop.permute.xlu1 %2024  ;;  %v5916_v48 = vpop.f32.mrf.mxu0  ;;  %v5796_v49 = vpack.c.bf16 %v2159_v1, %v2159_v1  ;;  %v7652_v1 = vld [vmem:[%s7012_s24 + $0xc8] sm:$0xff] }
 0x1d8   : > { %v2150_v16 = vmul.f32 %v2025_v7, %v1958_v47  ;;  %v2080_v36 = vpop.permute.xlu0 %2079 }
 0x1d9   : > { %v5917_v45 = vpop.f32.mrf.mxu0  ;;  %4600 = vmatmul.mubr.bf16.gmra.mxu1 %v6554_v52  ;;  %2319 = vst [vmem:[#allocation2 + $0x1ec] sm:$0xf] %v5796_v49  ;;  %v2161_v56 = vmul.f32 %v2080_v36, %v7627_v20  ;;  %v6559_v21 = vld [vmem:[#allocation2 + $0xb8] ss:$28 sps:$4 sm:$0xff]  }
 0x1da   : > { %v5787_v19 = vpack.c.bf16 %v2150_v16, %v2150_v16  ;;  %2866 = vperm.xlu1 %6397, %v2760_v43   ;;  %v7631_v11 = vadd.f32 %v5917_v45, %v5916_v48  ;;  %4607 = vmatprep.mubr.bf16.mxu1 %v6555_v53  ;;  %v7656_v43 = vld [vmem:[%s7012_s24 + $0x58] sm:$0xff] }
 0x1db   : > { %v5919_v18 = vpop.f32.mrf.mxu0  ;;  %v5798_v37 = vpack.c.bf16 %v2161_v56, %v2161_v56 }
 0x1dc   : > { %2310 = vst [vmem:[#allocation2 + $0xf0] sm:$0xf] %v5787_v19  ;;  %v2441_v60 = vpop.permute.xlu1 %2440  ;;  %v2090_v28 = vpop.permute.xlu0 %2089  ;;  %v7664_v19 = vld [vmem:[%s7012_s24 + $0xd8] sm:$0xff] }
 0x1dd   : > { %v2566_v44 = vmul.f32 %v2441_v60, %v1958_v47  ;;  %v5920_v3 = vpop.f32.mrf.mxu0  ;;  %2321 = vst [vmem:[#allocation2 + $0x224] sm:$0xf] %v5798_v37  ;;  %v2163_v9 = vmul.f32 %v2090_v28, %v7634_v46  ;;  %v6563_v37 = vld [vmem:[#allocation2 + $0x2e0] ss:$28 sps:$4 sm:$0xff]  }
 0x1de   : > { %6398 = vset.pattern.permute.xlu1 %v8282_v61  ;;  %v7644_v31 = vadd.f32 %v5920_v3, %v5919_v18  ;;  %v6557_v15 = vld [vmem:[#allocation2 + $0xbc] ss:$28 sps:$4 sm:$0xff]  }
 0x1df   : > { %v5819_v38 = vpack.c.bf16 %v2566_v44, %v2566_v44  ;;  %2094 = vperm.xlu1 %6398, %v7637_v34   ;;  %v5922_v0 = vpop.f32.mrf.mxu0  ;;  %v5800_v54 = vpack.c.bf16 %v2163_v9, %v2163_v9  ;;  %4696 = vmatprep.mubr.bf16.mxu0 %v6557_v15 }
 0x1e0   : > { %v2446_v17 = vpop.permute.xlu1 %2445  ;;  %v2100_v10 = vpop.permute.xlu0 %2099  ;;  %4697 = vmatmul.mubr.bf16.gmra.mxu0 %v6559_v21 }
 0x1e1   : > { %2726 = vst [vmem:[#allocation2 + $0xf4] sm:$0xf] %v5819_v38  ;;  %v2567_v41 = vmul.f32 %v2446_v17, %v7583_v32  ;;  %v5923_v8 = vpop.f32.mrf.mxu0  ;;  %4608 = vmatmul.mubr.bf16.gmra.mxu1 %v6560_v23  ;;  %2323 = vst [vmem:[#allocation2 + $0x25c] sm:$0xf] %v5800_v54  ;;  %v2165_v2 = vmul.f32 %v2100_v10, %v7641_v33  ;;  %v2763_v54 = vld [vmem:[%s6844_s10 + $0x68] sm:$0xff] }
 0x1e2   : > { %v7649_v47 = vadd.f32 %v5923_v8, %v5922_v0  ;;  %4615 = vmatprep.mubr.bf16.mxu1 %v6561_v4 }
 0x1e3   : > { %v5820_v7 = vpack.c.bf16 %v2567_v41, %v2567_v41  ;;  %6399 = vset.pattern.permute.xlu1 %v8280_v24  ;;  %v5925_v48 = vpop.f32.mrf.mxu0  ;;  %v5802_v52 = vpack.c.bf16 %v2165_v2, %v2165_v2  ;;  %v6566_v2 = vld [vmem:[#allocation2 + $0xf0] ss:$28 sps:$4 sm:$0xff]  }
 0x1e4   : > { %2510 = vperm.xlu1 %6399, %v7637_v34   ;;  %v2110_v32 = vpop.permute.xlu0 %2109 }
 0x1e5   : > { %2727 = vst [vmem:[#allocation2 + $0x110] sm:$0xf] %v5820_v7  ;;  %v2040_v49 = vpop.permute.xlu1 %2039  ;;  %v5926_v16 = vpop.f32.mrf.mxu0  ;;  %2325 = vst [vmem:[#allocation2 + $0x294] sm:$0xf] %v5802_v52  ;;  %v2167_v53 = vmul.f32 %v2110_v32, %v7652_v1 }
 0x1e6   : > { %v2153_v36 = vmul.f32 %v2040_v49, %v7656_v43  ;;  %v7661_v45 = vadd.f32 %v5926_v16, %v5925_v48  ;;  %v5964_v56 = vpop.f32.mrf.mxu1  ;;  %v7681_v49 = vld [vmem:[%s7012_s24 + $0x60] sm:$0xff] }
 0x1e7   : > { %v5928_v18 = vpop.f32.mrf.mxu0  ;;  %v5804_v60 = vpack.c.bf16 %v2167_v53, %v2167_v53 }
 0x1e8   : > { %v5790_v28 = vpack.c.bf16 %v2153_v36, %v2153_v36  ;;  %2515 = vperm.xlu1 %6399, %v7529_v29   ;;  %v5965_v44 = vpop.f32.mrf.mxu1  ;;  %v2120_v3 = vpop.permute.xlu0 %2119  ;;  %v7675_v29 = vld [vmem:[%s7012_s24 + $0xe8] sm:$0xff] }
 0x1e9   : > { %v5929_v9 = vpop.f32.mrf.mxu0  ;;  %v7667_v15 = vadd.f32 %v5965_v44, %v5964_v56  ;;  %4616 = vmatmul.mubr.bf16.gmra.mxu1 %v6563_v37  ;;  %2327 = vst [vmem:[#allocation2 + $0x2cc] sm:$0xf] %v5804_v60  ;;  %v2169_v21 = vmul.f32 %v2120_v3, %v7664_v19 }
 0x1ea   : > { %2313 = vst [vmem:[#allocation2 + $0x144] sm:$0xf] %v5790_v28  ;;  %v2456_v38 = vpop.permute.xlu1 %2455  ;;  %v7670_v0 = vadd.f32 %v5929_v9, %v5928_v18  ;;  %v5967_v23 = vpop.f32.mrf.mxu1  ;;  %v7688_v28 = vld [vmem:[%s7012_s24 + $0xf8] sm:$0xff] }
 0x1eb   : > { %v2569_v17 = vmul.f32 %v2456_v38, %v7656_v43  ;;  %v5931_v4 = vpop.f32.mrf.mxu0  ;;  %v5806_v10 = vpack.c.bf16 %v2169_v21, %v2169_v21 }
 0x1ec   : > { %6400 = vset.pattern.permute.xlu1 %v8284_v40  ;;  %v5968_v41 = vpop.f32.mrf.mxu1  ;;  %v6564_v8 = vld [vmem:[#allocation2 + $0xf4] ss:$28 sps:$4 sm:$0xff]   ;;  %v2130_v7 = vpop.permute.xlu0 %2129 }
 0x1ed   : > { %v5822_v48 = vpack.c.bf16 %v2569_v17, %v2569_v17  ;;  %2881 = vperm.xlu1 %6400, %v2763_v54   ;;  %v5932_v52 = vpop.f32.mrf.mxu0  ;;  %v7678_v32 = vadd.f32 %v5968_v41, %v5967_v23  ;;  %2329 = vst [vmem:[#allocation2 + $0x304] sm:$0xf] %v5806_v10  ;;  %v2171_v16 = vmul.f32 %v2130_v7, %v7675_v29  ;;  %v2782_v10 = vld [vmem:[%s7012_s24] sm:$0xff] }
 0x1ee   : > { %v7684_v53 = vadd.f32 %v5932_v52, %v5931_v4  ;;  %4704 = vmatprep.mubr.bf16.mxu0 %v6564_v8  ;;  %v5970_v60 = vpop.f32.mrf.mxu1 }
 0x1ef   : > { %2729 = vst [vmem:[#allocation2 + $0x148] sm:$0xf] %v5822_v48  ;;  %v2045_v36 = vpop.permute.xlu1 %2044  ;;  %v5934_v56 = vpop.f32.mrf.mxu0  ;;  %4705 = vmatmul.mubr.bf16.gmra.mxu0 %v6566_v2  ;;  %v5808_v18 = vpack.c.bf16 %v2171_v16, %v2171_v16 }
 0x1f0   : > { %v2154_v37 = vmul.f32 %v2045_v36, %v7681_v49  ;;  %v2140_v44 = vpop.permute.xlu0 %2139  ;;  %v5971_v23 = vpop.f32.mrf.mxu1 }
 0x1f1   : > { %2886 = vperm.xlu1 %6400, %v7485_v58   ;;  %v5935_v3 = vpop.f32.mrf.mxu0  ;;  %2331 = vst [vmem:[#allocation2 + $0x33c] sm:$0xf] %v5808_v18  ;;  %v2173_v9 = vmul.f32 %v2140_v44, %v7688_v28  ;;  %v7694_v54 = vadd.f32 %v5971_v23, %v5970_v60  ;;  %v6569_v36 = vld [vmem:[#allocation2 + $0x128] ss:$28 sps:$4 sm:$0xff]   ;;  %v2785_v44 = vld [vmem:[%s7012_s24 + $0x18] sm:$0xff] }
 0x1f2   : > { %v5791_v21 = vpack.c.bf16 %v2154_v37, %v2154_v37  ;;  %v7692_v38 = vadd.f32 %v5935_v3, %v5934_v56  ;;  %v5973_v8 = vpop.f32.mrf.mxu1 }
 0x1f3   : > { %v5937_v17 = vpop.f32.mrf.mxu0  ;;  %v5810_v4 = vpack.c.bf16 %v2173_v9, %v2173_v9 }
 0x1f4   : > { %2314 = vst [vmem:[#allocation2 + $0x160] sm:$0xf] %v5791_v21  ;;  %v2461_v41 = vpop.permute.xlu1 %2460  ;;  %v5974_v52 = vpop.f32.mrf.mxu1 }
 0x1f5   : > { %v2570_v2 = vmul.f32 %v2461_v41, %v7681_v49  ;;  %6401 = vset.pattern.permute.xlu1 %v8282_v61  ;;  %v5938_v58 = vpop.f32.mrf.mxu0  ;;  %2333 = vst [vmem:[#allocation2 + $0x374] sm:$0xf] %v5810_v4  ;;  %v2817_v7 = vpop.permute.xlu0 %2816  ;;  %v7702_v37 = vadd.f32 %v5974_v52, %v5973_v8 }
 0x1f6   : > { %2104 = vperm.xlu1 %6401, %v7535_v39   ;;  %v7700_v48 = vadd.f32 %v5938_v58, %v5937_v17  ;;  %v6567_v16 = vld [vmem:[#allocation2 + $0x12c] ss:$28 sps:$4 sm:$0xff]   ;;  %v2974_v56 = vmul.f32 %v2817_v7, %v2782_v10 }
 0x1f7   : > { %v5823_v18 = vpack.c.bf16 %v2570_v2, %v2570_v2  ;;  %v5940_v60 = vpop.f32.mrf.mxu0  ;;  %v5976_v9 = vpop.f32.mrf.mxu1  ;;  %4712 = vmatprep.mubr.bf16.mxu0 %v6567_v16  ;;  %v7713_v16 = vld [vmem:[%s6844_s10 + $0xc8] sm:$0xff] }
 0x1f8   : > { %v2466_v3 = vpop.permute.xlu1 %2465  ;;  %v5843_v21 = vpack.c.bf16 %v2974_v56, %v2974_v56  ;;  %4713 = vmatmul.mubr.bf16.gmra.mxu0 %v6569_v36  ;;  %v2786_v36 = vld [vmem:[%s7012_s24 + $0x20] sm:$0xff] }
 0x1f9   : > { %2730 = vst [vmem:[#allocation2 + $0x164] sm:$0xf] %v5823_v18  ;;  %v2571_v23 = vmul.f32 %v2466_v3, %v7595_v35  ;;  %v5941_v17 = vpop.f32.mrf.mxu0  ;;  %v2832_v4 = vpop.permute.xlu0 %2831 }
 0x1fa   : > { %6402 = vset.pattern.permute.xlu1 %v8280_v24  ;;  %v7707_v10 = vadd.f32 %v5941_v17, %v5940_v60  ;;  %v5977_v41 = vpop.f32.mrf.mxu1  ;;  %3134 = vst [vmem:[#allocation2 + $0x18] sm:$0xf] %v5843_v21  ;;  %v2977_v8 = vmul.f32 %v2832_v4, %v2785_v44 }
 0x1fb   : > { %v5824_v2 = vpack.c.bf16 %v2571_v23, %v2571_v23  ;;  %v7709_v58 = vadd.f32 %v5977_v41, %v5976_v9  ;;  %2520 = vperm.xlu1 %6402, %v7535_v39   ;;  %v5943_v7 = vpop.f32.mrf.mxu0  ;;  %v7723_v41 = vld [vmem:[%s7012_s24 + $0x70] sm:$0xff] }
 0x1fc   : > { %v5979_v52 = vpop.f32.mrf.mxu1  ;;  %v5846_v35 = vpack.c.bf16 %v2977_v8, %v2977_v8 }
 0x1fd   : > { %2731 = vst [vmem:[#allocation2 + $0x180] sm:$0xf] %v5824_v2  ;;  %v1714_v56 = vpop.permute.xlu1 %1713  ;;  %v5944_v18 = vpop.f32.mrf.mxu0  ;;  %v2767_v2 = vld [vmem:[%s6844_s10 + $0x88] sm:$0xff] }
 0x1fe   : > { %v1755_v60 = vmul.f32 %v1714_v56, %v7675_v29  ;;  %v7717_v3 = vadd.f32 %v5944_v18, %v5943_v7  ;;  %v5980_v44 = vpop.f32.mrf.mxu1  ;;  %3137 = vst [vmem:[#allocation2 + $0x6c] sm:$0xf] %v5846_v35  ;;  %v2837_v9 = vpop.permute.xlu0 %2836 }
 0x1ff   : > { %v7719_v21 = vadd.f32 %v5980_v44, %v5979_v52  ;;  %2525 = vperm.xlu1 %6402, %v7713_v16   ;;  %v5946_v39 = vpop.f32.mrf.mxu0  ;;  %v2978_v23 = vmul.f32 %v2837_v9, %v2786_v36  ;;  %v6572_v9 = vld [vmem:[#allocation2 + $0x160] ss:$28 sps:$4 sm:$0xff]  }
 0x200   : > { %v5776_v17 = vpack.c.bf16 %v1755_v60, %v1755_v60  ;;  %v5982_v4 = vpop.f32.mrf.mxu1 }
 0x201   : > { %8289 = vst [vmem:[#allocation10_spill] sm:$0xff] %v7719_v21  ;;  %v5947_v8 = vpop.f32.mrf.mxu0  ;;  %v5847_v24 = vpack.c.bf16 %v2978_v23, %v2978_v23 }
 0x202   : > { %1915 = vst [vmem:[#allocation2 + $0x338] sm:$0xf] %v5776_v17  ;;  %v2055_v29 = vpop.permute.xlu1 %2054  ;;  %v7726_v7 = vadd.f32 %v5947_v8, %v5946_v39  ;;  %v5983_v56 = vpop.f32.mrf.mxu1 }
 0x203   : > { %v2156_v35 = vmul.f32 %v2055_v29, %v7723_v41  ;;  %v7729_v52 = vadd.f32 %v5983_v56, %v5982_v4  ;;  %6403 = vset.pattern.permute.xlu1 %v8284_v40  ;;  %v5949_v36 = vpop.f32.mrf.mxu0  ;;  %3138 = vst [vmem:[#allocation2 + $0x88] sm:$0xf] %v5847_v24  ;;  %v2852_v18 = vpop.permute.xlu0 %2851  ;;  %v2790_v29 = vld [vmem:[%s7012_s24 + $0x40] sm:$0xff] }
 0x204   : > { %2901 = vperm.xlu1 %6403, %v2767_v2   ;;  %v5985_v60 = vpop.f32.mrf.mxu1  ;;  %v6570_v44 = vld [vmem:[#allocation2 + $0x164] ss:$28 sps:$4 sm:$0xff]   ;;  %v2981_v23 = vmul.f32 %v2852_v18, %v7598_v62  ;;  %v6575_v18 = vld [vmem:[#allocation2 + $0x318] ss:$28 sps:$4 sm:$0xff]  }
 0x205   : > { %8290 = vst [vmem:[#allocation11_spill] sm:$0xff] %v7729_v52  ;;  %v5793_v17 = vpack.c.bf16 %v2156_v35, %v2156_v35  ;;  %v5950_v39 = vpop.f32.mrf.mxu0  ;;  %4720 = vmatprep.mubr.bf16.mxu0 %v6570_v44  ;;  %v7743_v52 = vld [vmem:[%s6844_s10 + $0xd0] sm:$0xff] }
 0x206   : > { %v7733_v8 = vadd.f32 %v5950_v39, %v5949_v36  ;;  %v5986_v61 = vpop.f32.mrf.mxu1  ;;  %v5850_v4 = vpack.c.bf16 %v2981_v23, %v2981_v23  ;;  %4721 = vmatmul.mubr.bf16.gmra.mxu0 %v6572_v9 }
 0x207   : > { %2316 = vst [vmem:[#allocation2 + $0x198] sm:$0xf] %v5793_v17  ;;  %v7736_v56 = vadd.f32 %v5986_v61, %v5985_v60  ;;  %v2471_v24 = vpop.permute.xlu1 %2470  ;;  %v5952_v40 = vpop.f32.mrf.mxu0 }
 0x208   : > { %v2572_v2 = vmul.f32 %v2471_v24, %v7723_v41  ;;  %2906 = vperm.xlu1 %6403, %v7546_v51   ;;  %3141 = vst [vmem:[#allocation2 + $0xdc] sm:$0xf] %v5850_v4  ;;  %v2857_v62 = vpop.permute.xlu0 %2856  ;;  %v8292_v24 = vmov 4  }
 0x209   : > { %8291 = vst [vmem:[#allocation12_spill] sm:$0xff] %v7736_v56  ;;  %v5953_v35 = vpop.f32.mrf.mxu0  ;;  %v6573_v36 = vld [vmem:[#allocation2 + $0x31c] ss:$28 sps:$4 sm:$0xff]   ;;  %v2982_v39 = vmul.f32 %v2857_v62, %v2790_v29 }
 0x20a   : > { %v5825_v44 = vpack.c.bf16 %v2572_v2, %v2572_v2  ;;  %v7740_v23 = vadd.f32 %v5953_v35, %v5952_v40  ;;  %4623 = vmatprep.mubr.bf16.mxu1 %v6573_v36 }
 0x20b   : > { %v2476_v61 = vpop.permute.xlu1 %2475  ;;  %v5955_v60 = vpop.f32.mrf.mxu0  ;;  %v5851_v17 = vpack.c.bf16 %v2982_v39, %v2982_v39  ;;  %4624 = vmatmul.mubr.bf16.gmra.mxu1 %v6575_v18 }
 0x20c   : > { %2732 = vst [vmem:[#allocation2 + $0x19c] sm:$0xf] %v5825_v44  ;;  %v2573_v9 = vmul.f32 %v2476_v61, %v7610_v13  ;;  %6404 = vset.pattern.permute.xlu1 %v8292_v24  ;;  %v2872_v51 = vpop.permute.xlu0 %2871  ;;  %v8293_v61 = vmov 5  }
 0x20d   : > { %2114 = vperm.xlu1 %6404, %v7743_v52   ;;  %v5956_v4 = vpop.f32.mrf.mxu0  ;;  %3142 = vst [vmem:[#allocation2 + $0xf8] sm:$0xf] %v5851_v17  ;;  %v2985_v40 = vmul.f32 %v2872_v51, %v7656_v43 }
 0x20e   : > { %v5826_v29 = vpack.c.bf16 %v2573_v9, %v2573_v9  ;;  %v7749_v2 = vadd.f32 %v5956_v4, %v5955_v60  ;;  %v1966_v60 = vld [vmem:[%s7012_s24 + $0x80] sm:$0xff] }
 0x20f   : > { %v5958_v62 = vpop.f32.mrf.mxu0  ;;  %v5854_v35 = vpack.c.bf16 %v2985_v40, %v2985_v40 }
 0x210   : > { %2733 = vst [vmem:[#allocation2 + $0x1b8] sm:$0xf] %v5826_v29  ;;  %v1724_v36 = vpop.permute.xlu1 %1723  ;;  %v2877_v39 = vpop.permute.xlu0 %2876 }
 0x211   : > { %v1757_v44 = vmul.f32 %v1724_v36, %v7688_v28  ;;  %6405 = vset.pattern.permute.xlu1 %v8293_v61  ;;  %v5959_v18 = vpop.f32.mrf.mxu0  ;;  %3145 = vst [vmem:[#allocation2 + $0x14c] sm:$0xf] %v5854_v35  ;;  %v2986_v56 = vmul.f32 %v2877_v39, %v7681_v49  ;;  %v6580_v35 = vld [vmem:[#allocation2 + $0x198] ss:$28 sps:$4 sm:$0xff]  }
 0x212   : > { %2530 = vperm.xlu1 %6405, %v7743_v52   ;;  %v7755_v43 = vadd.f32 %v5959_v18, %v5958_v62 }
 0x213   : > { %v5778_v17 = vpack.c.bf16 %v1757_v44, %v1757_v44  ;;  %v5855_v9 = vpack.c.bf16 %v2986_v56, %v2986_v56  ;;  %v8294_v44 = vmov 6  }
 0x214   : > { %v2892_v51 = vpop.permute.xlu0 %2891 }
 0x215   : > { %1917 = vst [vmem:[#allocation2 + $0x370] sm:$0xf] %v5778_v17  ;;  %v2065_v4 = vpop.permute.xlu1 %2064  ;;  %3146 = vst [vmem:[#allocation2 + $0x168] sm:$0xf] %v5855_v9  ;;  %v2989_v40 = vmul.f32 %v2892_v51, %v7610_v13  ;;  %v3287_v13 = vld [vmem:[#allocation2 + $0x350] sm:$0xff] }
 0x216   : > { %v2158_v29 = vmul.f32 %v2065_v4, %v1966_v60  ;;  %2535 = vperm.xlu1 %6405, %v7540_v25  }
 0x217   : > { %v6577_v36 = vld [vmem:[#allocation2 + $0x19c] ss:$28 sps:$4 sm:$0xff]   ;;  %v5858_v21 = vpack.c.bf16 %v2989_v40, %v2989_v40 }
 0x218   : > { %v5795_v49 = vpack.c.bf16 %v2158_v29, %v2158_v29  ;;  %v2897_v39 = vpop.permute.xlu0 %2896  ;;  %4728 = vmatprep.mubr.bf16.mxu0 %v6577_v36 }
 0x219   : > { %3149 = vst [vmem:[#allocation2 + $0x1bc] sm:$0xf] %v5858_v21  ;;  %v2990_v62 = vmul.f32 %v2897_v39, %v1966_v60  ;;  %4729 = vmatmul.mubr.bf16.gmra.mxu0 %v6580_v35  ;;  %v2783_v39 = vld [vmem:[%s7012_s24 + $0x8] sm:$0xff] }
 0x21a   : > { %2318 = vst [vmem:[#allocation2 + $0x1d0] sm:$0xf] %v5795_v49  ;;  %6406 = vset.pattern.permute.xlu1 %v8294_v44  ;;  %v2481_v56 = vpop.permute.xlu1 %2480 }
 0x21b   : > { %v2574_v18 = vmul.f32 %v2481_v56, %v1966_v60  ;;  %2921 = vperm.xlu1 %6406, %v7607_v30   ;;  %v5859_v17 = vpack.c.bf16 %v2990_v62, %v2990_v62  ;;  %v7766_v60 = vld [vmem:[%s7012_s24 + $0xa0] sm:$0xff] }
 0x21c   : > { %v3291_v25 = vld [vmem:[#allocation2 + $0x36c] sm:$0xff]  ;;  %v2912_v51 = vpop.permute.xlu0 %2911 }
 0x21d   : > { %v6582_v9 = vld [vmem:[#allocation2 + $0x354] ss:$28 sps:$4 sm:$0xff]   ;;  %v5827_v4 = vpack.c.bf16 %v2574_v18, %v2574_v18  ;;  %v5579_v40 = vcombine.low %v3287_v13, %v3291_v25  ;;  %3150 = vst [vmem:[#allocation2 + $0x1d8] sm:$0xf] %v5859_v17  ;;  %v2993_v21 = vmul.f32 %v2912_v51, %v7627_v20 }
 0x21e   : > { %v2486_v29 = vpop.permute.xlu1 %2485  ;;  %4631 = vmatprep.mubr.bf16.mxu1 %v6582_v9 }
 0x21f   : > { %2734 = vst [vmem:[#allocation2 + $0x1d4] sm:$0xf] %v5827_v4  ;;  %v2575_v36 = vmul.f32 %v2486_v29, %v7617_v50  ;;  %2926 = vperm.xlu1 %6406, %v7637_v34   ;;  %4632 = vmatmul.mubr.bf16.gmra.mxu1 %v5579_v40  ;;  %v5862_v30 = vpack.c.bf16 %v2993_v21, %v2993_v21  ;;  %v7776_v4 = vld [vmem:[%s7012_s24 + $0xc0] sm:$0xff]  ;;  %v7780_v21 = vld [vmem:[%s7012_s24 + $0x90] sm:$0xff]  ;;  %v7783_v29 = vld [vmem:[%s6844_s10 + $0xe8] sm:$0xff] }
 0x220   : > { %v2917_v35 = vpop.permute.xlu0 %2916 }
 0x221   : > { %v5828_v49 = vpack.c.bf16 %v2575_v36, %v2575_v36  ;;  %3153 = vst [vmem:[#allocation2 + $0x22c] sm:$0xf] %v5862_v30  ;;  %v2994_v62 = vmul.f32 %v2917_v35, %v7766_v60 }
 0x223   : > { %2735 = vst [vmem:[#allocation2 + $0x1f0] sm:$0xf] %v5828_v49  ;;  %6407 = vset.pattern.permute.xlu1 %v8292_v24  ;;  %v2822_v56 = vpop.permute.xlu1 %2821  ;;  %v5863_v18 = vpack.c.bf16 %v2994_v62, %v2994_v62  ;;  %v6589_v49 = vld [vmem:[#allocation2 + $0x1d0] ss:$28 sps:$4 sm:$0xff]  }
 0x224   : > { %v2975_v50 = vmul.f32 %v2822_v56, %v2783_v39  ;;  %2124 = vperm.xlu1 %6407, %v7550_v59   ;;  %v2932_v34 = vpop.permute.xlu0 %2931 }
 0x225   : > { %3154 = vst [vmem:[#allocation2 + $0x248] sm:$0xf] %v5863_v18  ;;  %v2997_v13 = vmul.f32 %v2932_v34, %v7641_v33  ;;  %v7790_v18 = vld [vmem:[%s7012_s24 + $0xe0] sm:$0xff] }
 0x226   : > { %v5844_v17 = vpack.c.bf16 %v2975_v50, %v2975_v50 }
 0x227   : > { %v2827_v25 = vpop.permute.xlu1 %2826  ;;  %v5866_v9 = vpack.c.bf16 %v2997_v13, %v2997_v13 }
 0x228   : > { %3135 = vst [vmem:[#allocation2 + $0x34] sm:$0xf] %v5844_v17  ;;  %v2976_v51 = vmul.f32 %v2827_v25, %v7559_v55  ;;  %6408 = vset.pattern.permute.xlu1 %v8293_v61  ;;  %v2937_v40 = vpop.permute.xlu0 %2936 }
 0x229   : > { %2540 = vperm.xlu1 %6408, %v7550_v59   ;;  %3157 = vst [vmem:[#allocation2 + $0x29c] sm:$0xf] %v5866_v9  ;;  %v2998_v36 = vmul.f32 %v2937_v40, %v7776_v4 }
 0x22a   : > { %v5845_v30 = vpack.c.bf16 %v2976_v51, %v2976_v51  ;;  %v6587_v35 = vld [vmem:[#allocation2 + $0x1d4] ss:$28 sps:$4 sm:$0xff]  }
 0x22b   : > { %v5867_v39 = vpack.c.bf16 %v2998_v36, %v2998_v36  ;;  %4736 = vmatprep.mubr.bf16.mxu0 %v6587_v35 }
 0x22c   : > { %3136 = vst [vmem:[#allocation2 + $0x50] sm:$0xf] %v5845_v30  ;;  %v2075_v55 = vpop.permute.xlu1 %2074  ;;  %v2952_v62 = vpop.permute.xlu0 %2951  ;;  %4737 = vmatmul.mubr.bf16.gmra.mxu0 %v6589_v49 }
 0x22d   : > { %v2160_v56 = vmul.f32 %v2075_v55, %v7780_v21  ;;  %2545 = vperm.xlu1 %6408, %v7783_v29   ;;  %3158 = vst [vmem:[#allocation2 + $0x2b8] sm:$0xf] %v5867_v39  ;;  %v3001_v59 = vmul.f32 %v2952_v62, %v7664_v19 }
 0x22f   : > { %v5797_v50 = vpack.c.bf16 %v2160_v56, %v2160_v56  ;;  %v6592_v34 = vld [vmem:[#allocation2 + $0x18] ss:$28 sps:$4 sm:$0xff]   ;;  %v5870_v13 = vpack.c.bf16 %v3001_v59, %v3001_v59 }
 0x230   : > { %v2957_v17 = vpop.permute.xlu0 %2956  ;;  %6252 = vmatprep.mubr.bf16.mxu1 %v6592_v34  ;;  %v1948_v56 = vld [vmem:[%s6844_s10 + $0xf0] sm:$0xff] }
 0x231   : > { %2320 = vst [vmem:[#allocation2 + $0x208] sm:$0xf] %v5797_v50  ;;  %6409 = vset.pattern.permute.xlu1 %v8294_v44  ;;  %v2491_v25 = vpop.permute.xlu1 %2490  ;;  %3161 = vst [vmem:[#allocation2 + $0x30c] sm:$0xf] %v5870_v13  ;;  %v3002_v9 = vmul.f32 %v2957_v17, %v7790_v18 }
 0x232   : > { %v2576_v51 = vmul.f32 %v2491_v25, %v7780_v21  ;;  %2941 = vperm.xlu1 %6409, %v7713_v16  }
 0x233   : > { %v6593_v19 = vld [vmem:[#allocation2 + $0x50] ss:$28 sps:$4 sm:$0xff]   ;;  %v5871_v40 = vpack.c.bf16 %v3002_v9, %v3002_v9 }
 0x234   : > { %v5829_v36 = vpack.c.bf16 %v2576_v51, %v2576_v51  ;;  %v2972_v30 = vpop.permute.xlu0 %2971  ;;  %6253 = vmatmul.mubr.bf16.vlgmr.msra.gmra.mxu1 %v6593_v19  ;;  %v6631_v51 = vld [vmem:[%s6844_s10 + $0xf8] sm:$0xff] }
 0x235   : > { %v2496_v35 = vpop.permute.xlu1 %2495  ;;  %3162 = vst [vmem:[#allocation2 + $0x328] sm:$0xf] %v5871_v40  ;;  %v3005_v49 = vmul.f32 %v2972_v30, %v7688_v28 }
 0x236   : > { %2736 = vst [vmem:[#allocation2 + $0x20c] sm:$0xf] %v5829_v36  ;;  %v2577_v39 = vmul.f32 %v2496_v35, %v7627_v20  ;;  %2946 = vperm.xlu1 %6409, %v7743_v52  }
 0x237   : > { %v5874_v55 = vpack.c.bf16 %v3005_v49, %v3005_v49 }
 0x238   : > { %v5830_v62 = vpack.c.bf16 %v2577_v39, %v2577_v39  ;;  %v6596_v17 = vld [vmem:[#allocation2 + $0x208] ss:$28 sps:$4 sm:$0xff]  }
 0x239   : > { %3165 = vst [vmem:[#allocation2 + $0x37c] sm:$0xf] %v5874_v55 }
 0x23a   : > { %2737 = vst [vmem:[#allocation2 + $0x228] sm:$0xf] %v5830_v62  ;;  %6410 = vset.pattern.permute.xlu1 %v8292_v24  ;;  %v2842_v16 = vpop.permute.xlu1 %2841 }
 0x23b   : > { %v2979_v59 = vmul.f32 %v2842_v16, %v7567_v26  ;;  %2134 = vperm.xlu1 %6410, %v1948_v56  }
 0x23d   : > { %v5848_v50 = vpack.c.bf16 %v2979_v59, %v2979_v59 }
 0x23e   : > { %v2847_v34 = vpop.permute.xlu1 %2846 }
 0x23f   : > { %3139 = vst [vmem:[#allocation2 + $0xa4] sm:$0xf] %v5848_v50  ;;  %v2980_v28 = vmul.f32 %v2847_v34, %v7576_v12  ;;  %6412 = vset.pattern.permute.xlu1 %v8293_v61 }
 0x240   : > { %2550 = vperm.xlu1 %6412, %v1948_v56  }
 0x241   : > { %v6004_v20 = vpop.f32.mrf.mxu1  ;;  %v5849_v52 = vpack.c.bf16 %v2980_v28, %v2980_v28  ;;  %v6594_v13 = vld [vmem:[#allocation2 + $0x20c] ss:$28 sps:$4 sm:$0xff]  }
 0x242   : > { %4744 = vmatprep.mubr.bf16.mxu0 %v6594_v13 }
 0x243   : > { %v6005_v25 = vpop.f32.mrf.mxu1  ;;  %3140 = vst [vmem:[#allocation2 + $0xc0] sm:$0xf] %v5849_v52  ;;  %v2085_v24 = vpop.permute.xlu1 %2084  ;;  %4745 = vmatmul.mubr.bf16.gmra.mxu0 %v6596_v17  ;;  %v6632_v17 = vld [vmem:[%s7012_s24 + $0x48] sm:$0xff] }
 0x244   : > { %v6006_v9 = vadd.f32 %v6005_v25, %v6004_v20  ;;  %v2162_v26 = vmul.f32 %v2085_v24, %v7766_v60  ;;  %2555 = vperm.xlu1 %6412, %v6631_v51   ;;  %v6633_v51 = vld [vmem:[%s7012_s24 + $0x50] sm:$0xff] }
 0x245   : > { %v6007_v19 = vpop.f32.mrf.mxu1 }
 0x246   : > { %v7807_v12 = vadd.f32 %v6006_v9, %v7564_v6  ;;  %v5799_v61 = vpack.c.bf16 %v2162_v26, %v2162_v26  ;;  %v6597_v36 = vld [vmem:[#allocation2 + $0x88] ss:$28 sps:$4 sm:$0xff]  }
 0x247   : > { %v6008_v40 = vpop.f32.mrf.mxu1  ;;  %6256 = vmatprep.mubr.bf16.mxu1 %v6597_v36  ;;  %v7828_v36 = vld [vmem:[%s7012_s24 + $0xb0] sm:$0xff] }
 0x248   : > { %v6009_v30 = vadd.f32 %v6008_v40, %v6007_v19  ;;  %2322 = vst [vmem:[#allocation2 + $0x240] sm:$0xf] %v5799_v61  ;;  %6413 = vset.pattern.permute.xlu1 %v8294_v44  ;;  %v2501_v35 = vpop.permute.xlu1 %2500 }
 0x249   : > { %v6010_v49 = vpop.f32.mrf.mxu1  ;;  %v2578_v39 = vmul.f32 %v2501_v35, %v7766_v60  ;;  %2961 = vperm.xlu1 %6413, %v7783_v29  }
 0x24a   : > { %v7813_v55 = vadd.f32 %v6009_v30, %v7573_v22  ;;  %v6598_v6 = vld [vmem:[#allocation2 + $0xc0] ss:$28 sps:$4 sm:$0xff]  }
 0x24b   : > { %v6011_v62 = vpop.f32.mrf.mxu1  ;;  %v5831_v16 = vpack.c.bf16 %v2578_v39, %v2578_v39  ;;  %6257 = vmatmul.mubr.bf16.gmra.mxu1 %v6598_v6 }
 0x24c   : > { %v6012_v59 = vadd.f32 %v6011_v62, %v6010_v49  ;;  %v2506_v50 = vpop.permute.xlu1 %2505 }
 0x24d   : > { %v6013_v34 = vpop.f32.mrf.mxu1  ;;  %2738 = vst [vmem:[#allocation2 + $0x244] sm:$0xf] %v5831_v16  ;;  %v2579_v44 = vmul.f32 %v2506_v50, %v7634_v46  ;;  %2966 = vperm.xlu1 %6413, %v1948_v56  }
 0x24e   : > { %v7817_v28 = vadd.f32 %v6012_v59, %v7580_v5 }
 0x24f   : > { %v6014_v60 = vpop.f32.mrf.mxu1  ;;  %v5832_v29 = vpack.c.bf16 %v2579_v44, %v2579_v44  ;;  %v6601_v49 = vld [vmem:[#allocation2 + $0x240] ss:$28 sps:$4 sm:$0xff]  }
 0x250   : > { %v6015_v22 = vadd.f32 %v6014_v60, %v6013_v34 }
 0x251   : > { %v6016_v20 = vpop.f32.mrf.mxu1  ;;  %2739 = vst [vmem:[#allocation2 + $0x260] sm:$0xf] %v5832_v29  ;;  %v2862_v52 = vpop.permute.xlu1 %2861 }
 0x252   : > { %v7820_v13 = vadd.f32 %v6015_v22, %v7586_v42  ;;  %v2983_v25 = vmul.f32 %v6632_v17, %v2862_v52 }
 0x253   : > { %v6017_v24 = vpop.f32.mrf.mxu1 }
 0x254   : > { %v6018_v9 = vadd.f32 %v6017_v24, %v6016_v20  ;;  %v5852_v46 = vpack.c.bf16 %v2983_v25, %v2983_v25 }
 0x255   : > { %v6019_v56 = vpop.f32.mrf.mxu1  ;;  %v2867_v26 = vpop.permute.xlu1 %2866 }
 0x256   : > { %v7824_v5 = vadd.f32 %v6018_v9, %v7592_v57  ;;  %3143 = vst [vmem:[#allocation2 + $0x114] sm:$0xf] %v5852_v46  ;;  %v2984_v19 = vmul.f32 %v6633_v51, %v2867_v26 }
 0x257   : > { %v6020_v61 = vpop.f32.mrf.mxu1 }
 0x258   : > { %v6021_v40 = vadd.f32 %v6020_v61, %v6019_v56  ;;  %v5853_v30 = vpack.c.bf16 %v2984_v19, %v2984_v19  ;;  %v6599_v35 = vld [vmem:[#allocation2 + $0x244] ss:$28 sps:$4 sm:$0xff]  }
 0x259   : > { %v6022_v42 = vpop.f32.mrf.mxu1  ;;  %4752 = vmatprep.mubr.bf16.mxu0 %v6599_v35 }
 0x25a   : > { %v7831_v39 = vadd.f32 %v6021_v40, %v7604_v63  ;;  %3144 = vst [vmem:[#allocation2 + $0x130] sm:$0xf] %v5853_v30  ;;  %v2095_v62 = vpop.permute.xlu1 %2094  ;;  %4753 = vmatmul.mubr.bf16.gmra.mxu0 %v6601_v49  ;;  %v6634_v30 = vld [vmem:[%s7012_s24 + $0x68] sm:$0xff] }
 0x25b   : > { %v6023_v6 = vpop.f32.mrf.mxu1  ;;  %v2164_v57 = vmul.f32 %v2095_v62, %v7828_v36 }
 0x25c   : > { %v6024_v16 = vadd.f32 %v6023_v6, %v6022_v42 }
 0x25d   : > { %v6025_v59 = vpop.f32.mrf.mxu1  ;;  %v5801_v50 = vpack.c.bf16 %v2164_v57, %v2164_v57  ;;  %v6602_v44 = vld [vmem:[#allocation2 + $0xf8] ss:$28 sps:$4 sm:$0xff]  }
 0x25e   : > { %v7835_v34 = vadd.f32 %v6024_v16, %v7614_v27  ;;  %6260 = vmatprep.mubr.bf16.mxu1 %v6602_v44 }
 0x25f   : > { %v6026_v60 = vpop.f32.mrf.mxu1  ;;  %2324 = vst [vmem:[#allocation2 + $0x278] sm:$0xf] %v5801_v50  ;;  %v2511_v29 = vpop.permute.xlu1 %2510 }
 0x260   : > { %v6027_v63 = vadd.f32 %v6026_v60, %v6025_v59  ;;  %v2580_v22 = vmul.f32 %v2511_v29, %v7828_v36 }
 0x261   : > { %v6028_v20 = vpop.f32.mrf.mxu1  ;;  %v6603_v17 = vld [vmem:[#allocation2 + $0x130] ss:$28 sps:$4 sm:$0xff]  }
 0x262   : > { %v7839_v52 = vadd.f32 %v6027_v63, %v7624_v14  ;;  %v5833_v25 = vpack.c.bf16 %v2580_v22, %v2580_v22  ;;  %6261 = vmatmul.mubr.bf16.gmra.mxu1 %v6603_v17 }
 0x263   : > { %v6029_v24 = vpop.f32.mrf.mxu1  ;;  %v2516_v9 = vpop.permute.xlu1 %2515 }
 0x264   : > { %v6030_v27 = vadd.f32 %v6029_v24, %v6028_v20  ;;  %2740 = vst [vmem:[#allocation2 + $0x27c] sm:$0xf] %v5833_v25  ;;  %v2581_v46 = vmul.f32 %v2516_v9, %v7641_v33 }
 0x265   : > { %v6031_v56 = vpop.f32.mrf.mxu1 }
 0x266   : > { %v7843_v26 = vadd.f32 %v6030_v27, %v7631_v11  ;;  %v5834_v51 = vpack.c.bf16 %v2581_v46, %v2581_v46  ;;  %v6606_v29 = vld [vmem:[#allocation2 + $0x278] ss:$28 sps:$4 sm:$0xff]  }
 0x267   : > { %v6032_v19 = vpop.f32.mrf.mxu1 }
 0x268   : > { %v6033_v61 = vadd.f32 %v6032_v19, %v6031_v56  ;;  %2741 = vst [vmem:[#allocation2 + $0x298] sm:$0xf] %v5834_v51  ;;  %v2882_v14 = vpop.permute.xlu1 %2881 }
 0x269   : > { %v6034_v40 = vpop.f32.mrf.mxu1  ;;  %v2987_v42 = vmul.f32 %v6634_v30, %v2882_v14 }
 0x26a   : > { %v7847_v35 = vadd.f32 %v6033_v61, %v7644_v31 }
 0x26b   : > { %v6035_v49 = vpop.f32.mrf.mxu1  ;;  %v5856_v62 = vpack.c.bf16 %v2987_v42, %v2987_v42 }
 0x26c   : > { %v6036_v6 = vadd.f32 %v6035_v49, %v6034_v40  ;;  %v2887_v57 = vpop.permute.xlu1 %2886  ;;  %v7865_v49 = vpop.f32.mrf.mxu0 }
 0x26d   : > { %v6037_v33 = vpop.f32.mrf.mxu1  ;;  %3147 = vst [vmem:[#allocation2 + $0x184] sm:$0xf] %v5856_v62  ;;  %v2988_v11 = vmul.f32 %v2887_v57, %v7723_v41 }
 0x26e   : > { %v7851_v16 = vadd.f32 %v6036_v6, %v7649_v47 }
 0x26f   : > { %v6038_v59 = vpop.f32.mrf.mxu1  ;;  %v5857_v50 = vpack.c.bf16 %v2988_v11, %v2988_v11  ;;  %v6604_v60 = vld [vmem:[#allocation2 + $0x27c] ss:$28 sps:$4 sm:$0xff]   ;;  %v7870_v11 = vpop.f32.mrf.mxu0 }
 0x270   : > { %v6039_v44 = vadd.f32 %v6038_v59, %v6037_v33  ;;  %4760 = vmatprep.mubr.bf16.mxu0 %v6604_v60  ;;  %v6635_v59 = vld [vmem:[%s7012_s24 + $0x88] sm:$0xff] }
 0x271   : > { %v6040_v63 = vpop.f32.mrf.mxu1  ;;  %3148 = vst [vmem:[#allocation2 + $0x1a0] sm:$0xf] %v5857_v50  ;;  %v2105_v31 = vpop.permute.xlu1 %2104  ;;  %4761 = vmatmul.mubr.bf16.gmra.mxu0 %v6606_v29 }
 0x272   : > { %v7854_v22 = vadd.f32 %v6039_v44, %v7661_v45  ;;  %v2166_v20 = vmul.f32 %v2105_v31, %v7776_v4 }
 0x273   : > { %v6041_v17 = vpop.f32.mrf.mxu1 }
 0x274   : > { %v6042_v41 = vadd.f32 %v6041_v17, %v6040_v63  ;;  %v5803_v25 = vpack.c.bf16 %v2166_v20, %v2166_v20  ;;  %v6607_v24 = vld [vmem:[#allocation2 + $0x168] ss:$28 sps:$4 sm:$0xff]  }
 0x275   : > { %v6043_v47 = vpop.f32.mrf.mxu1  ;;  %6264 = vmatprep.mubr.bf16.mxu1 %v6607_v24  ;;  %v7881_v24 = vld [vmem:[%s7012_s24 + $0xd0] sm:$0xff] }
 0x276   : > { %v7858_v9 = vadd.f32 %v6042_v41, %v7670_v0  ;;  %2326 = vst [vmem:[#allocation2 + $0x2b0] sm:$0xf] %v5803_v25  ;;  %v2521_v27 = vpop.permute.xlu1 %2520 }
 0x277   : > { %v6044_v46 = vpop.f32.mrf.mxu1  ;;  %v2582_v56 = vmul.f32 %v2521_v27, %v7776_v4 }
 0x278   : > { %v6045_v45 = vadd.f32 %v6044_v46, %v6043_v47  ;;  %v6608_v19 = vld [vmem:[#allocation2 + $0x1a0] ss:$28 sps:$4 sm:$0xff]  }
 0x279   : > { %v6046_v51 = vpop.f32.mrf.mxu1  ;;  %v5835_v61 = vpack.c.bf16 %v2582_v56, %v2582_v56  ;;  %6265 = vmatmul.mubr.bf16.gmra.mxu1 %v6608_v19 }
 0x27a   : > { %v7862_v14 = vadd.f32 %v6045_v45, %v7684_v53  ;;  %v2526_v40 = vpop.permute.xlu1 %2525 }
 0x27b   : > { %v6047_v30 = vpop.f32.mrf.mxu1  ;;  %2742 = vst [vmem:[#allocation2 + $0x2b4] sm:$0xf] %v5835_v61  ;;  %v2583_v0 = vmul.f32 %v2526_v40, %v7652_v1 }
 0x27c   : > { %v6048_v42 = vadd.f32 %v6047_v30, %v6046_v51 }
 0x27d   : > { %v6049_v62 = vpop.f32.mrf.mxu1  ;;  %v5836_v6 = vpack.c.bf16 %v2583_v0, %v2583_v0  ;;  %v6611_v45 = vld [vmem:[#allocation2 + $0x2b0] ss:$28 sps:$4 sm:$0xff]  }
 0x27e   : > { %v7868_v4 = vadd.f32 %v6048_v42, %v7692_v38 }
 0x27f   : > { %v6050_v57 = vpop.f32.mrf.mxu1  ;;  %2743 = vst [vmem:[#allocation2 + $0x2d0] sm:$0xf] %v5836_v6  ;;  %v2902_v33 = vpop.permute.xlu1 %2901 }
 0x280   : > { %v6051_v53 = vadd.f32 %v6050_v57, %v6049_v62  ;;  %v2991_v50 = vmul.f32 %v6635_v59, %v2902_v33 }
 0x281   : > { %v6052_v44 = vpop.f32.mrf.mxu1  ;;  %v6116_v29 = vpop.f32.mrf.mxu0 }
 0x282   : > { %v7874_v1 = vadd.f32 %v6051_v53, %v7700_v48  ;;  %v5860_v60 = vpack.c.bf16 %v2991_v50, %v2991_v50 }
 0x283   : > { %v6053_v63 = vpop.f32.mrf.mxu1  ;;  %v2907_v31 = vpop.permute.xlu1 %2906 }
 0x284   : > { %v6054_v20 = vadd.f32 %v6053_v63, %v6052_v44  ;;  %3151 = vst [vmem:[#allocation2 + $0x1f4] sm:$0xf] %v5860_v60  ;;  %v2992_v38 = vmul.f32 %v2907_v31, %v7780_v21  ;;  %v6117_v17 = vpop.f32.mrf.mxu0 }
 0x285   : > { %v6055_v41 = vpop.f32.mrf.mxu1  ;;  %v6118_v47 = vadd.f32 %v6117_v17, %v6116_v29 }
 0x286   : > { %v7878_v25 = vadd.f32 %v6054_v20, %v7707_v10  ;;  %v5861_v27 = vpack.c.bf16 %v2992_v38, %v2992_v38  ;;  %v6119_v46 = vpop.f32.mrf.mxu0  ;;  %v6609_v56 = vld [vmem:[#allocation2 + $0x2b4] ss:$28 sps:$4 sm:$0xff]  }
 0x287   : > { %v6056_v48 = vpop.f32.mrf.mxu1  ;;  %v7884_v19 = vadd.f32 %v6118_v47, %v7807_v12  ;;  %4768 = vmatprep.mubr.bf16.mxu0 %v6609_v56 }
 0x288   : > { %v6057_v51 = vadd.f32 %v6056_v48, %v6055_v41  ;;  %3152 = vst [vmem:[#allocation2 + $0x210] sm:$0xf] %v5861_v27  ;;  %v2115_v61 = vpop.permute.xlu1 %2114  ;;  %v6120_v21 = vpop.f32.mrf.mxu0  ;;  %4769 = vmatmul.mubr.bf16.gmra.mxu0 %v6611_v45 }
 0x289   : > { %v2168_v40 = vmul.f32 %v2115_v61, %v7881_v24  ;;  %v6121_v30 = vadd.f32 %v6120_v21, %v6119_v46  ;;  %v6058_v0 = vpop.f32.mrf.mxu1  ;;  %v6636_v46 = vld [vmem:[%s7012_s24 + $0xd8] sm:$0xff]  ;;  %v2803_v61 = vld [vmem:[%s7012_s24 + $0xa8] sm:$0xff] }
 0x28a   : > { %v7888_v10 = vadd.f32 %v6057_v51, %v7717_v3  ;;  %v6122_v42 = vpop.f32.mrf.mxu0 }
 0x28b   : > { %v5805_v62 = vpack.c.bf16 %v2168_v40, %v2168_v40  ;;  %v6059_v6 = vpop.f32.mrf.mxu1  ;;  %v6612_v57 = vld [vmem:[#allocation2 + $0x1d8] ss:$28 sps:$4 sm:$0xff]   ;;  %v7891_v33 = vadd.f32 %v6121_v30, %v7813_v55 }
 0x28c   : > { %v6060_v12 = vadd.f32 %v6059_v6, %v6058_v0  ;;  %v6123_v53 = vpop.f32.mrf.mxu0  ;;  %6268 = vmatprep.mubr.bf16.mxu1 %v6612_v57 }
 0x28d   : > { %2328 = vst [vmem:[#allocation2 + $0x2e8] sm:$0xf] %v5805_v62  ;;  %v2531_v59 = vpop.permute.xlu1 %2530  ;;  %v6124_v50 = vadd.f32 %v6123_v53, %v6122_v42  ;;  %v6061_v44 = vpop.f32.mrf.mxu1 }
 0x28e   : > { %v2584_v3 = vmul.f32 %v2531_v59, %v7881_v24  ;;  %v7895_v60 = vadd.f32 %v6060_v12, %v7726_v7  ;;  %v6125_v29 = vpop.f32.mrf.mxu0 }
 0x28f   : > { %v6062_v63 = vpop.f32.mrf.mxu1  ;;  %v6613_v31 = vld [vmem:[#allocation2 + $0x210] ss:$28 sps:$4 sm:$0xff]   ;;  %v7898_v20 = vadd.f32 %v6124_v50, %v7817_v28 }
 0x290   : > { %v5837_v55 = vpack.c.bf16 %v2584_v3, %v2584_v3  ;;  %v6063_v38 = vadd.f32 %v6062_v63, %v6061_v44  ;;  %v6126_v17 = vpop.f32.mrf.mxu0  ;;  %6269 = vmatmul.mubr.bf16.gmra.mxu1 %v6613_v31 }
 0x291   : > { %v2536_v41 = vpop.permute.xlu1 %2535  ;;  %v6127_v47 = vadd.f32 %v6126_v17, %v6125_v29  ;;  %v6064_v27 = vpop.f32.mrf.mxu1 }
 0x292   : > { %2744 = vst [vmem:[#allocation2 + $0x2ec] sm:$0xf] %v5837_v55  ;;  %v2585_v48 = vmul.f32 %v6636_v46, %v2536_v41  ;;  %v7902_v7 = vadd.f32 %v6063_v38, %v7733_v8 }
 0x293   : > { %v6065_v56 = vpop.f32.mrf.mxu1  ;;  %v7905_v45 = vadd.f32 %v6127_v47, %v7820_v13 }
 0x294   : > { %v5838_v28 = vpack.c.bf16 %v2585_v48, %v2585_v48  ;;  %v6066_v51 = vadd.f32 %v6065_v56, %v6064_v27  ;;  %v6616_v17 = vld [vmem:[#allocation2 + $0x2e8] ss:$28 sps:$4 sm:$0xff]  }
 0x295   : > { %v6067_v21 = vpop.f32.mrf.mxu1 }
 0x296   : > { %2745 = vst [vmem:[#allocation2 + $0x308] sm:$0xf] %v5838_v28  ;;  %v7909_v40 = vadd.f32 %v6066_v51, %v7740_v23  ;;  %v2922_v30 = vpop.permute.xlu1 %2921  ;;  %v6128_v42 = vpop.f32.mrf.mxu0 }
 0x297   : > { %v2995_v0 = vmul.f32 %v2922_v30, %v2803_v61  ;;  %v6068_v62 = vpop.f32.mrf.mxu1 }
 0x298   : > { %v6069_v6 = vadd.f32 %v6068_v62, %v6067_v21  ;;  %v6129_v8 = vpop.f32.mrf.mxu0 }
 0x299   : > { %v5864_v57 = vpack.c.bf16 %v2995_v0, %v2995_v0  ;;  %v6070_v12 = vpop.f32.mrf.mxu1  ;;  %v6130_v59 = vadd.f32 %v6129_v8, %v6128_v42 }
 0x29a   : > { %v7912_v53 = vadd.f32 %v6069_v6, %v7749_v2  ;;  %v2927_v13 = vpop.permute.xlu1 %2926  ;;  %v6131_v44 = vpop.f32.mrf.mxu0 }
 0x29b   : > { %3155 = vst [vmem:[#allocation2 + $0x264] sm:$0xf] %v5864_v57  ;;  %v2996_v50 = vmul.f32 %v2927_v13, %v7828_v36  ;;  %v6071_v3 = vpop.f32.mrf.mxu1  ;;  %v7916_v29 = vadd.f32 %v6130_v59, %v7824_v5  ;;  %v5963_v36 = vadd.f32 %v7870_v11, %v7865_v49  ;;  %v7934_v57 = vld [vmem:[%s7012_s24 + $0xe8] sm:$0xff] }
 0x29c   : > { %v6072_v23 = vadd.f32 %v6071_v3, %v6070_v12  ;;  %v6132_v31 = vpop.f32.mrf.mxu0 }
 0x29d   : > { %v5865_v63 = vpack.c.bf16 %v2996_v50, %v2996_v50  ;;  %v6073_v55 = vpop.f32.mrf.mxu1  ;;  %v6614_v38 = vld [vmem:[#allocation2 + $0x2ec] ss:$28 sps:$4 sm:$0xff]   ;;  %v6133_v2 = vadd.f32 %v6132_v31, %v6131_v44 }
 0x29e   : > { %v7919_v41 = vadd.f32 %v6072_v23, %v7755_v43  ;;  %4776 = vmatprep.mubr.bf16.mxu0 %v6614_v38 }
 0x29f   : > { %3156 = vst [vmem:[#allocation2 + $0x280] sm:$0xf] %v5865_v63  ;;  %v2125_v47 = vpop.permute.xlu1 %2124  ;;  %v6074_v27 = vpop.f32.mrf.mxu1  ;;  %4777 = vmatmul.mubr.bf16.gmra.mxu0 %v6616_v17  ;;  %v7925_v48 = vadd.f32 %v6133_v2, %v7831_v39 }
 0x2a0   : > { %v2170_v46 = vmul.f32 %v7790_v18, %v2125_v47  ;;  %v6075_v5 = vadd.f32 %v6074_v27, %v6073_v55  ;;  %v6134_v56 = vpop.f32.mrf.mxu0 }
 0x2a1   : > { %v6076_v28 = vpop.f32.mrf.mxu1 }
 0x2a2   : > { %v5807_v43 = vpack.c.bf16 %v2170_v46, %v2170_v46  ;;  %v7927_v51 = vadd.f32 %v6075_v5, %v5963_v36  ;;  %v6617_v61 = vld [vmem:[#allocation2 + $0x248] ss:$28 sps:$4 sm:$0xff]   ;;  %v6135_v21 = vpop.f32.mrf.mxu0 }
 0x2a3   : > { %v6077_v30 = vpop.f32.mrf.mxu1  ;;  %v6136_v42 = vadd.f32 %v6135_v21, %v6134_v56  ;;  %6272 = vmatprep.mubr.bf16.mxu1 %v6617_v61 }
 0x2a4   : > { %2330 = vst [vmem:[#allocation2 + $0x320] sm:$0xf] %v5807_v43  ;;  %v2541_v0 = vpop.permute.xlu1 %2540  ;;  %v6078_v49 = vadd.f32 %v6077_v30, %v6076_v28  ;;  %v6137_v62 = vpop.f32.mrf.mxu0 }
 0x2a5   : > { %v2586_v11 = vmul.f32 %v7790_v18, %v2541_v0  ;;  %v6079_v6 = vpop.f32.mrf.mxu1  ;;  %v7937_v12 = vadd.f32 %v6136_v42, %v7835_v34  ;;  %v2807_v34 = vld [vmem:[%s7012_s24 + $0xc8] sm:$0xff]  ;;  %v1980_v0 = vld [vmem:[%s7012_s24 + $0xf0] sm:$0xff] }
 0x2a6   : > { %v7931_v39 = vadd.f32 %v6078_v49, %v7667_v15  ;;  %v6618_v8 = vld [vmem:[#allocation2 + $0x280] ss:$28 sps:$4 sm:$0xff]   ;;  %v6138_v59 = vpop.f32.mrf.mxu0 }
 0x2a7   : > { %v5839_v13 = vpack.c.bf16 %v2586_v11, %v2586_v11  ;;  %v6080_v50 = vpop.f32.mrf.mxu1  ;;  %v6139_v3 = vadd.f32 %v6138_v59, %v6137_v62  ;;  %6273 = vmatmul.mubr.bf16.gmra.mxu1 %v6618_v8 }
 0x2a8   : > { %v2546_v44 = vpop.permute.xlu1 %2545  ;;  %v6081_v23 = vadd.f32 %v6080_v50, %v6079_v6 }
 0x2a9   : > { %2746 = vst [vmem:[#allocation2 + $0x324] sm:$0xf] %v5839_v13  ;;  %v2587_v18 = vmul.f32 %v2546_v44, %v7934_v57  ;;  %v6082_v63 = vpop.f32.mrf.mxu1  ;;  %v7944_v31 = vadd.f32 %v6139_v3, %v7839_v52 }
 0x2aa   : > { %v7941_v15 = vadd.f32 %v6081_v23, %v7678_v32 }
 0x2ab   : > { %v5840_v55 = vpack.c.bf16 %v2587_v18, %v2587_v18  ;;  %v6083_v38 = vpop.f32.mrf.mxu1  ;;  %v6621_v11 = vld [vmem:[#allocation2 + $0x320] ss:$28 sps:$4 sm:$0xff]  }
 0x2ac   : > { %v6084_v17 = vadd.f32 %v6083_v38, %v6082_v63  ;;  %v2397_v63 = vld [vmem:[%s7012_s24 + $0xf8] sm:$0xff] }
 0x2ad   : > { %2747 = vst [vmem:[#allocation2 + $0x340] sm:$0xf] %v5840_v55  ;;  %v2942_v2 = vpop.permute.xlu1 %2941  ;;  %v6085_v47 = vpop.f32.mrf.mxu1 }
 0x2ae   : > { %v2999_v27 = vmul.f32 %v2942_v2, %v2807_v34  ;;  %v7948_v36 = vadd.f32 %v6084_v17, %v7694_v54 }
 0x2af   : > { %v6140_v46 = vpop.f32.mrf.mxu0  ;;  %v6086_v5 = vpop.f32.mrf.mxu1 }
 0x2b0   : > { %v5868_v56 = vpack.c.bf16 %v2999_v27, %v2999_v27  ;;  %v6087_v32 = vadd.f32 %v6086_v5, %v6085_v47 }
 0x2b1   : > { %v2947_v28 = vpop.permute.xlu1 %2946  ;;  %v6141_v43 = vpop.f32.mrf.mxu0 }
 0x2b2   : > { %3159 = vst [vmem:[#allocation2 + $0x2d4] sm:$0xf] %v5868_v56  ;;  %v3000_v52 = vmul.f32 %v2947_v28, %v7881_v24  ;;  %v7952_v61 = vadd.f32 %v6087_v32, %v7702_v37  ;;  %v6142_v21 = vadd.f32 %v6141_v43, %v6140_v46 }
 0x2b3   : > { %v6143_v30 = vpop.f32.mrf.mxu0 }
 0x2b4   : > { %v5869_v42 = vpack.c.bf16 %v3000_v52, %v3000_v52  ;;  %v6619_v49 = vld [vmem:[#allocation2 + $0x324] ss:$28 sps:$4 sm:$0xff]   ;;  %v7956_v54 = vadd.f32 %v6142_v21, %v7843_v26 }
 0x2b5   : > { %v6144_v62 = vpop.f32.mrf.mxu0  ;;  %4784 = vmatprep.mubr.bf16.mxu0 %v6619_v49 }
 0x2b6   : > { %3160 = vst [vmem:[#allocation2 + $0x2f0] sm:$0xf] %v5869_v42  ;;  %v2135_v6 = vpop.permute.xlu1 %2134  ;;  %v6145_v8 = vadd.f32 %v6144_v62, %v6143_v30  ;;  %4785 = vmatmul.mubr.bf16.gmra.mxu0 %v6621_v11 }
 0x2b7   : > { %v2172_v13 = vmul.f32 %v2135_v6, %v1980_v0 }
 0x2b8   : > { %v7959_v37 = vadd.f32 %v6145_v8, %v7847_v35  ;;  %v6146_v59 = vpop.f32.mrf.mxu0 }
 0x2b9   : > { %v5809_v24 = vpack.c.bf16 %v2172_v13, %v2172_v13  ;;  %v6622_v50 = vld [vmem:[#allocation2 + $0x2b8] ss:$28 sps:$4 sm:$0xff]  }
 0x2ba   : > { %v6147_v3 = vpop.f32.mrf.mxu0  ;;  %6276 = vmatprep.mubr.bf16.mxu1 %v6622_v50 }
 0x2bb   : > { %2332 = vst [vmem:[#allocation2 + $0x358] sm:$0xf] %v5809_v24  ;;  %v2551_v44 = vpop.permute.xlu1 %2550  ;;  %v6148_v23 = vadd.f32 %v6147_v3, %v6146_v59 }
 0x2bc   : > { %v2588_v26 = vmul.f32 %v2551_v44, %v1980_v0  ;;  %v6149_v18 = vpop.f32.mrf.mxu0 }
 0x2bd   : > { %v6623_v55 = vld [vmem:[#allocation2 + $0x2f0] ss:$28 sps:$4 sm:$0xff]   ;;  %v7963_v38 = vadd.f32 %v6148_v23, %v7851_v16 }
 0x2be   : > { %v5841_v34 = vpack.c.bf16 %v2588_v26, %v2588_v26  ;;  %v6150_v2 = vpop.f32.mrf.mxu0  ;;  %6277 = vmatmul.mubr.bf16.gmra.mxu1 %v6623_v55 }
 0x2bf   : > { %v2556_v17 = vpop.permute.xlu1 %2555  ;;  %v6151_v47 = vadd.f32 %v6150_v2, %v6149_v18 }
 0x2c0   : > { %2748 = vst [vmem:[#allocation2 + $0x35c] sm:$0xf] %v5841_v34  ;;  %v2589_v35 = vmul.f32 %v2556_v17, %v2397_v63 }
 0x2c1   : > { %v7966_v46 = vadd.f32 %v6151_v47, %v7854_v22 }
 0x2c2   : > { %v5842_v27 = vpack.c.bf16 %v2589_v35, %v2589_v35  ;;  %v6626_v11 = vld [vmem:[#allocation2 + $0x358] ss:$28 sps:$4 sm:$0xff]  }
 0x2c4   : > { %2749 = vst [vmem:[#allocation2 + $0x378] sm:$0xf] %v5842_v27  ;;  %v2962_v5 = vpop.permute.xlu1 %2961 }
 0x2c5   : > { %v3003_v56 = vmul.f32 %v2962_v5, %v7934_v57  ;;  %v8296_v5 = vld [vmem:[#allocation11_spill] sm:$0xff] }
 0x2c6   : > { %v6152_v28 = vpop.f32.mrf.mxu0 }
 0x2c7   : > { %v5872_v32 = vpack.c.bf16 %v3003_v56, %v3003_v56 }
 0x2c8   : > { %v2967_v43 = vpop.permute.xlu1 %2966  ;;  %v6153_v52 = vpop.f32.mrf.mxu0 }
 0x2c9   : > { %3163 = vst [vmem:[#allocation2 + $0x344] sm:$0xf] %v5872_v32  ;;  %v3004_v16 = vmul.f32 %v2967_v43, %v1980_v0  ;;  %v6154_v21 = vadd.f32 %v6153_v52, %v6152_v28 }
 0x2ca   : > { %v6155_v42 = vpop.f32.mrf.mxu0 }
 0x2cb   : > { %v5873_v30 = vpack.c.bf16 %v3004_v16, %v3004_v16  ;;  %v6624_v49 = vld [vmem:[#allocation2 + $0x35c] ss:$28 sps:$4 sm:$0xff]   ;;  %v6088_v62 = vpop.f32.mrf.mxu1  ;;  %v7970_v6 = vadd.f32 %v6154_v21, %v7858_v9  ;;  %v8295_v9 = vld [vmem:[#allocation10_spill] sm:$0xff] }
 0x2cc   : > { %v6156_v22 = vpop.f32.mrf.mxu0  ;;  %4792 = vmatprep.mubr.bf16.mxu0 %v6624_v49 }
 0x2cd   : > { %3164 = vst [vmem:[#allocation2 + $0x360] sm:$0xf] %v5873_v30  ;;  %v6157_v8 = vadd.f32 %v6156_v22, %v6155_v42  ;;  %v6089_v57 = vpop.f32.mrf.mxu1  ;;  %4793 = vmatmul.mubr.bf16.gmra.mxu0 %v6626_v11 }
 0x2ce   : > { %v6090_v13 = vadd.f32 %v6089_v57, %v6088_v62 }
 0x2cf   : > { %v6091_v24 = vpop.f32.mrf.mxu1  ;;  %v4726_v0 = vadd.f32 %v6157_v8, %v7862_v14 }
 0x2d0   : > { %v6627_v59 = vld [vmem:[#allocation2 + $0x328] ss:$28 sps:$4 sm:$0xff]   ;;  %v7974_v50 = vadd.f32 %v6090_v13, %v7709_v58 }
 0x2d1   : > { %v6092_v44 = vpop.f32.mrf.mxu1  ;;  %6280 = vmatprep.mubr.bf16.mxu1 %v6627_v59 }
 0x2d2   : > { %v6093_v3 = vadd.f32 %v6092_v44, %v6091_v24 }
 0x2d4   : > { %v6628_v26 = vld [vmem:[#allocation2 + $0x360] ss:$28 sps:$4 sm:$0xff]   ;;  %v7977_v23 = vadd.f32 %v6093_v3, %v8295_v9 }
 0x2d5   : > { %6281 = vmatmul.mubr.bf16.gmra.mxu1 %v6628_v26 }
 0x2d9   : > { %v6158_v18 = vpop.f32.mrf.mxu0 }
 0x2db   : > { %v6159_v63 = vpop.f32.mrf.mxu0 }
 0x2dc   : > { %v6160_v55 = vadd.f32 %v6159_v63, %v6158_v18 }
 0x2dd   : > { %v6161_v34 = vpop.f32.mrf.mxu0 }
 0x2de   : > { %v4731_v2 = vadd.f32 %v6160_v55, %v7868_v4 }
 0x2df   : > { %v6094_v17 = vpop.f32.mrf.mxu1  ;;  %v6162_v35 = vpop.f32.mrf.mxu0 }
 0x2e0   : > { %v6163_v14 = vadd.f32 %v6162_v35, %v6161_v34 }
 0x2e1   : > { %v6095_v47 = vpop.f32.mrf.mxu1 }
 0x2e2   : > { %v6096_v58 = vadd.f32 %v6095_v47, %v6094_v17  ;;  %v4734_v27 = vadd.f32 %v6163_v14, %v7874_v1 }
 0x2e3   : > { %v7984_v32 = vpop.f32.mrf.mxu1 }
 0x2e4   : > { %v7982_v56 = vadd.f32 %v6096_v58, %v8296_v5 }
 0x2e5   : > { %v7986_v28 = vpop.f32.mrf.mxu1 }
 0x2ec   : > { %v6164_v59 = vpop.f32.mrf.mxu0 }
 0x2ee   : > { %v6165_v3 = vpop.f32.mrf.mxu0 }
 0x2f4   : > { %v6254_v43 = vpop.f32.mrf.mxu1 }
 0x2f5   : > { %v7989_v16 = vadd.f32 %v6254_v43, %v7898_v20 }
 0x2f6   : > { %v4835_v52 = vpop.f32.mrf.mxu1 }
 0x2f7   : > { %v7992_v4 = vadd.f32 %v4835_v52, %v7884_v19  ;;  %v6166_v52 = vadd.f32 %v6165_v3, %v6164_v59 }
 0x2f8   : > { %v6255_v21 = vpop.f32.mrf.mxu1 }
 0x2f9   : > { %v7995_v30 = vadd.f32 %v6255_v21, %v7905_v45 }
 0x2fa   : > { %v4838_v1 = vpop.f32.mrf.mxu1 }
 0x2fb   : > { %v7998_v42 = vadd.f32 %v4838_v1, %v7891_v33 }
 0x30b   : > { %v6258_v49 = vpop.f32.mrf.mxu1 }
 0x30c   : > { %v8001_v11 = vadd.f32 %v6258_v49, %v7937_v12 }
 0x30d   : > { %v4851_v62 = vpop.f32.mrf.mxu1 }
 0x30e   : > { %v8004_v20 = vadd.f32 %v4851_v62, %v7916_v29 }
 0x30f   : > { %v6259_v22 = vpop.f32.mrf.mxu1 }
 0x310   : > { %v8007_v19 = vadd.f32 %v6259_v22, %v7944_v31 }
 0x311   : > { %v4854_v8 = vpop.f32.mrf.mxu1 }
 0x312   : > { %v8010_v45 = vadd.f32 %v4854_v8, %v7925_v48  ;;  %v6167_v48 = vpop.f32.mrf.mxu0 }
 0x314   : > { %v6168_v26 = vpop.f32.mrf.mxu0 }
 0x316   : > { %v6170_v9 = vpop.f32.mrf.mxu0 }
 0x322   : > { %v6262_v57 = vpop.f32.mrf.mxu1 }
 0x323   : > { %v8013_v33 = vadd.f32 %v6262_v57, %v7963_v38  ;;  %v6171_v38 = vpop.f32.mrf.mxu0 }
 0x324   : > { %v4867_v13 = vpop.f32.mrf.mxu1  ;;  %v6172_v5 = vadd.f32 %v6171_v38, %v6170_v9 }
 0x325   : > { %v8016_v12 = vadd.f32 %v4867_v13, %v7956_v54 }
 0x326   : > { %v6263_v24 = vpop.f32.mrf.mxu1 }
 0x327   : > { %v8019_v29 = vadd.f32 %v6263_v24, %v7966_v46  ;;  %v6173_v46 = vpop.f32.mrf.mxu0 }
 0x328   : > { %v4870_v44 = vpop.f32.mrf.mxu1 }
 0x329   : > { %v8022_v31 = vadd.f32 %v4870_v44, %v7959_v37  ;;  %v6174_v37 = vpop.f32.mrf.mxu0 }
 0x32a   : > { %v6175_v21 = vadd.f32 %v6174_v37, %v6173_v46 }
 0x32b   : > { %v6176_v47 = vpop.f32.mrf.mxu0 }
 0x32c   : > { %v4750_v57 = vadd.f32 %v6175_v21, %v7902_v7 }
 0x32d   : > { %v6177_v58 = vpop.f32.mrf.mxu0 }
 0x32f   : > { %v6179_v43 = vpop.f32.mrf.mxu0 }
 0x331   : > { %v6180_v1 = vpop.f32.mrf.mxu0 }
 0x332   : > { %v6181_v7 = vadd.f32 %v6180_v1, %v6179_v43 }
 0x333   : > { %v6182_v22 = vpop.f32.mrf.mxu0 }
 0x335   : > { %v6183_v44 = vpop.f32.mrf.mxu0 }
 0x339   : > { %v6266_v18 = vpop.f32.mrf.mxu1 }
 0x33a   : > { %v8024_v63 = vadd.f32 %v6266_v18, %v4731_v2  ;;  %v4747_v2 = vadd.f32 %v6172_v5, %v7895_v60  ;;  %v6184_v18 = vadd.f32 %v6183_v44, %v6182_v22 }
 0x33b   : > { %v4883_v55 = vpop.f32.mrf.mxu1 }
 0x33c   : > { %v8027_v54 = vadd.f32 %v4883_v55, %v7970_v6  ;;  %v6169_v6 = vadd.f32 %v6168_v26, %v6167_v48  ;;  %v6185_v48 = vpop.f32.mrf.mxu0 }
 0x33d   : > { %v6267_v34 = vpop.f32.mrf.mxu1 }
 0x33e   : > { %v8029_v17 = vadd.f32 %v6267_v34, %v4734_v27  ;;  %v4739_v27 = vadd.f32 %v6166_v52, %v7878_v25  ;;  %v4742_v59 = vadd.f32 %v6169_v6, %v7888_v10  ;;  %v6186_v26 = vpop.f32.mrf.mxu0  ;;  %v6178_v25 = vadd.f32 %v6177_v58, %v6176_v47 }
 0x33f   : > { %v4886_v35 = vpop.f32.mrf.mxu1  ;;  %v6187_v55 = vadd.f32 %v6186_v26, %v6185_v48  ;;  %v4763_v34 = vadd.f32 %v6184_v18, %v7919_v41  ;;  %v4758_v47 = vadd.f32 %v6181_v7, %v7912_v53 }
 0x340   : > { %v8031_v14 = vadd.f32 %v4886_v35, %v4726_v0  ;;  %v4755_v10 = vadd.f32 %v6178_v25, %v7909_v40 }
 0x341   : > { %v4766_v21 = vadd.f32 %v6187_v55, %v7927_v51 }
 0x348   : > { %v6188_v9 = vpop.f32.mrf.mxu0 }
 0x34a   : > { %v6189_v38 = vpop.f32.mrf.mxu0 }
 0x34b   : > { %v6190_v40 = vadd.f32 %v6189_v38, %v6188_v9 }
 0x34c   : > { %v6191_v35 = vpop.f32.mrf.mxu0 }
 0x34d   : > { %v4771_v48 = vadd.f32 %v6190_v40, %v7931_v39 }
 0x350   : > { %v6270_v49 = vpop.f32.mrf.mxu1 }
 0x351   : > { %v8034_v62 = vadd.f32 %v6270_v49, %v4747_v2  ;;  %v6192_v49 = vpop.f32.mrf.mxu0 }
 0x352   : > { %v4899_v8 = vpop.f32.mrf.mxu1  ;;  %v6193_v51 = vadd.f32 %v6192_v49, %v6191_v35 }
 0x353   : > { %v8037_v0 = vadd.f32 %v4899_v8, %v4739_v27 }
 0x354   : > { %v6271_v13 = vpop.f32.mrf.mxu1  ;;  %v4774_v9 = vadd.f32 %v6193_v51, %v7941_v15  ;;  %v8297_v15 = vld [vmem:[#allocation12_spill] sm:$0xff] }
 0x355   : > { %v8040_v24 = vadd.f32 %v6271_v13, %v4750_v57 }
 0x356   : > { %v4902_v60 = vpop.f32.mrf.mxu1 }
 0x357   : > { %v8043_v3 = vadd.f32 %v4902_v60, %v4742_v59 }
 0x35f   : > { %v6194_v41 = vpop.f32.mrf.mxu0 }
 0x361   : > { %v6195_v43 = vpop.f32.mrf.mxu0 }
 0x362   : > { %v6196_v22 = vadd.f32 %v6195_v43, %v6194_v41 }
 0x363   : > { %v6197_v1 = vpop.f32.mrf.mxu0 }
 0x364   : > { %v4779_v13 = vadd.f32 %v6196_v22, %v7948_v36 }
 0x365   : > { %v6198_v8 = vpop.f32.mrf.mxu0 }
 0x366   : > { %v6199_v57 = vadd.f32 %v6198_v8, %v6197_v1 }
 0x367   : > { %v6274_v46 = vpop.f32.mrf.mxu1 }
 0x368   : > { %v8046_v37 = vadd.f32 %v6274_v46, %v4763_v34  ;;  %v4782_v18 = vadd.f32 %v6199_v57, %v7952_v61 }
 0x369   : > { %v4915_v5 = vpop.f32.mrf.mxu1 }
 0x36a   : > { %v8049_v52 = vadd.f32 %v4915_v5, %v4755_v10 }
 0x36b   : > { %v6275_v2 = vpop.f32.mrf.mxu1 }
 0x36c   : > { %v8052_v6 = vadd.f32 %v6275_v2, %v4766_v21  ;;  %v6099_v21 = vadd.f32 %v7986_v28, %v7984_v32 }
 0x36d   : > { %v4918_v58 = vpop.f32.mrf.mxu1 }
 0x36e   : > { %v8055_v27 = vadd.f32 %v4918_v58, %v4758_v47  ;;  %v4637_v41 = vadd.f32 %v6099_v21, %v8297_v15 }
 0x376   : > { %v6200_v44 = vpop.f32.mrf.mxu0 }
 0x378   : > { %v6201_v55 = vpop.f32.mrf.mxu0 }
 0x379   : > { %v6202_v2 = vadd.f32 %v6201_v55, %v6200_v44 }
 0x37a   : > { %v6203_v46 = vpop.f32.mrf.mxu0 }
 0x37b   : > { %v4787_v22 = vadd.f32 %v6202_v2, %v7974_v50 }
 0x37c   : > { %v6204_v7 = vpop.f32.mrf.mxu0 }
 0x37d   : > { %v6205_v43 = vadd.f32 %v6204_v7, %v6203_v46 }
 0x37e   : > { %v6278_v59 = vpop.f32.mrf.mxu1 }
 0x37f   : > { %v8058_v60 = vadd.f32 %v6278_v59, %v4779_v13  ;;  %v4790_v28 = vadd.f32 %v6205_v43, %v7977_v23 }
 0x380   : > { %v4931_v53 = vpop.f32.mrf.mxu1 }
 0x381   : > { %v8061_v26 = vadd.f32 %v4931_v53, %v4771_v48 }
 0x382   : > { %v6279_v25 = vpop.f32.mrf.mxu1 }
 0x383   : > { %v8064_v34 = vadd.f32 %v6279_v25, %v4782_v18 }
 0x384   : > { %v4934_v38 = vpop.f32.mrf.mxu1 }
 0x385   : > { %v8067_v36 = vadd.f32 %v4934_v38, %v4774_v9 }
 0x38d   : > { %v6206_v35 = vpop.f32.mrf.mxu0 }
 0x38f   : > { %v6207_v10 = vpop.f32.mrf.mxu0 }
 0x390   : > { %v6208_v5 = vadd.f32 %v6207_v10, %v6206_v35 }
 0x391   : > { %v6209_v39 = vpop.f32.mrf.mxu0 }
 0x392   : > { %v4795_v47 = vadd.f32 %v6208_v5, %v7982_v56 }
 0x393   : > { %v6210_v61 = vpop.f32.mrf.mxu0 }
 0x394   : > { %v6211_v49 = vadd.f32 %v6210_v61, %v6209_v39 }
 0x395   : > { %v6282_v58 = vpop.f32.mrf.mxu1 }
 0x396   : > { %v8073_v1 = vadd.f32 %v6282_v58, %v4795_v47  ;;  %v4798_v57 = vadd.f32 %v6211_v49, %v4637_v41 }
 0x397   : > { %v4947_v8 = vpop.f32.mrf.mxu1 }
 0x398   : > { %v8076_v40 = vadd.f32 %v4947_v8, %v4787_v22  ;;  %4965 = sbr.rel (%p8298_p6) target bundleno = 941 (0x3ad), region = 40 }
 0x399   : > { %v6283_v13 = vpop.f32.mrf.mxu1 }
 0x39a   : > { %v4959_v32 = vadd.f32 %v6283_v13, %v4798_v57 }
 0x39b   : > { %v4950_v59 = vpop.f32.mrf.mxu1 }
 0x39c   : > { %v8079_v51 = vadd.f32 %v4950_v59, %v4790_v28 }
 0x39d   : > { %4966 = vst [vmem:[%s8082_s25] sm:$0xff] %v7992_v4  ;;  %4967 = vst [vmem:[%s8082_s25 + $0x8] sm:$0xff] %v7998_v42 }
 0x39e   : > { %4968 = vst [vmem:[%s8082_s25 + $0x10] sm:$0xff] %v7989_v16  ;;  %4969 = vst [vmem:[%s8082_s25 + $0x18] sm:$0xff] %v7995_v30 }
 0x39f   : > { %4970 = vst [vmem:[%s8082_s25 + $0x20] sm:$0xff] %v8004_v20  ;;  %4971 = vst [vmem:[%s8082_s25 + $0x28] sm:$0xff] %v8010_v45 }
 0x3a0   : > { %4972 = vst [vmem:[%s8082_s25 + $0x30] sm:$0xff] %v8001_v11  ;;  %4973 = vst [vmem:[%s8082_s25 + $0x38] sm:$0xff] %v8007_v19 }
 0x3a1   : > { %4974 = vst [vmem:[%s8082_s25 + $0x40] sm:$0xff] %v8016_v12  ;;  %4975 = vst [vmem:[%s8082_s25 + $0x48] sm:$0xff] %v8022_v31 }
 0x3a2   : > { %4976 = vst [vmem:[%s8082_s25 + $0x50] sm:$0xff] %v8013_v33  ;;  %4977 = vst [vmem:[%s8082_s25 + $0x58] sm:$0xff] %v8019_v29 }
 0x3a3   : > { %4978 = vst [vmem:[%s8082_s25 + $0x60] sm:$0xff] %v8027_v54  ;;  %4979 = vst [vmem:[%s8082_s25 + $0x68] sm:$0xff] %v8031_v14 }
 0x3a4   : > { %4980 = vst [vmem:[%s8082_s25 + $0x70] sm:$0xff] %v8024_v63  ;;  %4981 = vst [vmem:[%s8082_s25 + $0x78] sm:$0xff] %v8029_v17 }
 0x3a5   : > { %4982 = vst [vmem:[%s8082_s25 + $0x80] sm:$0xff] %v8037_v0  ;;  %4983 = vst [vmem:[%s8082_s25 + $0x88] sm:$0xff] %v8043_v3 }
 0x3a6   : > { %4984 = vst [vmem:[%s8082_s25 + $0x90] sm:$0xff] %v8034_v62  ;;  %4985 = vst [vmem:[%s8082_s25 + $0x98] sm:$0xff] %v8040_v24 }
 0x3a7   : > { %4986 = vst [vmem:[%s8082_s25 + $0xa0] sm:$0xff] %v8049_v52  ;;  %4987 = vst [vmem:[%s8082_s25 + $0xa8] sm:$0xff] %v8055_v27 }
 0x3a8   : > { %4988 = vst [vmem:[%s8082_s25 + $0xb0] sm:$0xff] %v8046_v37  ;;  %4989 = vst [vmem:[%s8082_s25 + $0xb8] sm:$0xff] %v8052_v6 }
 0x3a9   : > { %4990 = vst [vmem:[%s8082_s25 + $0xc0] sm:$0xff] %v8061_v26  ;;  %4991 = vst [vmem:[%s8082_s25 + $0xc8] sm:$0xff] %v8067_v36 }
 0x3aa   : > { %4992 = vst [vmem:[%s8082_s25 + $0xd0] sm:$0xff] %v8058_v60  ;;  %4993 = vst [vmem:[%s8082_s25 + $0xd8] sm:$0xff] %v8064_v34 }
 0x3ab   : > { %4994 = vst [vmem:[%s8082_s25 + $0xe0] sm:$0xff] %v8076_v40  ;;  %4995 = vst [vmem:[%s8082_s25 + $0xe8] sm:$0xff] %v8079_v51 }
 0x3ac   : > { %4996 = vst [vmem:[%s8082_s25 + $0xf0] sm:$0xff] %v8073_v1  ;;  %4997 = vst [vmem:[%s8082_s25 + $0xf8] sm:$0xff] %v4959_v32 }
 0x3ad PF: > { %p5641_p8 = scmp.ne.s32.totalorder %s6784_s16, 1 }
 0x3af   : > { %5001 = sbr.rel (%p5641_p8) target bundleno = 964 (0x3c4), region = 44 }
 0x3b4   : > { %5099 = vst [vmem:[%s8082_s25] sm:$0xff] %v7992_v4  ;;  %5100 = vst [vmem:[%s8082_s25 + $0x8] sm:$0xff] %v7998_v42  ;;  %v5002_v50 = vlaneseq  ;;  %v6739_v23 = vmov 0.0  }
 0x3b5   : > { %5101 = vst [vmem:[%s8082_s25 + $0x10] sm:$0xff] %v7989_v16  ;;  %5102 = vst [vmem:[%s8082_s25 + $0x18] sm:$0xff] %v7995_v30 }
 0x3b6   : > { %5103 = vst [vmem:[%s8082_s25 + $0x20] sm:$0xff] %v8004_v20  ;;  %5104 = vst [vmem:[%s8082_s25 + $0x28] sm:$0xff] %v8010_v45  ;;  %v5003_v56 = vshrl.u32 %v5002_v50, 7 }
 0x3b7   : > { %5105 = vst [vmem:[%s8082_s25 + $0x30] sm:$0xff] %v8001_v11  ;;  %5106 = vst [vmem:[%s8082_s25 + $0x38] sm:$0xff] %v8007_v19 }
 0x3b8   : > { %5107 = vst [vmem:[%s8082_s25 + $0x40] sm:$0xff] %v8016_v12  ;;  %5108 = vst [vmem:[%s8082_s25 + $0x48] sm:$0xff] %v8022_v31  ;;  %v5033_v16 = vadd.s32 240, %v5003_v56 }
 0x3b9   : > { %5109 = vst [vmem:[%s8082_s25 + $0x50] sm:$0xff] %v8013_v33  ;;  %5110 = vst [vmem:[%s8082_s25 + $0x58] sm:$0xff] %v8019_v29 }
 0x3ba   : > { %5111 = vst [vmem:[%s8082_s25 + $0x60] sm:$0xff] %v8027_v54  ;;  %5112 = vst [vmem:[%s8082_s25 + $0x68] sm:$0xff] %v8031_v14  ;;  %vm5065_vm0 = vcmp.lt.s32.totalorder %v5033_v16, 244 }
 0x3bb   : > { %5113 = vst [vmem:[%s8082_s25 + $0x70] sm:$0xff] %v8024_v63  ;;  %5114 = vst [vmem:[%s8082_s25 + $0x78] sm:$0xff] %v8029_v17  ;;  %v5097_v4 = vsel %vm5065_vm0, %v8073_v1, 0.0 }
 0x3bc   : > { %5115 = vst [vmem:[%s8082_s25 + $0x80] sm:$0xff] %v8037_v0  ;;  %5116 = vst [vmem:[%s8082_s25 + $0x88] sm:$0xff] %v8043_v3 }
 0x3bd   : > { %5117 = vst [vmem:[%s8082_s25 + $0x90] sm:$0xff] %v8034_v62  ;;  %5118 = vst [vmem:[%s8082_s25 + $0x98] sm:$0xff] %v8040_v24 }
 0x3be   : > { %5119 = vst [vmem:[%s8082_s25 + $0xa0] sm:$0xff] %v8049_v52  ;;  %5120 = vst [vmem:[%s8082_s25 + $0xa8] sm:$0xff] %v8055_v27 }
 0x3bf   : > { %5121 = vst [vmem:[%s8082_s25 + $0xb0] sm:$0xff] %v8046_v37  ;;  %5122 = vst [vmem:[%s8082_s25 + $0xb8] sm:$0xff] %v8052_v6 }
 0x3c0   : > { %5123 = vst [vmem:[%s8082_s25 + $0xc0] sm:$0xff] %v8061_v26  ;;  %5124 = vst [vmem:[%s8082_s25 + $0xc8] sm:$0xff] %v8067_v36 }
 0x3c1   : > { %5125 = vst [vmem:[%s8082_s25 + $0xd0] sm:$0xff] %v8058_v60  ;;  %5126 = vst [vmem:[%s8082_s25 + $0xd8] sm:$0xff] %v8064_v34 }
 0x3c2   : > { %5127 = vst [vmem:[%s8082_s25 + $0xe0] sm:$0xff] %v8076_v40  ;;  %5128 = vst [vmem:[%s8082_s25 + $0xe8] sm:$0xff] %v8079_v51 }
 0x3c3   : > { %5130 = vst [vmem:[%s8082_s25 + $0xf8] sm:$0xff] %v6739_v23  ;;  %5129 = vst [vmem:[%s8082_s25 + $0xf0] sm:$0xff] %v5097_v4 }
 0x3c4 PF: > { %s8215_s26 = scalar_lea.sflag [#allocation6], %s217_s11  ;;  %5138 = sbr.rel (!%p6803_p5) target bundleno = 996 (0x3e4), region = 48 }
 0x3c5   : > { %s5140_s27 = ssub.s32 (%p6803_p5), 63, %s6832_s5 }
 0x3c6   : > { %p5141_p9 = scmp.lt.s32.totalorder (%p6803_p5), %s5140_s27, 32 }
 0x3c9   : > { %s8305_s27 = smov (!%p5141_p9, %s5140_s27), 32 }
 0x3ca   : > { %s8220_s28 = sshll.u32 %s8305_s27, 7 }
 0x3cb   : > { %s5145_s29 = ssub.s32 4096, %s8220_s28 }
 0x3cc   : > { %5146 = vsyncadd %s8215_s26, %s5145_s29  ;;  %p5645_p10 = scmp.ne.s32.totalorder %s8220_s28, 0  ;;  %s5875_s30 = sshll.u32 %s6784_s16, 12 }
 0x3cd   : > { %s8229_s6 = scalar_lea.hbm %s8278_s3, %s5875_s30  ;;  %s5151_s5 = sshll.u32 %s8082_s25, 4  ;;  %s8232_s5 = int_to_ptr.vmem [resolvable:$true] %s5151_s5 }
 0x3ce   : > { %s6663_s7 = scalar_lea.vmem %s8232_s5, %s8220_s28  ;;  %s6740_s8 = smov [#allocation7]  }
 0x3cf   : > { %p6664_p5 = scmp.ne.s32.totalorder %s8232_s5, %s6663_s7  ;;  %s6667_s9 = sshll.u32 %s6740_s8, 4  ;;  %s6668_s9 = int_to_ptr.vmem [resolvable:$false] %s6667_s9 }
 0x3d0   : > { %s6669_s16 = scalar_lea.vmem %s6668_s9, 8192  ;;  %p6670_p13 = scmp.lt.s32.totalorder %s8232_s5, %s6668_s9 }
 0x3d1   : > { %p6665_p11 = pnand %p6664_p5, %p5645_p10  ;;  %p6671_p0 = scmp.lt.s32.totalorder %s6669_s16, %s6663_s7 }
 0x3d3   : > { %p6666_p12 = pneg %p6665_p11  ;;  %p6672_p1 = por %p6671_p0, %p6670_p13 }
 0x3d5   : > { %p6673_p3 = pnand %p6672_p1, %p6666_p12 }
 0x3d7   : > { %6676 = shalt.err (!%p6673_p3)
}
 0x3d8   : > { %s6677_s10 = scalar_lea.hbm %s8229_s6, %s8220_s28  ;;  %s6681_s19 = scalar_lea.hbm %s8278_s3, 8064 }
 0x3d9   : > { %p6678_p4 = scmp.ne.s32.totalorder %s8229_s6, %s6677_s10  ;;  %p6682_p6 = scmp.lt.s32.totalorder %s8229_s6, %s8278_s3 }
 0x3da   : > { %p6683_p8 = scmp.lt.s32.totalorder %s6681_s19, %s6677_s10 }
 0x3db   : > { %p6679_p7 = pnand %p6678_p4, %p5645_p10 }
 0x3dc   : > { %p6684_p9 = por %p6683_p8, %p6682_p6 }
 0x3dd   : > { %p6680_p2 = pneg %p6679_p7 }
 0x3df   : > { %p6685_p5 = pnand %p6684_p9, %p6680_p2 }
 0x3e1   : > { %6688 = shalt.err (!%p6685_p5)
}
 0x3e2   : > { %s6741_s25 = smov 128   ;;  %s6742_s27 = smov 8  }
 0x3e3   : > { %5157 = dma.vmem_to_hbm [thread:$0]  (%p5645_p10), %s8232_s5, %s8220_s28, %s8229_s6, %s8215_s26, %s6741_s25, %s6741_s25, %s6742_s27  }
 0x3e4 PF: > { %p6315_p11 = scmp.ge.s32.totalorder %s6727_s15, 2  ;;  %s5166_s29 = sand.u32 1, %s6715_s12  }
 0x3e5   : > { %p8299_p12 = scmp.ne.s32.totalorder %s8287_s23, 0  ;;  %s5167_s30 = scalar_lea.sflag [#allocation6], %s5166_s29 }
 0x3e7   : > { %p6310_p13 = pnand %p6315_p11, %p8299_p12 }
 0x3e9   : > { %p6311_p0 = pneg %p6310_p13 }
 0x3eb   : > { %6710 = dma.done.wait (%p6311_p0), %s5167_s30, 4096  }
 0x3ec   : > { %6712 = vsyncadd (%p6311_p0), %s5167_s30, 4294963200  ;;  %p14_p1 = scmp.ge.s32.totalorder %s6788_s18, 4   ;;  %s8300_s12 = smov %s6719_s13 }
 0x3ed   : > { %s8301_s13 = smov %s6723_s14  ;;  %s8302_s14 = smov %s6799_s21 }
 0x3ee   : > { %s8303_s15 = smov %s6788_s18  ;;  %16 = sbr.rel (!%p14_p1) target bundleno = 4 (0x4), region = 83 }
 0x3f3   :  { %5172 = vsyncpa [#allocation5], 1 }
 0x3f4   :  { %5174 = vsyncpa [#allocation5 + $0x1], 1 }
 0x3f5   :  { %5175 = vsyncpa [#allocation6], 1 }
 0x3f6   :  { %5177 = vsyncpa [#allocation6 + $0x1], 1 }

</bundles_post_ra>
